<compile_context>
chip_gen: v6e
topology: v6e:2x2x1
jax: 0.10.0
libtpu: 0.0.40
codegen_flags: <defaults>
</compile_context>

<pallas_src>
import math

import jax
import jax.numpy as jnp
from jax.experimental import pallas as pl
from jax.experimental.pallas import tpu as pltpu


def _pick_time_block(T, cap=16):
    """Largest divisor of T that is <= cap (timesteps handled per grid step)."""
    for tb in range(min(T, cap), 0, -1):
        if T % tb == 0:
            return tb
    return 1


def _make_fused_lstm_kernel(n_layers, Tb, B, Hp):
    """Fused multi-layer LSTM kernel. Grid axis 0 = time block (sequential)."""
    G = 4 * Hp

    def kernel(*refs):
        gx0_ref = refs[0]                 # (Tb, B, 4Hp) f32: x@W_ih0 + b0 (hoisted)
        whh0_ref = refs[1]                # (Hp, 4Hp) bf16
        n_extra = 2 * (n_layers - 1)
        extra = refs[2:2 + n_extra]       # per inner layer: W_cat (2Hp,4Hp) bf16, b (1,4Hp) f32
        o_ref = refs[2 + n_extra]         # (B, Hp) f32 : final h of last layer
        h_scr = refs[3 + n_extra]         # (n_layers, B, Hp) f32
        c_scr = refs[4 + n_extra]         # (n_layers, B, Hp) f32

        tb = pl.program_id(0)

        @pl.when(tb == 0)
        def _init():
            h_scr[...] = jnp.zeros_like(h_scr)
            c_scr[...] = jnp.zeros_like(c_scr)

        # Loop-invariant weight loads / bias broadcasts hoisted out of the time loop
        # (JAX does not CSE broadcast_in_dim inside loops).
        whh0 = whh0_ref[...]
        wcats = [extra[2 * i][...] for i in range(n_layers - 1)]
        biases = [jnp.broadcast_to(extra[2 * i + 1][...], (B, G))
                  for i in range(n_layers - 1)]

        def cell(gates, c_prev):
            # PyTorch gate order [i, f, g, o]; each slice is Hp (128-aligned) wide.
            i_g = jax.nn.sigmoid(gates[:, 0 * Hp:1 * Hp])
            f_g = jax.nn.sigmoid(gates[:, 1 * Hp:2 * Hp])
            g_g = jnp.tanh(gates[:, 2 * Hp:3 * Hp])
            o_g = jax.nn.sigmoid(gates[:, 3 * Hp:4 * Hp])
            c_new = f_g * c_prev + i_g * g_g
            h_new = o_g * jnp.tanh(c_new)
            return h_new, c_new

        def step(t, carry):
            hs, cs = carry
            # Layer 0: input projection already precomputed; one recurrent matmul.
            gates0 = gx0_ref[t] + jnp.dot(
                hs[0].astype(jnp.bfloat16), whh0,
                preferred_element_type=jnp.float32)
            h_new, c_new = cell(gates0, cs[0])
            new_hs, new_cs = [h_new], [c_new]
            x_below = h_new
            # Inner layers: single fused matmul over [h_below, h_prev].
            for l in range(1, n_layers):
                inp = jnp.concatenate(
                    [x_below.astype(jnp.bfloat16),
                     hs[l].astype(jnp.bfloat16)], axis=1)       # (B, 2Hp)
                gates = biases[l - 1] + jnp.dot(
                    inp, wcats[l - 1], preferred_element_type=jnp.float32)
                h_l, c_l = cell(gates, cs[l])
                new_hs.append(h_l)
                new_cs.append(c_l)
                x_below = h_l
            return tuple(new_hs), tuple(new_cs)

        hs0 = tuple(h_scr[l] for l in range(n_layers))
        cs0 = tuple(c_scr[l] for l in range(n_layers))
        hs, cs = jax.lax.fori_loop(0, Tb, step, (hs0, cs0), unroll=True)

        for l in range(n_layers):
            h_scr[l] = hs[l]
            c_scr[l] = cs[l]
        # Only h[-1] is needed by DeepText; constant out index_map keeps this block
        # VMEM-resident, so HBM writeback happens once at the end of the grid.
        o_ref[...] = hs[n_layers - 1]

    return kernel


def fused_lstm_stack(gx0, w_hh0, inner_params, hidden_pad, time_block):
    """gx0: (T, B, 4Hp) f32 precomputed layer-0 gates-from-x. Returns final h (B, Hp)."""
    T, B, G = gx0.shape
    Hp = hidden_pad
    n_layers = 1 + len(inner_params)
    Tb = time_block
    assert T % Tb == 0

    in_specs = [
        pl.BlockSpec((Tb, B, G), lambda tb: (tb, 0, 0)),
        # Weights/biases: constant index map -> fetched once, stays in VMEM.
        # TODO(synk): for very large H on v7x, switch weights to single-buffering
        # (pl.Buffered(1)) or manual DMA to stay under 64 MiB physical VMEM.
        pl.BlockSpec((Hp, G), lambda tb: (0, 0)),
    ]
    args = [gx0, w_hh0]
    for (w_cat, b) in inner_params:
        in_specs.append(pl.BlockSpec((2 * Hp, G), lambda tb: (0, 0)))
        in_specs.append(pl.BlockSpec((1, G), lambda tb: (0, 0)))
        args.append(w_cat)
        args.append(b)

    kernel = _make_fused_lstm_kernel(n_layers, Tb, B, Hp)
    return pl.pallas_call(
        kernel,
        out_shape=jax.ShapeDtypeStruct((B, Hp), jnp.float32),
        grid_spec=pltpu.PrefetchScalarGridSpec(
            num_scalar_prefetch=0,
            grid=(T // Tb,),
            in_specs=in_specs,
            out_specs=pl.BlockSpec((B, Hp), lambda tb: (0, 0)),
            scratch_shapes=[
                pltpu.VMEM((n_layers, B, Hp), jnp.float32),  # h carry per layer
                pltpu.VMEM((n_layers, B, Hp), jnp.float32),  # c carry per layer
            ],
        ),
        compiler_params=pltpu.CompilerParams(
            dimension_semantics=("arbitrary",),   # recurrence: must run in order
            vmem_limit_bytes=48 * 1024 * 1024,
        ),
    )(*args)


class DeepTextPallas:
    """JAX/Pallas re-implementation of DeepText forward pass.

    Matches: embed = Embedding(X.long()); o,(h,c) = LSTM(embed, batch_first=True);
    return h[-1]   (bidirectional=False, head_layers=None, rnn_dropout=0.0).
    """

    def __init__(self, key, vocab_size, hidden_dim, n_layers, embed_dim,
                 padding_idx=1):
        self.vocab_size = vocab_size
        self.hidden_dim = hidden_dim
        self.n_layers = n_layers
        self.embed_dim = embed_dim
        self.padding_idx = padding_idx

        H = hidden_dim
        Hp = ((H + 127) // 128) * 128      # lane-aligned (multiple of 128) hidden
        self.hidden_pad = Hp

        keys = jax.random.split(key, 1 + 4 * n_layers)

        # nn.Embedding default init: N(0,1), padding row zeroed.
        emb = jax.random.normal(keys[0], (vocab_size, embed_dim), jnp.float32)
        emb = emb.at[padding_idx].set(0.0)
        self.embedding = emb

        bound = 1.0 / math.sqrt(H)

        def gate_pad_cols(w_t):
            # (in_dim, 4H) -> (in_dim, 4Hp): each gate block [i,f,g,o] zero-padded
            # to Hp columns so in-kernel gate slices are 128-lane aligned.
            in_dim = w_t.shape[0]
            out = jnp.zeros((in_dim, 4 * Hp), jnp.float32)
            for k in range(4):
                out = out.at[:, k * Hp:k * Hp + H].set(w_t[:, k * H:(k + 1) * H])
            return out

        def gate_pad_bias(b):
            out = jnp.zeros((4 * Hp,), jnp.float32)
            for k in range(4):
                out = out.at[k * Hp:k * Hp + H].set(b[k * H:(k + 1) * H])
            return out

        self.inner_params = []
        for l in range(n_layers):
            in_dim = embed_dim if l == 0 else H
            k0, k1, k2, k3 = keys[1 + 4 * l:1 + 4 * (l + 1)]
            # nn.LSTM default init: U(-1/sqrt(H), 1/sqrt(H)) for all params.
            w_ih = jax.random.uniform(k0, (4 * H, in_dim), jnp.float32, -bound, bound)
            w_hh = jax.random.uniform(k1, (4 * H, H), jnp.float32, -bound, bound)
            b_ih = jax.random.uniform(k2, (4 * H,), jnp.float32, -bound, bound)
            b_hh = jax.random.uniform(k3, (4 * H,), jnp.float32, -bound, bound)
            bias = gate_pad_bias(b_ih + b_hh)
            if l == 0:
                # Input projection is hoisted out of the kernel (batched over T*B).
                self.w_ih0_t = gate_pad_cols(w_ih.T).astype(jnp.bfloat16)   # (E, 4Hp)
                w_hh0_t = jnp.zeros((Hp, 4 * Hp), jnp.float32)
                w_hh0_t = w_hh0_t.at[:H, :].set(gate_pad_cols(w_hh.T))
                self.w_hh0_t = w_hh0_t.astype(jnp.bfloat16)                 # (Hp, 4Hp)
                self.bias0 = bias                                           # (4Hp,)
            else:
                # Fused [W_ih; W_hh] for a single matmul over [h_below, h_prev].
                w_cat = jnp.zeros((2 * Hp, 4 * Hp), jnp.float32)
                w_cat = w_cat.at[:H, :].set(gate_pad_cols(w_ih.T))
                w_cat = w_cat.at[Hp:Hp + H, :].set(gate_pad_cols(w_hh.T))
                self.inner_params.append(
                    (w_cat.astype(jnp.bfloat16), bias.reshape(1, 4 * Hp)))

    def __call__(self, X):
        Hp = self.hidden_pad
        # Transpose the tiny int token array first -> gather directly time-major.
        tokens = jnp.transpose(X.astype(jnp.int32))            # (T, B)
        embed_tm = jnp.take(self.embedding, tokens, axis=0)    # (T, B, E) f32
        T, B, _ = embed_tm.shape

        # Hoisted layer-0 input projection: one big batched matmul, f32 accumulate.
        gx0 = jnp.einsum(
            "tbe,eg->tbg",
            embed_tm.astype(jnp.bfloat16), self.w_ih0_t,
            preferred_element_type=jnp.float32) + self.bias0   # (T, B, 4Hp) f32

        Tb = _pick_time_block(T)
        h_last = fused_lstm_stack(gx0, self.w_hh0_t, self.inner_params, Hp, Tb)

        # rnn_dropout defaults to 0.0 (no-op between layers).
        # TODO(synk): bidirectional path and optional FC text-head not exercised
        # (module defaults: bidirectional=False, head_layers=None).
        return h_last[:, :self.hidden_dim]                     # h[-1]: (B, H)


if __name__ == "__main__":
    key = jax.random.PRNGKey(0)
    k_params, k_data = jax.random.split(key)

    B, T = 2, 8
    vocab_size, embed_dim, hidden_dim, n_layers = 20, 16, 32, 2

    model = DeepTextPallas(k_params, vocab_size=vocab_size,
                           hidden_dim=hidden_dim, n_layers=n_layers,
                           embed_dim=embed_dim, padding_idx=1)

    # Token ids in [2, vocab_size) with a leading padding column, like the example.
    body = jax.random.randint(k_data, (B, T - 1), 2, vocab_size)
    X = jnp.concatenate(
        [jnp.full((B, 1), 1, dtype=jnp.int32), body.astype(jnp.int32)], axis=1
    )  # (B, T)

    out = model(X)
    out = jax.block_until_ready(out)
    assert out.shape == (B, hidden_dim)
    assert out.dtype == jnp.float32
    print("KERNEL_OK")
</pallas_src>

<mosaic_0001>
module attributes {stable_mosaic.version = 11 : i64} {
  func.func @kernel(%arg0: i32, %arg1: memref<8x2x512xf32, #tpu.memory_space<vmem>>, %arg2: memref<128x512xbf16, #tpu.memory_space<vmem>>, %arg3: memref<256x512xbf16, #tpu.memory_space<vmem>>, %arg4: memref<1x512xf32, #tpu.memory_space<vmem>>, %arg5: memref<2x128xf32, #tpu.memory_space<vmem>>, %arg6: memref<2x2x128xf32, #tpu.memory_space<vmem>>, %arg7: memref<2x2x128xf32, #tpu.memory_space<vmem>>) attributes {dimension_semantics = [#tpu.dimension_semantics<arbitrary>], iteration_bounds = array<i64: 1>, scalar_prefetch = 0 : i64, scratch_operands = 2 : i64, tpu.core_type = #tpu.core_type<tc>, window_params = [{transform_indices = @transform_0, window_bounds = array<i64: 8, 2, 512>}, {pipeline_mode = #tpu.pipeline_mode<synchronous>, transform_indices = @transform_1, window_bounds = array<i64: 128, 512>}, {pipeline_mode = #tpu.pipeline_mode<synchronous>, transform_indices = @transform_2, window_bounds = array<i64: 256, 512>}, {pipeline_mode = #tpu.pipeline_mode<synchronous>, transform_indices = @transform_3, window_bounds = array<i64: 1, 512>}, {pipeline_mode = #tpu.pipeline_mode<synchronous>, transform_indices = @transform_4, window_bounds = array<i64: 2, 128>}]} {
    %c0_i32 = arith.constant 0 : i32
    %0 = arith.cmpi eq, %arg0, %c0_i32 : i32
    %1 = arith.extui %0 : i1 to i32
    %c0_i32_0 = arith.constant 0 : i32
    %2 = arith.cmpi ne, %1, %c0_i32_0 : i32
    scf.if %2 {
      %cst_111 = arith.constant 0.000000e+00 : f32
      %517 = vector.broadcast %cst_111 : f32 to vector<2x2x128xf32>
      %c0_112 = arith.constant 0 : index
      %c0_113 = arith.constant 0 : index
      %c0_114 = arith.constant 0 : index
      %518 = vector.load %arg6[%c0_112, %c0_113, %c0_114] : memref<2x2x128xf32, #tpu.memory_space<vmem>>, vector<2x2x128xf32>
      tpu.vector_store %arg6[%c0_112, %c0_113, %c0_114], %517 {strides = array<i32>} : memref<2x2x128xf32, #tpu.memory_space<vmem>>, vector<2x2x128xf32>,
      %cst_115 = arith.constant 0.000000e+00 : f32
      %519 = vector.broadcast %cst_115 : f32 to vector<2x2x128xf32>
      %c0_116 = arith.constant 0 : index
      %c0_117 = arith.constant 0 : index
      %c0_118 = arith.constant 0 : index
      %520 = vector.load %arg7[%c0_116, %c0_117, %c0_118] : memref<2x2x128xf32, #tpu.memory_space<vmem>>, vector<2x2x128xf32>
      tpu.vector_store %arg7[%c0_116, %c0_117, %c0_118], %519 {strides = array<i32>} : memref<2x2x128xf32, #tpu.memory_space<vmem>>, vector<2x2x128xf32>,
    } else {
    }
    %c0 = arith.constant 0 : index
    %c0_1 = arith.constant 0 : index
    %3 = vector.load %arg2[%c0, %c0_1] : memref<128x512xbf16, #tpu.memory_space<vmem>>, vector<128x512xbf16>
    %c0_2 = arith.constant 0 : index
    %c0_3 = arith.constant 0 : index
    %4 = vector.load %arg3[%c0_2, %c0_3] : memref<256x512xbf16, #tpu.memory_space<vmem>>, vector<256x512xbf16>
    %c0_4 = arith.constant 0 : index
    %c0_5 = arith.constant 0 : index
    %5 = vector.load %arg4[%c0_4, %c0_5] : memref<1x512xf32, #tpu.memory_space<vmem>>, vector<1x512xf32>
    %6 = vector.shape_cast %5 : vector<1x512xf32> to vector<1x512xf32>
    %7 = vector.broadcast %6 : vector<1x512xf32> to vector<2x512xf32>
    %c0_6 = arith.constant 0 : index
    %c0_7 = arith.constant 0 : index
    %c0_8 = arith.constant 0 : index
    %8 = vector.load %arg6[%c0_6, %c0_7, %c0_8] : memref<2x2x128xf32, #tpu.memory_space<vmem>>, vector<1x2x128xf32>
    %9 = vector.shape_cast %8 : vector<1x2x128xf32> to vector<2x128xf32>
    %c1 = arith.constant 1 : index
    %c0_9 = arith.constant 0 : index
    %c0_10 = arith.constant 0 : index
    %10 = vector.load %arg6[%c1, %c0_9, %c0_10] : memref<2x2x128xf32, #tpu.memory_space<vmem>>, vector<1x2x128xf32>
    %11 = vector.shape_cast %10 : vector<1x2x128xf32> to vector<2x128xf32>
    %c0_11 = arith.constant 0 : index
    %c0_12 = arith.constant 0 : index
    %c0_13 = arith.constant 0 : index
    %12 = vector.load %arg7[%c0_11, %c0_12, %c0_13] : memref<2x2x128xf32, #tpu.memory_space<vmem>>, vector<1x2x128xf32>
    %13 = vector.shape_cast %12 : vector<1x2x128xf32> to vector<2x128xf32>
    %c1_14 = arith.constant 1 : index
    %c0_15 = arith.constant 0 : index
    %c0_16 = arith.constant 0 : index
    %14 = vector.load %arg7[%c1_14, %c0_15, %c0_16] : memref<2x2x128xf32, #tpu.memory_space<vmem>>, vector<1x2x128xf32>
    %15 = vector.shape_cast %14 : vector<1x2x128xf32> to vector<2x128xf32>
    %c0_i32_17 = arith.constant 0 : i32
    %16 = arith.index_cast %c0_i32_17 : i32 to index
    %c0_18 = arith.constant 0 : index
    %c0_19 = arith.constant 0 : index
    %17 = vector.load %arg1[%16, %c0_18, %c0_19] : memref<8x2x512xf32, #tpu.memory_space<vmem>>, vector<1x2x512xf32>
    %18 = vector.shape_cast %17 : vector<1x2x512xf32> to vector<2x512xf32>
    %19 = arith.truncf %9 : vector<2x128xf32> to vector<2x128xbf16>
    %cst = arith.constant dense<0.000000e+00> : vector<2x512xf32>
    %20 = tpu.matmul %19, %3, %cst {dimension_numbers = #tpu.dot_dimension_numbers<[1], [0], [0], [1], [0, 0, 1, 1], [], []>} : vector<2x128xbf16>, vector<128x512xbf16>, vector<2x512xf32> -> vector<2x512xf32>
    %21 = arith.addf %18, %20 : vector<2x512xf32>
    %22 = vector.extract_strided_slice %21 {offsets = [0, 0], sizes = [2, 128], strides = [1, 1]} : vector<2x512xf32> to vector<2x128xf32>
    %23 = arith.negf %22 : vector<2x128xf32>
    %24 = math.exp %23 : vector<2x128xf32>
    %cst_20 = arith.constant 1.000000e+00 : f32
    %25 = vector.broadcast %cst_20 : f32 to vector<2x128xf32>
    %26 = arith.addf %25, %24 : vector<2x128xf32>
    %27 = arith.divf %25, %26 : vector<2x128xf32>
    %28 = vector.extract_strided_slice %21 {offsets = [0, 128], sizes = [2, 128], strides = [1, 1]} : vector<2x512xf32> to vector<2x128xf32>
    %29 = arith.negf %28 : vector<2x128xf32>
    %30 = math.exp %29 : vector<2x128xf32>
    %cst_21 = arith.constant 1.000000e+00 : f32
    %31 = vector.broadcast %cst_21 : f32 to vector<2x128xf32>
    %32 = arith.addf %31, %30 : vector<2x128xf32>
    %33 = arith.divf %31, %32 : vector<2x128xf32>
    %34 = vector.extract_strided_slice %21 {offsets = [0, 256], sizes = [2, 128], strides = [1, 1]} : vector<2x512xf32> to vector<2x128xf32>
    %35 = math.tanh %34 : vector<2x128xf32>
    %36 = vector.extract_strided_slice %21 {offsets = [0, 384], sizes = [2, 128], strides = [1, 1]} : vector<2x512xf32> to vector<2x128xf32>
    %37 = arith.negf %36 : vector<2x128xf32>
    %38 = math.exp %37 : vector<2x128xf32>
    %cst_22 = arith.constant 1.000000e+00 : f32
    %39 = vector.broadcast %cst_22 : f32 to vector<2x128xf32>
    %40 = arith.addf %39, %38 : vector<2x128xf32>
    %41 = arith.divf %39, %40 : vector<2x128xf32>
    %42 = arith.mulf %33, %13 : vector<2x128xf32>
    %43 = arith.mulf %27, %35 : vector<2x128xf32>
    %44 = arith.addf %42, %43 : vector<2x128xf32>
    %45 = math.tanh %44 : vector<2x128xf32>
    %46 = arith.mulf %41, %45 : vector<2x128xf32>
    %47 = arith.truncf %46 : vector<2x128xf32> to vector<2x128xbf16>
    %48 = arith.truncf %11 : vector<2x128xf32> to vector<2x128xbf16>
    %49 = tpu.concatenate %47, %48 in 1 : vector<2x128xbf16>, vector<2x128xbf16> -> vector<2x256xbf16>
    %cst_23 = arith.constant dense<0.000000e+00> : vector<2x512xf32>
    %50 = tpu.matmul %49, %4, %cst_23 {dimension_numbers = #tpu.dot_dimension_numbers<[1], [0], [0], [1], [0, 0, 1, 1], [], []>} : vector<2x256xbf16>, vector<256x512xbf16>, vector<2x512xf32> -> vector<2x512xf32>
    %51 = arith.addf %7, %50 : vector<2x512xf32>
    %52 = vector.extract_strided_slice %51 {offsets = [0, 0], sizes = [2, 128], strides = [1, 1]} : vector<2x512xf32> to vector<2x128xf32>
    %53 = arith.negf %52 : vector<2x128xf32>
    %54 = math.exp %53 : vector<2x128xf32>
    %cst_24 = arith.constant 1.000000e+00 : f32
    %55 = vector.broadcast %cst_24 : f32 to vector<2x128xf32>
    %56 = arith.addf %55, %54 : vector<2x128xf32>
    %57 = arith.divf %55, %56 : vector<2x128xf32>
    %58 = vector.extract_strided_slice %51 {offsets = [0, 128], sizes = [2, 128], strides = [1, 1]} : vector<2x512xf32> to vector<2x128xf32>
    %59 = arith.negf %58 : vector<2x128xf32>
    %60 = math.exp %59 : vector<2x128xf32>
    %cst_25 = arith.constant 1.000000e+00 : f32
    %61 = vector.broadcast %cst_25 : f32 to vector<2x128xf32>
    %62 = arith.addf %61, %60 : vector<2x128xf32>
    %63 = arith.divf %61, %62 : vector<2x128xf32>
    %64 = vector.extract_strided_slice %51 {offsets = [0, 256], sizes = [2, 128], strides = [1, 1]} : vector<2x512xf32> to vector<2x128xf32>
    %65 = math.tanh %64 : vector<2x128xf32>
    %66 = vector.extract_strided_slice %51 {offsets = [0, 384], sizes = [2, 128], strides = [1, 1]} : vector<2x512xf32> to vector<2x128xf32>
    %67 = arith.negf %66 : vector<2x128xf32>
    %68 = math.exp %67 : vector<2x128xf32>
    %cst_26 = arith.constant 1.000000e+00 : f32
    %69 = vector.broadcast %cst_26 : f32 to vector<2x128xf32>
    %70 = arith.addf %69, %68 : vector<2x128xf32>
    %71 = arith.divf %69, %70 : vector<2x128xf32>
    %72 = arith.mulf %63, %15 : vector<2x128xf32>
    %73 = arith.mulf %57, %65 : vector<2x128xf32>
    %74 = arith.addf %72, %73 : vector<2x128xf32>
    %75 = math.tanh %74 : vector<2x128xf32>
    %76 = arith.mulf %71, %75 : vector<2x128xf32>
    %c1_i32 = arith.constant 1 : i32
    %77 = arith.index_cast %c1_i32 : i32 to index
    %c0_27 = arith.constant 0 : index
    %c0_28 = arith.constant 0 : index
    %78 = vector.load %arg1[%77, %c0_27, %c0_28] : memref<8x2x512xf32, #tpu.memory_space<vmem>>, vector<1x2x512xf32>
    %79 = vector.shape_cast %78 : vector<1x2x512xf32> to vector<2x512xf32>
    %80 = arith.truncf %46 : vector<2x128xf32> to vector<2x128xbf16>
    %cst_29 = arith.constant dense<0.000000e+00> : vector<2x512xf32>
    %81 = tpu.matmul %80, %3, %cst_29 {dimension_numbers = #tpu.dot_dimension_numbers<[1], [0], [0], [1], [0, 0, 1, 1], [], []>} : vector<2x128xbf16>, vector<128x512xbf16>, vector<2x512xf32> -> vector<2x512xf32>
    %82 = arith.addf %79, %81 : vector<2x512xf32>
    %83 = vector.extract_strided_slice %82 {offsets = [0, 0], sizes = [2, 128], strides = [1, 1]} : vector<2x512xf32> to vector<2x128xf32>
    %84 = arith.negf %83 : vector<2x128xf32>
    %85 = math.exp %84 : vector<2x128xf32>
    %cst_30 = arith.constant 1.000000e+00 : f32
    %86 = vector.broadcast %cst_30 : f32 to vector<2x128xf32>
    %87 = arith.addf %86, %85 : vector<2x128xf32>
    %88 = arith.divf %86, %87 : vector<2x128xf32>
    %89 = vector.extract_strided_slice %82 {offsets = [0, 128], sizes = [2, 128], strides = [1, 1]} : vector<2x512xf32> to vector<2x128xf32>
    %90 = arith.negf %89 : vector<2x128xf32>
    %91 = math.exp %90 : vector<2x128xf32>
    %cst_31 = arith.constant 1.000000e+00 : f32
    %92 = vector.broadcast %cst_31 : f32 to vector<2x128xf32>
    %93 = arith.addf %92, %91 : vector<2x128xf32>
    %94 = arith.divf %92, %93 : vector<2x128xf32>
    %95 = vector.extract_strided_slice %82 {offsets = [0, 256], sizes = [2, 128], strides = [1, 1]} : vector<2x512xf32> to vector<2x128xf32>
    %96 = math.tanh %95 : vector<2x128xf32>
    %97 = vector.extract_strided_slice %82 {offsets = [0, 384], sizes = [2, 128], strides = [1, 1]} : vector<2x512xf32> to vector<2x128xf32>
    %98 = arith.negf %97 : vector<2x128xf32>
    %99 = math.exp %98 : vector<2x128xf32>
    %cst_32 = arith.constant 1.000000e+00 : f32
    %100 = vector.broadcast %cst_32 : f32 to vector<2x128xf32>
    %101 = arith.addf %100, %99 : vector<2x128xf32>
    %102 = arith.divf %100, %101 : vector<2x128xf32>
    %103 = arith.mulf %94, %44 : vector<2x128xf32>
    %104 = arith.mulf %88, %96 : vector<2x128xf32>
    %105 = arith.addf %103, %104 : vector<2x128xf32>
    %106 = math.tanh %105 : vector<2x128xf32>
    %107 = arith.mulf %102, %106 : vector<2x128xf32>
    %108 = arith.truncf %107 : vector<2x128xf32> to vector<2x128xbf16>
    %109 = arith.truncf %76 : vector<2x128xf32> to vector<2x128xbf16>
    %110 = tpu.concatenate %108, %109 in 1 : vector<2x128xbf16>, vector<2x128xbf16> -> vector<2x256xbf16>
    %cst_33 = arith.constant dense<0.000000e+00> : vector<2x512xf32>
    %111 = tpu.matmul %110, %4, %cst_33 {dimension_numbers = #tpu.dot_dimension_numbers<[1], [0], [0], [1], [0, 0, 1, 1], [], []>} : vector<2x256xbf16>, vector<256x512xbf16>, vector<2x512xf32> -> vector<2x512xf32>
    %112 = arith.addf %7, %111 : vector<2x512xf32>
    %113 = vector.extract_strided_slice %112 {offsets = [0, 0], sizes = [2, 128], strides = [1, 1]} : vector<2x512xf32> to vector<2x128xf32>
    %114 = arith.negf %113 : vector<2x128xf32>
    %115 = math.exp %114 : vector<2x128xf32>
    %cst_34 = arith.constant 1.000000e+00 : f32
    %116 = vector.broadcast %cst_34 : f32 to vector<2x128xf32>
    %117 = arith.addf %116, %115 : vector<2x128xf32>
    %118 = arith.divf %116, %117 : vector<2x128xf32>
    %119 = vector.extract_strided_slice %112 {offsets = [0, 128], sizes = [2, 128], strides = [1, 1]} : vector<2x512xf32> to vector<2x128xf32>
    %120 = arith.negf %119 : vector<2x128xf32>
    %121 = math.exp %120 : vector<2x128xf32>
    %cst_35 = arith.constant 1.000000e+00 : f32
    %122 = vector.broadcast %cst_35 : f32 to vector<2x128xf32>
    %123 = arith.addf %122, %121 : vector<2x128xf32>
    %124 = arith.divf %122, %123 : vector<2x128xf32>
    %125 = vector.extract_strided_slice %112 {offsets = [0, 256], sizes = [2, 128], strides = [1, 1]} : vector<2x512xf32> to vector<2x128xf32>
    %126 = math.tanh %125 : vector<2x128xf32>
    %127 = vector.extract_strided_slice %112 {offsets = [0, 384], sizes = [2, 128], strides = [1, 1]} : vector<2x512xf32> to vector<2x128xf32>
    %128 = arith.negf %127 : vector<2x128xf32>
    %129 = math.exp %128 : vector<2x128xf32>
    %cst_36 = arith.constant 1.000000e+00 : f32
    %130 = vector.broadcast %cst_36 : f32 to vector<2x128xf32>
    %131 = arith.addf %130, %129 : vector<2x128xf32>
    %132 = arith.divf %130, %131 : vector<2x128xf32>
    %133 = arith.mulf %124, %74 : vector<2x128xf32>
    %134 = arith.mulf %118, %126 : vector<2x128xf32>
    %135 = arith.addf %133, %134 : vector<2x128xf32>
    %136 = math.tanh %135 : vector<2x128xf32>
    %137 = arith.mulf %132, %136 : vector<2x128xf32>
    %c2_i32 = arith.constant 2 : i32
    %138 = arith.index_cast %c2_i32 : i32 to index
    %c0_37 = arith.constant 0 : index
    %c0_38 = arith.constant 0 : index
    %139 = vector.load %arg1[%138, %c0_37, %c0_38] : memref<8x2x512xf32, #tpu.memory_space<vmem>>, vector<1x2x512xf32>
    %140 = vector.shape_cast %139 : vector<1x2x512xf32> to vector<2x512xf32>
    %141 = arith.truncf %107 : vector<2x128xf32> to vector<2x128xbf16>
    %cst_39 = arith.constant dense<0.000000e+00> : vector<2x512xf32>
    %142 = tpu.matmul %141, %3, %cst_39 {dimension_numbers = #tpu.dot_dimension_numbers<[1], [0], [0], [1], [0, 0, 1, 1], [], []>} : vector<2x128xbf16>, vector<128x512xbf16>, vector<2x512xf32> -> vector<2x512xf32>
    %143 = arith.addf %140, %142 : vector<2x512xf32>
    %144 = vector.extract_strided_slice %143 {offsets = [0, 0], sizes = [2, 128], strides = [1, 1]} : vector<2x512xf32> to vector<2x128xf32>
    %145 = arith.negf %144 : vector<2x128xf32>
    %146 = math.exp %145 : vector<2x128xf32>
    %cst_40 = arith.constant 1.000000e+00 : f32
    %147 = vector.broadcast %cst_40 : f32 to vector<2x128xf32>
    %148 = arith.addf %147, %146 : vector<2x128xf32>
    %149 = arith.divf %147, %148 : vector<2x128xf32>
    %150 = vector.extract_strided_slice %143 {offsets = [0, 128], sizes = [2, 128], strides = [1, 1]} : vector<2x512xf32> to vector<2x128xf32>
    %151 = arith.negf %150 : vector<2x128xf32>
    %152 = math.exp %151 : vector<2x128xf32>
    %cst_41 = arith.constant 1.000000e+00 : f32
    %153 = vector.broadcast %cst_41 : f32 to vector<2x128xf32>
    %154 = arith.addf %153, %152 : vector<2x128xf32>
    %155 = arith.divf %153, %154 : vector<2x128xf32>
    %156 = vector.extract_strided_slice %143 {offsets = [0, 256], sizes = [2, 128], strides = [1, 1]} : vector<2x512xf32> to vector<2x128xf32>
    %157 = math.tanh %156 : vector<2x128xf32>
    %158 = vector.extract_strided_slice %143 {offsets = [0, 384], sizes = [2, 128], strides = [1, 1]} : vector<2x512xf32> to vector<2x128xf32>
    %159 = arith.negf %158 : vector<2x128xf32>
    %160 = math.exp %159 : vector<2x128xf32>
    %cst_42 = arith.constant 1.000000e+00 : f32
    %161 = vector.broadcast %cst_42 : f32 to vector<2x128xf32>
    %162 = arith.addf %161, %160 : vector<2x128xf32>
    %163 = arith.divf %161, %162 : vector<2x128xf32>
    %164 = arith.mulf %155, %105 : vector<2x128xf32>
    %165 = arith.mulf %149, %157 : vector<2x128xf32>
    %166 = arith.addf %164, %165 : vector<2x128xf32>
    %167 = math.tanh %166 : vector<2x128xf32>
    %168 = arith.mulf %163, %167 : vector<2x128xf32>
    %169 = arith.truncf %168 : vector<2x128xf32> to vector<2x128xbf16>
    %170 = arith.truncf %137 : vector<2x128xf32> to vector<2x128xbf16>
    %171 = tpu.concatenate %169, %170 in 1 : vector<2x128xbf16>, vector<2x128xbf16> -> vector<2x256xbf16>
    %cst_43 = arith.constant dense<0.000000e+00> : vector<2x512xf32>
    %172 = tpu.matmul %171, %4, %cst_43 {dimension_numbers = #tpu.dot_dimension_numbers<[1], [0], [0], [1], [0, 0, 1, 1], [], []>} : vector<2x256xbf16>, vector<256x512xbf16>, vector<2x512xf32> -> vector<2x512xf32>
    %173 = arith.addf %7, %172 : vector<2x512xf32>
    %174 = vector.extract_strided_slice %173 {offsets = [0, 0], sizes = [2, 128], strides = [1, 1]} : vector<2x512xf32> to vector<2x128xf32>
    %175 = arith.negf %174 : vector<2x128xf32>
    %176 = math.exp %175 : vector<2x128xf32>
    %cst_44 = arith.constant 1.000000e+00 : f32
    %177 = vector.broadcast %cst_44 : f32 to vector<2x128xf32>
    %178 = arith.addf %177, %176 : vector<2x128xf32>
    %179 = arith.divf %177, %178 : vector<2x128xf32>
    %180 = vector.extract_strided_slice %173 {offsets = [0, 128], sizes = [2, 128], strides = [1, 1]} : vector<2x512xf32> to vector<2x128xf32>
    %181 = arith.negf %180 : vector<2x128xf32>
    %182 = math.exp %181 : vector<2x128xf32>
    %cst_45 = arith.constant 1.000000e+00 : f32
    %183 = vector.broadcast %cst_45 : f32 to vector<2x128xf32>
    %184 = arith.addf %183, %182 : vector<2x128xf32>
    %185 = arith.divf %183, %184 : vector<2x128xf32>
    %186 = vector.extract_strided_slice %173 {offsets = [0, 256], sizes = [2, 128], strides = [1, 1]} : vector<2x512xf32> to vector<2x128xf32>
    %187 = math.tanh %186 : vector<2x128xf32>
    %188 = vector.extract_strided_slice %173 {offsets = [0, 384], sizes = [2, 128], strides = [1, 1]} : vector<2x512xf32> to vector<2x128xf32>
    %189 = arith.negf %188 : vector<2x128xf32>
    %190 = math.exp %189 : vector<2x128xf32>
    %cst_46 = arith.constant 1.000000e+00 : f32
    %191 = vector.broadcast %cst_46 : f32 to vector<2x128xf32>
    %192 = arith.addf %191, %190 : vector<2x128xf32>
    %193 = arith.divf %191, %192 : vector<2x128xf32>
    %194 = arith.mulf %185, %135 : vector<2x128xf32>
    %195 = arith.mulf %179, %187 : vector<2x128xf32>
    %196 = arith.addf %194, %195 : vector<2x128xf32>
    %197 = math.tanh %196 : vector<2x128xf32>
    %198 = arith.mulf %193, %197 : vector<2x128xf32>
    %c3_i32 = arith.constant 3 : i32
    %199 = arith.index_cast %c3_i32 : i32 to index
    %c0_47 = arith.constant 0 : index
    %c0_48 = arith.constant 0 : index
    %200 = vector.load %arg1[%199, %c0_47, %c0_48] : memref<8x2x512xf32, #tpu.memory_space<vmem>>, vector<1x2x512xf32>
    %201 = vector.shape_cast %200 : vector<1x2x512xf32> to vector<2x512xf32>
    %202 = arith.truncf %168 : vector<2x128xf32> to vector<2x128xbf16>
    %cst_49 = arith.constant dense<0.000000e+00> : vector<2x512xf32>
    %203 = tpu.matmul %202, %3, %cst_49 {dimension_numbers = #tpu.dot_dimension_numbers<[1], [0], [0], [1], [0, 0, 1, 1], [], []>} : vector<2x128xbf16>, vector<128x512xbf16>, vector<2x512xf32> -> vector<2x512xf32>
    %204 = arith.addf %201, %203 : vector<2x512xf32>
    %205 = vector.extract_strided_slice %204 {offsets = [0, 0], sizes = [2, 128], strides = [1, 1]} : vector<2x512xf32> to vector<2x128xf32>
    %206 = arith.negf %205 : vector<2x128xf32>
    %207 = math.exp %206 : vector<2x128xf32>
    %cst_50 = arith.constant 1.000000e+00 : f32
    %208 = vector.broadcast %cst_50 : f32 to vector<2x128xf32>
    %209 = arith.addf %208, %207 : vector<2x128xf32>
    %210 = arith.divf %208, %209 : vector<2x128xf32>
    %211 = vector.extract_strided_slice %204 {offsets = [0, 128], sizes = [2, 128], strides = [1, 1]} : vector<2x512xf32> to vector<2x128xf32>
    %212 = arith.negf %211 : vector<2x128xf32>
    %213 = math.exp %212 : vector<2x128xf32>
    %cst_51 = arith.constant 1.000000e+00 : f32
    %214 = vector.broadcast %cst_51 : f32 to vector<2x128xf32>
    %215 = arith.addf %214, %213 : vector<2x128xf32>
    %216 = arith.divf %214, %215 : vector<2x128xf32>
    %217 = vector.extract_strided_slice %204 {offsets = [0, 256], sizes = [2, 128], strides = [1, 1]} : vector<2x512xf32> to vector<2x128xf32>
    %218 = math.tanh %217 : vector<2x128xf32>
    %219 = vector.extract_strided_slice %204 {offsets = [0, 384], sizes = [2, 128], strides = [1, 1]} : vector<2x512xf32> to vector<2x128xf32>
    %220 = arith.negf %219 : vector<2x128xf32>
    %221 = math.exp %220 : vector<2x128xf32>
    %cst_52 = arith.constant 1.000000e+00 : f32
    %222 = vector.broadcast %cst_52 : f32 to vector<2x128xf32>
    %223 = arith.addf %222, %221 : vector<2x128xf32>
    %224 = arith.divf %222, %223 : vector<2x128xf32>
    %225 = arith.mulf %216, %166 : vector<2x128xf32>
    %226 = arith.mulf %210, %218 : vector<2x128xf32>
    %227 = arith.addf %225, %226 : vector<2x128xf32>
    %228 = math.tanh %227 : vector<2x128xf32>
    %229 = arith.mulf %224, %228 : vector<2x128xf32>
    %230 = arith.truncf %229 : vector<2x128xf32> to vector<2x128xbf16>
    %231 = arith.truncf %198 : vector<2x128xf32> to vector<2x128xbf16>
    %232 = tpu.concatenate %230, %231 in 1 : vector<2x128xbf16>, vector<2x128xbf16> -> vector<2x256xbf16>
    %cst_53 = arith.constant dense<0.000000e+00> : vector<2x512xf32>
    %233 = tpu.matmul %232, %4, %cst_53 {dimension_numbers = #tpu.dot_dimension_numbers<[1], [0], [0], [1], [0, 0, 1, 1], [], []>} : vector<2x256xbf16>, vector<256x512xbf16>, vector<2x512xf32> -> vector<2x512xf32>
    %234 = arith.addf %7, %233 : vector<2x512xf32>
    %235 = vector.extract_strided_slice %234 {offsets = [0, 0], sizes = [2, 128], strides = [1, 1]} : vector<2x512xf32> to vector<2x128xf32>
    %236 = arith.negf %235 : vector<2x128xf32>
    %237 = math.exp %236 : vector<2x128xf32>
    %cst_54 = arith.constant 1.000000e+00 : f32
    %238 = vector.broadcast %cst_54 : f32 to vector<2x128xf32>
    %239 = arith.addf %238, %237 : vector<2x128xf32>
    %240 = arith.divf %238, %239 : vector<2x128xf32>
    %241 = vector.extract_strided_slice %234 {offsets = [0, 128], sizes = [2, 128], strides = [1, 1]} : vector<2x512xf32> to vector<2x128xf32>
    %242 = arith.negf %241 : vector<2x128xf32>
    %243 = math.exp %242 : vector<2x128xf32>
    %cst_55 = arith.constant 1.000000e+00 : f32
    %244 = vector.broadcast %cst_55 : f32 to vector<2x128xf32>
    %245 = arith.addf %244, %243 : vector<2x128xf32>
    %246 = arith.divf %244, %245 : vector<2x128xf32>
    %247 = vector.extract_strided_slice %234 {offsets = [0, 256], sizes = [2, 128], strides = [1, 1]} : vector<2x512xf32> to vector<2x128xf32>
    %248 = math.tanh %247 : vector<2x128xf32>
    %249 = vector.extract_strided_slice %234 {offsets = [0, 384], sizes = [2, 128], strides = [1, 1]} : vector<2x512xf32> to vector<2x128xf32>
    %250 = arith.negf %249 : vector<2x128xf32>
    %251 = math.exp %250 : vector<2x128xf32>
    %cst_56 = arith.constant 1.000000e+00 : f32
    %252 = vector.broadcast %cst_56 : f32 to vector<2x128xf32>
    %253 = arith.addf %252, %251 : vector<2x128xf32>
    %254 = arith.divf %252, %253 : vector<2x128xf32>
    %255 = arith.mulf %246, %196 : vector<2x128xf32>
    %256 = arith.mulf %240, %248 : vector<2x128xf32>
    %257 = arith.addf %255, %256 : vector<2x128xf32>
    %258 = math.tanh %257 : vector<2x128xf32>
    %259 = arith.mulf %254, %258 : vector<2x128xf32>
    %c4_i32 = arith.constant 4 : i32
    %260 = arith.index_cast %c4_i32 : i32 to index
    %c0_57 = arith.constant 0 : index
    %c0_58 = arith.constant 0 : index
    %261 = vector.load %arg1[%260, %c0_57, %c0_58] : memref<8x2x512xf32, #tpu.memory_space<vmem>>, vector<1x2x512xf32>
    %262 = vector.shape_cast %261 : vector<1x2x512xf32> to vector<2x512xf32>
    %263 = arith.truncf %229 : vector<2x128xf32> to vector<2x128xbf16>
    %cst_59 = arith.constant dense<0.000000e+00> : vector<2x512xf32>
    %264 = tpu.matmul %263, %3, %cst_59 {dimension_numbers = #tpu.dot_dimension_numbers<[1], [0], [0], [1], [0, 0, 1, 1], [], []>} : vector<2x128xbf16>, vector<128x512xbf16>, vector<2x512xf32> -> vector<2x512xf32>
    %265 = arith.addf %262, %264 : vector<2x512xf32>
    %266 = vector.extract_strided_slice %265 {offsets = [0, 0], sizes = [2, 128], strides = [1, 1]} : vector<2x512xf32> to vector<2x128xf32>
    %267 = arith.negf %266 : vector<2x128xf32>
    %268 = math.exp %267 : vector<2x128xf32>
    %cst_60 = arith.constant 1.000000e+00 : f32
    %269 = vector.broadcast %cst_60 : f32 to vector<2x128xf32>
    %270 = arith.addf %269, %268 : vector<2x128xf32>
    %271 = arith.divf %269, %270 : vector<2x128xf32>
    %272 = vector.extract_strided_slice %265 {offsets = [0, 128], sizes = [2, 128], strides = [1, 1]} : vector<2x512xf32> to vector<2x128xf32>
    %273 = arith.negf %272 : vector<2x128xf32>
    %274 = math.exp %273 : vector<2x128xf32>
    %cst_61 = arith.constant 1.000000e+00 : f32
    %275 = vector.broadcast %cst_61 : f32 to vector<2x128xf32>
    %276 = arith.addf %275, %274 : vector<2x128xf32>
    %277 = arith.divf %275, %276 : vector<2x128xf32>
    %278 = vector.extract_strided_slice %265 {offsets = [0, 256], sizes = [2, 128], strides = [1, 1]} : vector<2x512xf32> to vector<2x128xf32>
    %279 = math.tanh %278 : vector<2x128xf32>
    %280 = vector.extract_strided_slice %265 {offsets = [0, 384], sizes = [2, 128], strides = [1, 1]} : vector<2x512xf32> to vector<2x128xf32>
    %281 = arith.negf %280 : vector<2x128xf32>
    %282 = math.exp %281 : vector<2x128xf32>
    %cst_62 = arith.constant 1.000000e+00 : f32
    %283 = vector.broadcast %cst_62 : f32 to vector<2x128xf32>
    %284 = arith.addf %283, %282 : vector<2x128xf32>
    %285 = arith.divf %283, %284 : vector<2x128xf32>
    %286 = arith.mulf %277, %227 : vector<2x128xf32>
    %287 = arith.mulf %271, %279 : vector<2x128xf32>
    %288 = arith.addf %286, %287 : vector<2x128xf32>
    %289 = math.tanh %288 : vector<2x128xf32>
    %290 = arith.mulf %285, %289 : vector<2x128xf32>
    %291 = arith.truncf %290 : vector<2x128xf32> to vector<2x128xbf16>
    %292 = arith.truncf %259 : vector<2x128xf32> to vector<2x128xbf16>
    %293 = tpu.concatenate %291, %292 in 1 : vector<2x128xbf16>, vector<2x128xbf16> -> vector<2x256xbf16>
    %cst_63 = arith.constant dense<0.000000e+00> : vector<2x512xf32>
    %294 = tpu.matmul %293, %4, %cst_63 {dimension_numbers = #tpu.dot_dimension_numbers<[1], [0], [0], [1], [0, 0, 1, 1], [], []>} : vector<2x256xbf16>, vector<256x512xbf16>, vector<2x512xf32> -> vector<2x512xf32>
    %295 = arith.addf %7, %294 : vector<2x512xf32>
    %296 = vector.extract_strided_slice %295 {offsets = [0, 0], sizes = [2, 128], strides = [1, 1]} : vector<2x512xf32> to vector<2x128xf32>
    %297 = arith.negf %296 : vector<2x128xf32>
    %298 = math.exp %297 : vector<2x128xf32>
    %cst_64 = arith.constant 1.000000e+00 : f32
    %299 = vector.broadcast %cst_64 : f32 to vector<2x128xf32>
    %300 = arith.addf %299, %298 : vector<2x128xf32>
    %301 = arith.divf %299, %300 : vector<2x128xf32>
    %302 = vector.extract_strided_slice %295 {offsets = [0, 128], sizes = [2, 128], strides = [1, 1]} : vector<2x512xf32> to vector<2x128xf32>
    %303 = arith.negf %302 : vector<2x128xf32>
    %304 = math.exp %303 : vector<2x128xf32>
    %cst_65 = arith.constant 1.000000e+00 : f32
    %305 = vector.broadcast %cst_65 : f32 to vector<2x128xf32>
    %306 = arith.addf %305, %304 : vector<2x128xf32>
    %307 = arith.divf %305, %306 : vector<2x128xf32>
    %308 = vector.extract_strided_slice %295 {offsets = [0, 256], sizes = [2, 128], strides = [1, 1]} : vector<2x512xf32> to vector<2x128xf32>
    %309 = math.tanh %308 : vector<2x128xf32>
    %310 = vector.extract_strided_slice %295 {offsets = [0, 384], sizes = [2, 128], strides = [1, 1]} : vector<2x512xf32> to vector<2x128xf32>
    %311 = arith.negf %310 : vector<2x128xf32>
    %312 = math.exp %311 : vector<2x128xf32>
    %cst_66 = arith.constant 1.000000e+00 : f32
    %313 = vector.broadcast %cst_66 : f32 to vector<2x128xf32>
    %314 = arith.addf %313, %312 : vector<2x128xf32>
    %315 = arith.divf %313, %314 : vector<2x128xf32>
    %316 = arith.mulf %307, %257 : vector<2x128xf32>
    %317 = arith.mulf %301, %309 : vector<2x128xf32>
    %318 = arith.addf %316, %317 : vector<2x128xf32>
    %319 = math.tanh %318 : vector<2x128xf32>
    %320 = arith.mulf %315, %319 : vector<2x128xf32>
    %c5_i32 = arith.constant 5 : i32
    %321 = arith.index_cast %c5_i32 : i32 to index
    %c0_67 = arith.constant 0 : index
    %c0_68 = arith.constant 0 : index
    %322 = vector.load %arg1[%321, %c0_67, %c0_68] : memref<8x2x512xf32, #tpu.memory_space<vmem>>, vector<1x2x512xf32>
    %323 = vector.shape_cast %322 : vector<1x2x512xf32> to vector<2x512xf32>
    %324 = arith.truncf %290 : vector<2x128xf32> to vector<2x128xbf16>
    %cst_69 = arith.constant dense<0.000000e+00> : vector<2x512xf32>
    %325 = tpu.matmul %324, %3, %cst_69 {dimension_numbers = #tpu.dot_dimension_numbers<[1], [0], [0], [1], [0, 0, 1, 1], [], []>} : vector<2x128xbf16>, vector<128x512xbf16>, vector<2x512xf32> -> vector<2x512xf32>
    %326 = arith.addf %323, %325 : vector<2x512xf32>
    %327 = vector.extract_strided_slice %326 {offsets = [0, 0], sizes = [2, 128], strides = [1, 1]} : vector<2x512xf32> to vector<2x128xf32>
    %328 = arith.negf %327 : vector<2x128xf32>
    %329 = math.exp %328 : vector<2x128xf32>
    %cst_70 = arith.constant 1.000000e+00 : f32
    %330 = vector.broadcast %cst_70 : f32 to vector<2x128xf32>
    %331 = arith.addf %330, %329 : vector<2x128xf32>
    %332 = arith.divf %330, %331 : vector<2x128xf32>
    %333 = vector.extract_strided_slice %326 {offsets = [0, 128], sizes = [2, 128], strides = [1, 1]} : vector<2x512xf32> to vector<2x128xf32>
    %334 = arith.negf %333 : vector<2x128xf32>
    %335 = math.exp %334 : vector<2x128xf32>
    %cst_71 = arith.constant 1.000000e+00 : f32
    %336 = vector.broadcast %cst_71 : f32 to vector<2x128xf32>
    %337 = arith.addf %336, %335 : vector<2x128xf32>
    %338 = arith.divf %336, %337 : vector<2x128xf32>
    %339 = vector.extract_strided_slice %326 {offsets = [0, 256], sizes = [2, 128], strides = [1, 1]} : vector<2x512xf32> to vector<2x128xf32>
    %340 = math.tanh %339 : vector<2x128xf32>
    %341 = vector.extract_strided_slice %326 {offsets = [0, 384], sizes = [2, 128], strides = [1, 1]} : vector<2x512xf32> to vector<2x128xf32>
    %342 = arith.negf %341 : vector<2x128xf32>
    %343 = math.exp %342 : vector<2x128xf32>
    %cst_72 = arith.constant 1.000000e+00 : f32
    %344 = vector.broadcast %cst_72 : f32 to vector<2x128xf32>
    %345 = arith.addf %344, %343 : vector<2x128xf32>
    %346 = arith.divf %344, %345 : vector<2x128xf32>
    %347 = arith.mulf %338, %288 : vector<2x128xf32>
    %348 = arith.mulf %332, %340 : vector<2x128xf32>
    %349 = arith.addf %347, %348 : vector<2x128xf32>
    %350 = math.tanh %349 : vector<2x128xf32>
    %351 = arith.mulf %346, %350 : vector<2x128xf32>
    %352 = arith.truncf %351 : vector<2x128xf32> to vector<2x128xbf16>
    %353 = arith.truncf %320 : vector<2x128xf32> to vector<2x128xbf16>
    %354 = tpu.concatenate %352, %353 in 1 : vector<2x128xbf16>, vector<2x128xbf16> -> vector<2x256xbf16>
    %cst_73 = arith.constant dense<0.000000e+00> : vector<2x512xf32>
    %355 = tpu.matmul %354, %4, %cst_73 {dimension_numbers = #tpu.dot_dimension_numbers<[1], [0], [0], [1], [0, 0, 1, 1], [], []>} : vector<2x256xbf16>, vector<256x512xbf16>, vector<2x512xf32> -> vector<2x512xf32>
    %356 = arith.addf %7, %355 : vector<2x512xf32>
    %357 = vector.extract_strided_slice %356 {offsets = [0, 0], sizes = [2, 128], strides = [1, 1]} : vector<2x512xf32> to vector<2x128xf32>
    %358 = arith.negf %357 : vector<2x128xf32>
    %359 = math.exp %358 : vector<2x128xf32>
    %cst_74 = arith.constant 1.000000e+00 : f32
    %360 = vector.broadcast %cst_74 : f32 to vector<2x128xf32>
    %361 = arith.addf %360, %359 : vector<2x128xf32>
    %362 = arith.divf %360, %361 : vector<2x128xf32>
    %363 = vector.extract_strided_slice %356 {offsets = [0, 128], sizes = [2, 128], strides = [1, 1]} : vector<2x512xf32> to vector<2x128xf32>
    %364 = arith.negf %363 : vector<2x128xf32>
    %365 = math.exp %364 : vector<2x128xf32>
    %cst_75 = arith.constant 1.000000e+00 : f32
    %366 = vector.broadcast %cst_75 : f32 to vector<2x128xf32>
    %367 = arith.addf %366, %365 : vector<2x128xf32>
    %368 = arith.divf %366, %367 : vector<2x128xf32>
    %369 = vector.extract_strided_slice %356 {offsets = [0, 256], sizes = [2, 128], strides = [1, 1]} : vector<2x512xf32> to vector<2x128xf32>
    %370 = math.tanh %369 : vector<2x128xf32>
    %371 = vector.extract_strided_slice %356 {offsets = [0, 384], sizes = [2, 128], strides = [1, 1]} : vector<2x512xf32> to vector<2x128xf32>
    %372 = arith.negf %371 : vector<2x128xf32>
    %373 = math.exp %372 : vector<2x128xf32>
    %cst_76 = arith.constant 1.000000e+00 : f32
    %374 = vector.broadcast %cst_76 : f32 to vector<2x128xf32>
    %375 = arith.addf %374, %373 : vector<2x128xf32>
    %376 = arith.divf %374, %375 : vector<2x128xf32>
    %377 = arith.mulf %368, %318 : vector<2x128xf32>
    %378 = arith.mulf %362, %370 : vector<2x128xf32>
    %379 = arith.addf %377, %378 : vector<2x128xf32>
    %380 = math.tanh %379 : vector<2x128xf32>
    %381 = arith.mulf %376, %380 : vector<2x128xf32>
    %c6_i32 = arith.constant 6 : i32
    %382 = arith.index_cast %c6_i32 : i32 to index
    %c0_77 = arith.constant 0 : index
    %c0_78 = arith.constant 0 : index
    %383 = vector.load %arg1[%382, %c0_77, %c0_78] : memref<8x2x512xf32, #tpu.memory_space<vmem>>, vector<1x2x512xf32>
    %384 = vector.shape_cast %383 : vector<1x2x512xf32> to vector<2x512xf32>
    %385 = arith.truncf %351 : vector<2x128xf32> to vector<2x128xbf16>
    %cst_79 = arith.constant dense<0.000000e+00> : vector<2x512xf32>
    %386 = tpu.matmul %385, %3, %cst_79 {dimension_numbers = #tpu.dot_dimension_numbers<[1], [0], [0], [1], [0, 0, 1, 1], [], []>} : vector<2x128xbf16>, vector<128x512xbf16>, vector<2x512xf32> -> vector<2x512xf32>
    %387 = arith.addf %384, %386 : vector<2x512xf32>
    %388 = vector.extract_strided_slice %387 {offsets = [0, 0], sizes = [2, 128], strides = [1, 1]} : vector<2x512xf32> to vector<2x128xf32>
    %389 = arith.negf %388 : vector<2x128xf32>
    %390 = math.exp %389 : vector<2x128xf32>
    %cst_80 = arith.constant 1.000000e+00 : f32
    %391 = vector.broadcast %cst_80 : f32 to vector<2x128xf32>
    %392 = arith.addf %391, %390 : vector<2x128xf32>
    %393 = arith.divf %391, %392 : vector<2x128xf32>
    %394 = vector.extract_strided_slice %387 {offsets = [0, 128], sizes = [2, 128], strides = [1, 1]} : vector<2x512xf32> to vector<2x128xf32>
    %395 = arith.negf %394 : vector<2x128xf32>
    %396 = math.exp %395 : vector<2x128xf32>
    %cst_81 = arith.constant 1.000000e+00 : f32
    %397 = vector.broadcast %cst_81 : f32 to vector<2x128xf32>
    %398 = arith.addf %397, %396 : vector<2x128xf32>
    %399 = arith.divf %397, %398 : vector<2x128xf32>
    %400 = vector.extract_strided_slice %387 {offsets = [0, 256], sizes = [2, 128], strides = [1, 1]} : vector<2x512xf32> to vector<2x128xf32>
    %401 = math.tanh %400 : vector<2x128xf32>
    %402 = vector.extract_strided_slice %387 {offsets = [0, 384], sizes = [2, 128], strides = [1, 1]} : vector<2x512xf32> to vector<2x128xf32>
    %403 = arith.negf %402 : vector<2x128xf32>
    %404 = math.exp %403 : vector<2x128xf32>
    %cst_82 = arith.constant 1.000000e+00 : f32
    %405 = vector.broadcast %cst_82 : f32 to vector<2x128xf32>
    %406 = arith.addf %405, %404 : vector<2x128xf32>
    %407 = arith.divf %405, %406 : vector<2x128xf32>
    %408 = arith.mulf %399, %349 : vector<2x128xf32>
    %409 = arith.mulf %393, %401 : vector<2x128xf32>
    %410 = arith.addf %408, %409 : vector<2x128xf32>
    %411 = math.tanh %410 : vector<2x128xf32>
    %412 = arith.mulf %407, %411 : vector<2x128xf32>
    %413 = arith.truncf %412 : vector<2x128xf32> to vector<2x128xbf16>
    %414 = arith.truncf %381 : vector<2x128xf32> to vector<2x128xbf16>
    %415 = tpu.concatenate %413, %414 in 1 : vector<2x128xbf16>, vector<2x128xbf16> -> vector<2x256xbf16>
    %cst_83 = arith.constant dense<0.000000e+00> : vector<2x512xf32>
    %416 = tpu.matmul %415, %4, %cst_83 {dimension_numbers = #tpu.dot_dimension_numbers<[1], [0], [0], [1], [0, 0, 1, 1], [], []>} : vector<2x256xbf16>, vector<256x512xbf16>, vector<2x512xf32> -> vector<2x512xf32>
    %417 = arith.addf %7, %416 : vector<2x512xf32>
    %418 = vector.extract_strided_slice %417 {offsets = [0, 0], sizes = [2, 128], strides = [1, 1]} : vector<2x512xf32> to vector<2x128xf32>
    %419 = arith.negf %418 : vector<2x128xf32>
    %420 = math.exp %419 : vector<2x128xf32>
    %cst_84 = arith.constant 1.000000e+00 : f32
    %421 = vector.broadcast %cst_84 : f32 to vector<2x128xf32>
    %422 = arith.addf %421, %420 : vector<2x128xf32>
    %423 = arith.divf %421, %422 : vector<2x128xf32>
    %424 = vector.extract_strided_slice %417 {offsets = [0, 128], sizes = [2, 128], strides = [1, 1]} : vector<2x512xf32> to vector<2x128xf32>
    %425 = arith.negf %424 : vector<2x128xf32>
    %426 = math.exp %425 : vector<2x128xf32>
    %cst_85 = arith.constant 1.000000e+00 : f32
    %427 = vector.broadcast %cst_85 : f32 to vector<2x128xf32>
    %428 = arith.addf %427, %426 : vector<2x128xf32>
    %429 = arith.divf %427, %428 : vector<2x128xf32>
    %430 = vector.extract_strided_slice %417 {offsets = [0, 256], sizes = [2, 128], strides = [1, 1]} : vector<2x512xf32> to vector<2x128xf32>
    %431 = math.tanh %430 : vector<2x128xf32>
    %432 = vector.extract_strided_slice %417 {offsets = [0, 384], sizes = [2, 128], strides = [1, 1]} : vector<2x512xf32> to vector<2x128xf32>
    %433 = arith.negf %432 : vector<2x128xf32>
    %434 = math.exp %433 : vector<2x128xf32>
    %cst_86 = arith.constant 1.000000e+00 : f32
    %435 = vector.broadcast %cst_86 : f32 to vector<2x128xf32>
    %436 = arith.addf %435, %434 : vector<2x128xf32>
    %437 = arith.divf %435, %436 : vector<2x128xf32>
    %438 = arith.mulf %429, %379 : vector<2x128xf32>
    %439 = arith.mulf %423, %431 : vector<2x128xf32>
    %440 = arith.addf %438, %439 : vector<2x128xf32>
    %441 = math.tanh %440 : vector<2x128xf32>
    %442 = arith.mulf %437, %441 : vector<2x128xf32>
    %c7_i32 = arith.constant 7 : i32
    %443 = arith.index_cast %c7_i32 : i32 to index
    %c0_87 = arith.constant 0 : index
    %c0_88 = arith.constant 0 : index
    %444 = vector.load %arg1[%443, %c0_87, %c0_88] : memref<8x2x512xf32, #tpu.memory_space<vmem>>, vector<1x2x512xf32>
    %445 = vector.shape_cast %444 : vector<1x2x512xf32> to vector<2x512xf32>
    %446 = arith.truncf %412 : vector<2x128xf32> to vector<2x128xbf16>
    %cst_89 = arith.constant dense<0.000000e+00> : vector<2x512xf32>
    %447 = tpu.matmul %446, %3, %cst_89 {dimension_numbers = #tpu.dot_dimension_numbers<[1], [0], [0], [1], [0, 0, 1, 1], [], []>} : vector<2x128xbf16>, vector<128x512xbf16>, vector<2x512xf32> -> vector<2x512xf32>
    %448 = arith.addf %445, %447 : vector<2x512xf32>
    %449 = vector.extract_strided_slice %448 {offsets = [0, 0], sizes = [2, 128], strides = [1, 1]} : vector<2x512xf32> to vector<2x128xf32>
    %450 = arith.negf %449 : vector<2x128xf32>
    %451 = math.exp %450 : vector<2x128xf32>
    %cst_90 = arith.constant 1.000000e+00 : f32
    %452 = vector.broadcast %cst_90 : f32 to vector<2x128xf32>
    %453 = arith.addf %452, %451 : vector<2x128xf32>
    %454 = arith.divf %452, %453 : vector<2x128xf32>
    %455 = vector.extract_strided_slice %448 {offsets = [0, 128], sizes = [2, 128], strides = [1, 1]} : vector<2x512xf32> to vector<2x128xf32>
    %456 = arith.negf %455 : vector<2x128xf32>
    %457 = math.exp %456 : vector<2x128xf32>
    %cst_91 = arith.constant 1.000000e+00 : f32
    %458 = vector.broadcast %cst_91 : f32 to vector<2x128xf32>
    %459 = arith.addf %458, %457 : vector<2x128xf32>
    %460 = arith.divf %458, %459 : vector<2x128xf32>
    %461 = vector.extract_strided_slice %448 {offsets = [0, 256], sizes = [2, 128], strides = [1, 1]} : vector<2x512xf32> to vector<2x128xf32>
    %462 = math.tanh %461 : vector<2x128xf32>
    %463 = vector.extract_strided_slice %448 {offsets = [0, 384], sizes = [2, 128], strides = [1, 1]} : vector<2x512xf32> to vector<2x128xf32>
    %464 = arith.negf %463 : vector<2x128xf32>
    %465 = math.exp %464 : vector<2x128xf32>
    %cst_92 = arith.constant 1.000000e+00 : f32
    %466 = vector.broadcast %cst_92 : f32 to vector<2x128xf32>
    %467 = arith.addf %466, %465 : vector<2x128xf32>
    %468 = arith.divf %466, %467 : vector<2x128xf32>
    %469 = arith.mulf %460, %410 : vector<2x128xf32>
    %470 = arith.mulf %454, %462 : vector<2x128xf32>
    %471 = arith.addf %469, %470 : vector<2x128xf32>
    %472 = math.tanh %471 : vector<2x128xf32>
    %473 = arith.mulf %468, %472 : vector<2x128xf32>
    %474 = arith.truncf %473 : vector<2x128xf32> to vector<2x128xbf16>
    %475 = arith.truncf %442 : vector<2x128xf32> to vector<2x128xbf16>
    %476 = tpu.concatenate %474, %475 in 1 : vector<2x128xbf16>, vector<2x128xbf16> -> vector<2x256xbf16>
    %cst_93 = arith.constant dense<0.000000e+00> : vector<2x512xf32>
    %477 = tpu.matmul %476, %4, %cst_93 {dimension_numbers = #tpu.dot_dimension_numbers<[1], [0], [0], [1], [0, 0, 1, 1], [], []>} : vector<2x256xbf16>, vector<256x512xbf16>, vector<2x512xf32> -> vector<2x512xf32>
    %478 = arith.addf %7, %477 : vector<2x512xf32>
    %479 = vector.extract_strided_slice %478 {offsets = [0, 0], sizes = [2, 128], strides = [1, 1]} : vector<2x512xf32> to vector<2x128xf32>
    %480 = arith.negf %479 : vector<2x128xf32>
    %481 = math.exp %480 : vector<2x128xf32>
    %cst_94 = arith.constant 1.000000e+00 : f32
    %482 = vector.broadcast %cst_94 : f32 to vector<2x128xf32>
    %483 = arith.addf %482, %481 : vector<2x128xf32>
    %484 = arith.divf %482, %483 : vector<2x128xf32>
    %485 = vector.extract_strided_slice %478 {offsets = [0, 128], sizes = [2, 128], strides = [1, 1]} : vector<2x512xf32> to vector<2x128xf32>
    %486 = arith.negf %485 : vector<2x128xf32>
    %487 = math.exp %486 : vector<2x128xf32>
    %cst_95 = arith.constant 1.000000e+00 : f32
    %488 = vector.broadcast %cst_95 : f32 to vector<2x128xf32>
    %489 = arith.addf %488, %487 : vector<2x128xf32>
    %490 = arith.divf %488, %489 : vector<2x128xf32>
    %491 = vector.extract_strided_slice %478 {offsets = [0, 256], sizes = [2, 128], strides = [1, 1]} : vector<2x512xf32> to vector<2x128xf32>
    %492 = math.tanh %491 : vector<2x128xf32>
    %493 = vector.extract_strided_slice %478 {offsets = [0, 384], sizes = [2, 128], strides = [1, 1]} : vector<2x512xf32> to vector<2x128xf32>
    %494 = arith.negf %493 : vector<2x128xf32>
    %495 = math.exp %494 : vector<2x128xf32>
    %cst_96 = arith.constant 1.000000e+00 : f32
    %496 = vector.broadcast %cst_96 : f32 to vector<2x128xf32>
    %497 = arith.addf %496, %495 : vector<2x128xf32>
    %498 = arith.divf %496, %497 : vector<2x128xf32>
    %499 = arith.mulf %490, %440 : vector<2x128xf32>
    %500 = arith.mulf %484, %492 : vector<2x128xf32>
    %501 = arith.addf %499, %500 : vector<2x128xf32>
    %502 = math.tanh %501 : vector<2x128xf32>
    %503 = arith.mulf %498, %502 : vector<2x128xf32>
    %c8_i32 = arith.constant 8 : i32
    %c0_97 = arith.constant 0 : index
    %c0_98 = arith.constant 0 : index
    %c0_99 = arith.constant 0 : index
    %504 = vector.load %arg6[%c0_97, %c0_98, %c0_99] : memref<2x2x128xf32, #tpu.memory_space<vmem>>, vector<1x2x128xf32>
    %505 = vector.shape_cast %504 : vector<1x2x128xf32> to vector<2x128xf32>
    %506 = vector.shape_cast %473 : vector<2x128xf32> to vector<1x2x128xf32>
    tpu.vector_store %arg6[%c0_97, %c0_98, %c0_99], %506 {strides = array<i32>} : memref<2x2x128xf32, #tpu.memory_space<vmem>>, vector<1x2x128xf32>,
    %c0_100 = arith.constant 0 : index
    %c0_101 = arith.constant 0 : index
    %c0_102 = arith.constant 0 : index
    %507 = vector.load %arg7[%c0_100, %c0_101, %c0_102] : memref<2x2x128xf32, #tpu.memory_space<vmem>>, vector<1x2x128xf32>
    %508 = vector.shape_cast %507 : vector<1x2x128xf32> to vector<2x128xf32>
    %509 = vector.shape_cast %471 : vector<2x128xf32> to vector<1x2x128xf32>
    tpu.vector_store %arg7[%c0_100, %c0_101, %c0_102], %509 {strides = array<i32>} : memref<2x2x128xf32, #tpu.memory_space<vmem>>, vector<1x2x128xf32>,
    %c1_103 = arith.constant 1 : index
    %c0_104 = arith.constant 0 : index
    %c0_105 = arith.constant 0 : index
    %510 = vector.load %arg6[%c1_103, %c0_104, %c0_105] : memref<2x2x128xf32, #tpu.memory_space<vmem>>, vector<1x2x128xf32>
    %511 = vector.shape_cast %510 : vector<1x2x128xf32> to vector<2x128xf32>
    %512 = vector.shape_cast %503 : vector<2x128xf32> to vector<1x2x128xf32>
    tpu.vector_store %arg6[%c1_103, %c0_104, %c0_105], %512 {strides = array<i32>} : memref<2x2x128xf32, #tpu.memory_space<vmem>>, vector<1x2x128xf32>,
    %c1_106 = arith.constant 1 : index
    %c0_107 = arith.constant 0 : index
    %c0_108 = arith.constant 0 : index
    %513 = vector.load %arg7[%c1_106, %c0_107, %c0_108] : memref<2x2x128xf32, #tpu.memory_space<vmem>>, vector<1x2x128xf32>
    %514 = vector.shape_cast %513 : vector<1x2x128xf32> to vector<2x128xf32>
    %515 = vector.shape_cast %501 : vector<2x128xf32> to vector<1x2x128xf32>
    tpu.vector_store %arg7[%c1_106, %c0_107, %c0_108], %515 {strides = array<i32>} : memref<2x2x128xf32, #tpu.memory_space<vmem>>, vector<1x2x128xf32>,
    %c0_109 = arith.constant 0 : index
    %c0_110 = arith.constant 0 : index
    %516 = vector.load %arg5[%c0_109, %c0_110] : memref<2x128xf32, #tpu.memory_space<vmem>>, vector<2x128xf32>
    tpu.vector_store %arg5[%c0_109, %c0_110], %503 {strides = array<i32>} : memref<2x128xf32, #tpu.memory_space<vmem>>, vector<2x128xf32>,
    return
  }
  func.func @transform_0(%arg0: i32) -> (i32, i32, i32) {
    %c0_i32 = arith.constant 0 : i32
    %c0_i32_0 = arith.constant 0 : i32
    %c0_i32_1 = arith.constant 0 : i32
    return %arg0, %c0_i32, %c0_i32_0 : i32, i32, i32
  }
  func.func @transform_1(%arg0: i32) -> (i32, i32) {
    %c0_i32 = arith.constant 0 : i32
    %c0_i32_0 = arith.constant 0 : i32
    %c0_i32_1 = arith.constant 0 : i32
    return %c0_i32, %c0_i32_0 : i32, i32
  }
  func.func @transform_2(%arg0: i32) -> (i32, i32) {
    %c0_i32 = arith.constant 0 : i32
    %c0_i32_0 = arith.constant 0 : i32
    %c0_i32_1 = arith.constant 0 : i32
    return %c0_i32, %c0_i32_0 : i32, i32
  }
  func.func @transform_3(%arg0: i32) -> (i32, i32) {
    %c0_i32 = arith.constant 0 : i32
    %c0_i32_0 = arith.constant 0 : i32
    %c0_i32_1 = arith.constant 0 : i32
    return %c0_i32, %c0_i32_0 : i32, i32
  }
  func.func @transform_4(%arg0: i32) -> (i32, i32) {
    %c0_i32 = arith.constant 0 : i32
    %c0_i32_0 = arith.constant 0 : i32
    %c0_i32_1 = arith.constant 0 : i32
    return %c0_i32, %c0_i32_0 : i32, i32
  }
}

</mosaic_0001>

<bundles_post_ra>
// kernel: tpu_custom_call.1
= control target key start
LH: loop header
LB: loop body
LE: loop exit
PB: predicated region body
PF: predicated region fallthrough
CT: control target
= control target key end

     0   :  { %9 = vsyncpa [#allocation5], 0  ;;  %s5058_s0 = inlined_call_operand.hbm [shape: f32[8,2,512], index: 0, kind: input, shape index: {}]   ;;  %s5059_s1 = inlined_call_operand.hbm [shape: bf16[128,512], index: 1, kind: input, shape index: {}]   ;;  %s5060_s2 = inlined_call_operand.hbm [shape: bf16[256,512], index: 2, kind: input, shape index: {}]   ;;  %s5061_s3 = inlined_call_operand.vmem [shape: f32[1,512], index: 3, kind: input, shape index: {}]   ;;  %s5062_s4 = inlined_call_operand.hbm [shape: f32[2,128], index: 4, kind: output, shape index: {}]  }
   0x1   :  { %10 = vsyncpa [#allocation8], 0 }
   0x2   :  { %11 = vsyncpa [#allocation6], 0  ;;  %s3526_s15 = smov [#allocation7]  }
   0x3   :  { %s29_s16 = sshll.u32 %s3526_s15, 4  ;;  %s30_s16 = int_to_ptr.vmem [resolvable:$true] %s29_s16 }
   0x4   :  { %s3448_s17 = scalar_lea.vmem %s30_s16, 4096  ;;  %p3453_p1 = scmp.lt.s32.totalorder %s30_s16, %s30_s16 }
   0x5   :  { %p3449_p0 = scmp.ne.s32.totalorder %s30_s16, %s3448_s17  ;;  %p3454_p2 = scmp.lt.s32.totalorder %s3448_s17, %s3448_s17 }
   0x7   :  { %p3455_p3 = por %p3454_p2, %p3453_p1 }
   0x9   :  { %p3456_p4 = pnand %p3455_p3, %p3449_p0 }
   0xb   :  { %3459 = shalt.err (!%p3456_p4)
}
   0xc   :  { %s3527_s18 = smov 256   ;;  %s3528_s19 = smov 16  }
   0xd   :  { %35 = dma.hbm_to_vmem [thread:$0]  %s5059_s1, 4096, %s30_s16, [#allocation8], %s3527_s18, %s3527_s18, %s3528_s19  }
   0xe   :  { %s3529_s22 = smov [#allocation4]  }
   0xf   :  { %s17_s23 = sshll.u32 %s3529_s22, 4  ;;  %s18_s23 = int_to_ptr.vmem [resolvable:$true] %s17_s23 }
  0x10   :  { %s3468_s24 = scalar_lea.vmem %s18_s23, 1024  ;;  %p3473_p6 = scmp.lt.s32.totalorder %s18_s23, %s18_s23 }
  0x11   :  { %p3469_p5 = scmp.ne.s32.totalorder %s18_s23, %s3468_s24  ;;  %p3474_p7 = scmp.lt.s32.totalorder %s3468_s24, %s3468_s24 }
  0x13   :  { %p3475_p8 = por %p3474_p7, %p3473_p6 }
  0x15   :  { %p3476_p9 = pnand %p3475_p8, %p3469_p5 }
  0x17   :  { %3479 = shalt.err (!%p3476_p9)
}
  0x18   :  { %s3530_s25 = smov 128   ;;  %s3531_s26 = smov 8  }
  0x19   :  { %23 = dma.hbm_to_vmem [thread:$0]  %s5058_s0, 1024, %s18_s23, [#allocation5], %s3530_s25, %s3530_s25, %s3531_s26  }
  0x1a   :  { %s3532_s29 = smov [#allocation9]  }
  0x1b   :  { %s41_s30 = sshll.u32 %s3532_s29, 4  ;;  %s42_s30 = int_to_ptr.vmem [resolvable:$true] %s41_s30 }
  0x1c   :  { %s3488_s1 = scalar_lea.vmem %s42_s30, 8192  ;;  %p3493_p11 = scmp.lt.s32.totalorder %s42_s30, %s42_s30 }
  0x1d   :  { %p3489_p10 = scmp.ne.s32.totalorder %s42_s30, %s3488_s1  ;;  %p3494_p12 = scmp.lt.s32.totalorder %s3488_s1, %s3488_s1 }
  0x1f   :  { %p3495_p13 = por %p3494_p12, %p3493_p11 }
  0x21   :  { %p3496_p0 = pnand %p3495_p13, %p3489_p10 }
  0x23   :  { %3499 = shalt.err (!%p3496_p0)
}
  0x24   :  { %47 = dma.hbm_to_vmem [thread:$0]  %s5060_s2, 8192, %s42_s30, [#allocation8], %s3527_s18, %s3527_s18, %s3528_s19  }
  0x25   :  { %3520 = dma.done.wait [#allocation5], 1024  }
  0x26   :  { %3521 = vsyncadd [#allocation5], 4294966272 }
  0x27   :  { %3522 = dma.done.wait [#allocation8], 12288  }
  0x28   :  { %3523 = vsyncadd [#allocation8], 4294955008  ;;  %v5063_v0 = vmov 0   ;;  %v3534_v1 = vmov 0.0   ;;  %v3573_v2 = vld [vmem:[#allocation7 + $0xe4] ss:$16 sps:$4 sm:$0xff]  }
  0x29   :  { %386 = vmatprep.mubr.bf16.mxu0 %v5063_v0  ;;  %427 = vmatprep.mubr.bf16.mxu1 %v5063_v0  ;;  %64 = vst [vmem:[#allocation2] sm:$0x3] %v3534_v1  ;;  %66 = vst [vmem:[#allocation3] sm:$0x3] %v3534_v1  ;;  %v3575_v3 = vld [vmem:[#allocation7 + $0xec] ss:$16 sps:$4 sm:$0xff]  }
  0x2a   :  { %67 = vst [vmem:[#allocation3 + $0x2] sm:$0x3] %v3534_v1  ;;  %65 = vst [vmem:[#allocation2 + $0x2] sm:$0x3] %v3534_v1  ;;  %354 = vmatprep.subr.bf16.mxu0 %v3573_v2  ;;  %v3578_v4 = vld [vmem:[#allocation7 + $0xe0] ss:$16 sps:$4 sm:$0xff]   ;;  %395 = vmatprep.subr.bf16.mxu1 %v3575_v3 }
  0x2b   :  { %5357 = vst [vmem:[#allocation14_spill] sm:$0xff] %v3573_v2  ;;  %5358 = vst [vmem:[#allocation15_spill] sm:$0xff] %v3575_v3  ;;  %v3580_v5 = vld [vmem:[#allocation7 + $0xe8] ss:$16 sps:$4 sm:$0xff]   ;;  %v3583_v6 = vld [vmem:[#allocation7 + $0xc4] ss:$16 sps:$4 sm:$0xff]   ;;  %355 = vmatpush1.bf16.msra.mxu0 %v3578_v4 }
  0x2c   :  { %396 = vmatpush1.bf16.msra.mxu1 %v3580_v5  ;;  %v3587_v7 = vld [vmem:[#allocation7 + $0xcc] ss:$16 sps:$4 sm:$0xff]   ;;  %v3589_v8 = vld [vmem:[#allocation7 + $0xc0] ss:$16 sps:$4 sm:$0xff]   ;;  %356 = vmatprep.subr.bf16.mxu0 %v3583_v6  ;;  %v3592_v9 = vld [vmem:[#allocation7 + $0xc8] ss:$16 sps:$4 sm:$0xff]  }
  0x2d   :  { %397 = vmatprep.subr.bf16.mxu1 %v3587_v7  ;;  %v3595_v10 = vld [vmem:[#allocation7 + $0xa4] ss:$16 sps:$4 sm:$0xff]   ;;  %v3597_v11 = vld [vmem:[#allocation7 + $0xac] ss:$16 sps:$4 sm:$0xff]   ;;  %v3599_v12 = vld [vmem:[#allocation7 + $0xa0] ss:$16 sps:$4 sm:$0xff]  }
  0x2e   :  { %v3601_v13 = vld [vmem:[#allocation7 + $0xa8] ss:$16 sps:$4 sm:$0xff]   ;;  %v3605_v14 = vld [vmem:[#allocation7 + $0x84] ss:$16 sps:$4 sm:$0xff]   ;;  %v3609_v15 = vld [vmem:[#allocation7 + $0x8c] ss:$16 sps:$4 sm:$0xff]  }
  0x2f   :  { %357 = vmatpush1.bf16.msra.mxu0 %v3589_v8  ;;  %v3611_v16 = vld [vmem:[#allocation7 + $0x80] ss:$16 sps:$4 sm:$0xff]   ;;  %v3615_v17 = vld [vmem:[#allocation7 + $0x88] ss:$16 sps:$4 sm:$0xff]   ;;  %v3617_v18 = vld [vmem:[#allocation7 + $0x64] ss:$16 sps:$4 sm:$0xff]  }
  0x30   :  { %398 = vmatpush1.bf16.msra.mxu1 %v3592_v9  ;;  %358 = vmatprep.subr.bf16.mxu0 %v3595_v10  ;;  %v3621_v19 = vld [vmem:[#allocation7 + $0x6c] ss:$16 sps:$4 sm:$0xff]   ;;  %v3623_v20 = vld [vmem:[#allocation7 + $0x60] ss:$16 sps:$4 sm:$0xff]   ;;  %v3625_v21 = vld [vmem:[#allocation7 + $0x68] ss:$16 sps:$4 sm:$0xff]  }
  0x31   :  { %399 = vmatprep.subr.bf16.mxu1 %v3597_v11  ;;  %v3629_v22 = vld [vmem:[#allocation7 + $0x44] ss:$16 sps:$4 sm:$0xff]   ;;  %v3633_v23 = vld [vmem:[#allocation7 + $0x4c] ss:$16 sps:$4 sm:$0xff]   ;;  %v3637_v24 = vld [vmem:[#allocation7 + $0x40] ss:$16 sps:$4 sm:$0xff]  }
  0x32   :  { %v3639_v25 = vld [vmem:[#allocation7 + $0x48] ss:$16 sps:$4 sm:$0xff]   ;;  %v3643_v26 = vld [vmem:[#allocation7 + $0x24] ss:$16 sps:$4 sm:$0xff]   ;;  %v3645_v27 = vld [vmem:[#allocation7 + $0x2c] ss:$16 sps:$4 sm:$0xff]  }
  0x33   :  { %359 = vmatpush1.bf16.msra.mxu0 %v3599_v12  ;;  %v3647_v28 = vld [vmem:[#allocation7 + $0x20] ss:$16 sps:$4 sm:$0xff]   ;;  %v3649_v29 = vld [vmem:[#allocation7 + $0x28] ss:$16 sps:$4 sm:$0xff]   ;;  %v3651_v30 = vld [vmem:[#allocation7 + $0x4] ss:$16 sps:$4 sm:$0xff]  }
  0x34   :  { %400 = vmatpush1.bf16.msra.mxu1 %v3601_v13  ;;  %360 = vmatprep.subr.bf16.mxu0 %v3605_v14  ;;  %v3653_v31 = vld [vmem:[#allocation7 + $0xc] ss:$16 sps:$4 sm:$0xff]   ;;  %v3659_v32 = vld [vmem:[#allocation7] ss:$16 sps:$4 sm:$0xff]   ;;  %v3661_v33 = vld [vmem:[#allocation7 + $0x8] ss:$16 sps:$4 sm:$0xff]  }
  0x35   :  { %401 = vmatprep.subr.bf16.mxu1 %v3609_v15  ;;  %v186_v34 = vld [vmem:[#allocation2] sm:$0x3]  ;;  %v3669_v36 = vld [vmem:[#allocation9 + $0xe4] ss:$16 sps:$4 sm:$0xff]   ;;  %v3671_v37 = vld [vmem:[#allocation9 + $0xec] ss:$16 sps:$4 sm:$0xff]  }
  0x36   :  { %v193_v35 = vpack.c.bf16 %v186_v34, %v186_v34  ;;  %v3673_v38 = vld [vmem:[#allocation9 + $0xe0] ss:$16 sps:$4 sm:$0xff]   ;;  %v3675_v39 = vld [vmem:[#allocation9 + $0xe8] ss:$16 sps:$4 sm:$0xff]   ;;  %v3681_v40 = vld [vmem:[#allocation9 + $0xc4] ss:$16 sps:$4 sm:$0xff]  }
  0x37   :  { %361 = vmatpush1.bf16.msra.mxu0 %v3611_v16  ;;  %v3683_v41 = vld [vmem:[#allocation9 + $0xcc] ss:$16 sps:$4 sm:$0xff]   ;;  %v3685_v42 = vld [vmem:[#allocation9 + $0xc0] ss:$16 sps:$4 sm:$0xff]   ;;  %v3687_v43 = vld [vmem:[#allocation9 + $0xc8] ss:$16 sps:$4 sm:$0xff]  }
  0x38   :  { %402 = vmatpush1.bf16.msra.mxu1 %v3615_v17  ;;  %362 = vmatprep.subr.bf16.mxu0 %v3617_v18  ;;  %v3693_v44 = vld [vmem:[#allocation9 + $0xa4] ss:$16 sps:$4 sm:$0xff]   ;;  %v3695_v45 = vld [vmem:[#allocation9 + $0xac] ss:$16 sps:$4 sm:$0xff]   ;;  %v3697_v46 = vld [vmem:[#allocation9 + $0xa0] ss:$16 sps:$4 sm:$0xff]  }
  0x39   :  { %403 = vmatprep.subr.bf16.mxu1 %v3621_v19  ;;  %v3699_v47 = vld [vmem:[#allocation9 + $0xa8] ss:$16 sps:$4 sm:$0xff]   ;;  %v3705_v48 = vld [vmem:[#allocation9 + $0x84] ss:$16 sps:$4 sm:$0xff]   ;;  %v3707_v49 = vld [vmem:[#allocation9 + $0x8c] ss:$16 sps:$4 sm:$0xff]  }
  0x3a   :  { %5359 = vst [vmem:[#allocation16_spill] sm:$0xff] %v3707_v49  ;;  %v3709_v50 = vld [vmem:[#allocation9 + $0x80] ss:$16 sps:$4 sm:$0xff]   ;;  %v3711_v51 = vld [vmem:[#allocation9 + $0x88] ss:$16 sps:$4 sm:$0xff]  }
  0x3b   :  { %363 = vmatpush1.bf16.msra.mxu0 %v3623_v20  ;;  %5360 = vst [vmem:[#allocation17_spill] sm:$0xff] %v3709_v50  ;;  %5361 = vst [vmem:[#allocation18_spill] sm:$0xff] %v3711_v51  ;;  %v3717_v52 = vld [vmem:[#allocation9 + $0x64] ss:$16 sps:$4 sm:$0xff]   ;;  %v3719_v53 = vld [vmem:[#allocation9 + $0x6c] ss:$16 sps:$4 sm:$0xff]  }
  0x3c   :  { %404 = vmatpush1.bf16.msra.mxu1 %v3625_v21  ;;  %364 = vmatprep.subr.bf16.mxu0 %v3629_v22  ;;  %5362 = vst [vmem:[#allocation19_spill] sm:$0xff] %v3717_v52  ;;  %5363 = vst [vmem:[#allocation20_spill] sm:$0xff] %v3719_v53  ;;  %v3721_v54 = vld [vmem:[#allocation9 + $0x60] ss:$16 sps:$4 sm:$0xff]   ;;  %v3723_v55 = vld [vmem:[#allocation9 + $0x68] ss:$16 sps:$4 sm:$0xff]  }
  0x3d   :  { %405 = vmatprep.subr.bf16.mxu1 %v3633_v23  ;;  %5364 = vst [vmem:[#allocation21_spill] sm:$0xff] %v3721_v54  ;;  %5365 = vst [vmem:[#allocation22_spill] sm:$0xff] %v3723_v55  ;;  %v3729_v56 = vld [vmem:[#allocation9 + $0x44] ss:$16 sps:$4 sm:$0xff]   ;;  %v3731_v57 = vld [vmem:[#allocation9 + $0x4c] ss:$16 sps:$4 sm:$0xff]  }
  0x3e   :  { %5366 = vst [vmem:[#allocation23_spill] sm:$0xff] %v3729_v56  ;;  %5367 = vst [vmem:[#allocation24_spill] sm:$0xff] %v3731_v57  ;;  %v3733_v58 = vld [vmem:[#allocation9 + $0x40] ss:$16 sps:$4 sm:$0xff]   ;;  %v3735_v59 = vld [vmem:[#allocation9 + $0x48] ss:$16 sps:$4 sm:$0xff]  }
  0x3f   :  { %365 = vmatpush1.bf16.msra.mxu0 %v3637_v24  ;;  %5368 = vst [vmem:[#allocation25_spill] sm:$0xff] %v3733_v58  ;;  %5369 = vst [vmem:[#allocation26_spill] sm:$0xff] %v3735_v59  ;;  %v3741_v60 = vld [vmem:[#allocation9 + $0x24] ss:$16 sps:$4 sm:$0xff]   ;;  %v3743_v61 = vld [vmem:[#allocation9 + $0x2c] ss:$16 sps:$4 sm:$0xff]  }
  0x40   :  { %406 = vmatpush1.bf16.msra.mxu1 %v3639_v25  ;;  %366 = vmatprep.subr.bf16.mxu0 %v3643_v26  ;;  %5370 = vst [vmem:[#allocation27_spill] sm:$0xff] %v3741_v60  ;;  %5371 = vst [vmem:[#allocation28_spill] sm:$0xff] %v3743_v61  ;;  %v3745_v62 = vld [vmem:[#allocation9 + $0x20] ss:$16 sps:$4 sm:$0xff]   ;;  %v3747_v63 = vld [vmem:[#allocation9 + $0x28] ss:$16 sps:$4 sm:$0xff]  }
  0x41   :  { %407 = vmatprep.subr.bf16.mxu1 %v3645_v27  ;;  %5372 = vst [vmem:[#allocation29_spill] sm:$0xff] %v3745_v62  ;;  %5373 = vst [vmem:[#allocation30_spill] sm:$0xff] %v3747_v63  ;;  %v3753_v1 = vld [vmem:[#allocation9 + $0x4] ss:$16 sps:$4 sm:$0xff]   ;;  %v3755_v34 = vld [vmem:[#allocation9 + $0xc] ss:$16 sps:$4 sm:$0xff]  }
  0x42   :  { %5374 = vst [vmem:[#allocation31_spill] sm:$0xff] %v3753_v1  ;;  %5375 = vst [vmem:[#allocation32_spill] sm:$0xff] %v3755_v34  ;;  %v3759_v0 = vld [vmem:[#allocation9 + $0x8] ss:$16 sps:$4 sm:$0xff]  }
  0x43   :  { %367 = vmatpush1.bf16.msra.mxu0 %v3647_v28  ;;  %5377 = vst [vmem:[#allocation34_spill] sm:$0xff] %v3759_v0 }
  0x44   :  { %408 = vmatpush1.bf16.msra.mxu1 %v3649_v29  ;;  %368 = vmatprep.subr.bf16.mxu0 %v3651_v30 }
  0x45   :  { %409 = vmatprep.subr.bf16.mxu1 %v3653_v31 }
  0x47   :  { %369 = vmatpush1.bf16.msra.mxu0 %v3659_v32 }
  0x48   :  { %410 = vmatpush1.bf16.msra.mxu1 %v3661_v33  ;;  %812 = vmatprep.subr.bf16.mxu0 %v3669_v36 }
  0x49   :  { %853 = vmatprep.subr.bf16.mxu1 %v3671_v37 }
  0x4a   :  { %387 = vmatmul.mubr.bf16.vlgmr.msra.gmra.mxu0 %v193_v35 }
  0x4b   :  { %428 = vmatmul.mubr.bf16.vlgmr.msra.gmra.mxu1 %v193_v35  ;;  %813 = vmatpush1.bf16.msra.mxu0 %v3673_v38  ;;  %v3757_v35 = vld [vmem:[#allocation9] ss:$16 sps:$4 sm:$0xff]  }
  0x4c   :  { %854 = vmatpush1.bf16.msra.mxu1 %v3675_v39  ;;  %814 = vmatprep.subr.bf16.mxu0 %v3681_v40  ;;  %5376 = vst [vmem:[#allocation33_spill] sm:$0xff] %v3757_v35 }
  0x4d   :  { %855 = vmatprep.subr.bf16.mxu1 %v3683_v41 }
  0x4f   :  { %815 = vmatpush1.bf16.msra.mxu0 %v3685_v42 }
  0x50   :  { %856 = vmatpush1.bf16.msra.mxu1 %v3687_v43  ;;  %816 = vmatprep.subr.bf16.mxu0 %v3693_v44 }
  0x51   :  { %857 = vmatprep.subr.bf16.mxu1 %v3695_v45 }
  0x53   :  { %817 = vmatpush1.bf16.msra.mxu0 %v3697_v46 }
  0x54   :  { %858 = vmatpush1.bf16.msra.mxu1 %v3699_v47  ;;  %818 = vmatprep.subr.bf16.mxu0 %v3705_v48 }
  0x55   :  { %859 = vmatprep.subr.bf16.mxu1 %v3707_v49 }
  0x57   :  { %819 = vmatpush1.bf16.msra.mxu0 %v3709_v50 }
  0x58   :  { %860 = vmatpush1.bf16.msra.mxu1 %v3711_v51  ;;  %820 = vmatprep.subr.bf16.mxu0 %v3717_v52 }
  0x59   :  { %861 = vmatprep.subr.bf16.mxu1 %v3719_v53  ;;  %v192_v53 = vld [vmem:[#allocation4] sm:$0xff] }
  0x5b   :  { %821 = vmatpush1.bf16.msra.mxu0 %v3721_v54 }
  0x5c   :  { %862 = vmatpush1.bf16.msra.mxu1 %v3723_v55  ;;  %822 = vmatprep.subr.bf16.mxu0 %v3729_v56 }
  0x5d   :  { %863 = vmatprep.subr.bf16.mxu1 %v3731_v57 }
  0x5f   :  { %823 = vmatpush1.bf16.msra.mxu0 %v3733_v58  ;;  %v3775_v58 = vld [vmem:[#allocation9 + $0x1cc] ss:$16 sps:$4 sm:$0xff]  }
  0x60   :  { %864 = vmatpush1.bf16.msra.mxu1 %v3735_v59  ;;  %824 = vmatprep.subr.bf16.mxu0 %v3741_v60  ;;  %v3771_v60 = vld [vmem:[#allocation9 + $0x1e8] ss:$16 sps:$4 sm:$0xff]   ;;  %v3773_v59 = vld [vmem:[#allocation9 + $0x1c4] ss:$16 sps:$4 sm:$0xff]   ;;  %5383 = vst [vmem:[#allocation40_spill] sm:$0xff] %v3775_v58 }
  0x61   :  { %865 = vmatprep.subr.bf16.mxu1 %v3743_v61  ;;  %v3765_v61 = vld [vmem:[#allocation9 + $0x1e4] ss:$16 sps:$4 sm:$0xff]   ;;  %5381 = vst [vmem:[#allocation38_spill] sm:$0xff] %v3771_v60  ;;  %5382 = vst [vmem:[#allocation39_spill] sm:$0xff] %v3773_v59 }
  0x62   :  { %5378 = vst [vmem:[#allocation35_spill] sm:$0xff] %v3765_v61 }
  0x63   :  { %825 = vmatpush1.bf16.msra.mxu0 %v3745_v62  ;;  %v3767_v62 = vld [vmem:[#allocation9 + $0x1ec] ss:$16 sps:$4 sm:$0xff]  }
  0x64   :  { %866 = vmatpush1.bf16.msra.mxu1 %v3747_v63  ;;  %826 = vmatprep.subr.bf16.mxu0 %v3753_v1  ;;  %5379 = vst [vmem:[#allocation36_spill] sm:$0xff] %v3767_v62  ;;  %v3769_v63 = vld [vmem:[#allocation9 + $0x1e0] ss:$16 sps:$4 sm:$0xff]   ;;  %v3789_v1 = vld [vmem:[#allocation9 + $0x1ac] ss:$16 sps:$4 sm:$0xff]  }
  0x65   :  { %867 = vmatprep.subr.bf16.mxu1 %v3755_v34  ;;  %5380 = vst [vmem:[#allocation37_spill] sm:$0xff] %v3769_v63  ;;  %v3787_v34 = vld [vmem:[#allocation9 + $0x1a4] ss:$16 sps:$4 sm:$0xff]   ;;  %5387 = vst [vmem:[#allocation44_spill] sm:$0xff] %v3789_v1 }
  0x66   :  { %5386 = vst [vmem:[#allocation43_spill] sm:$0xff] %v3787_v34 }
  0x67   :  { %827 = vmatpush1.bf16.msra.mxu0 %v3757_v35  ;;  %v3783_v35 = vld [vmem:[#allocation9 + $0x1c8] ss:$16 sps:$4 sm:$0xff]  }
  0x68   :  { %868 = vmatpush1.bf16.msra.mxu1 %v3759_v0  ;;  %828 = vmatprep.subr.bf16.mxu0 %v3765_v61  ;;  %v3781_v0 = vld [vmem:[#allocation9 + $0x1c0] ss:$16 sps:$4 sm:$0xff]   ;;  %5385 = vst [vmem:[#allocation42_spill] sm:$0xff] %v3783_v35 }
  0x69   :  { %869 = vmatprep.subr.bf16.mxu1 %v3767_v62  ;;  %5384 = vst [vmem:[#allocation41_spill] sm:$0xff] %v3781_v0  ;;  %v3793_v62 = vld [vmem:[#allocation9 + $0x1a0] ss:$16 sps:$4 sm:$0xff]  }
  0x6a   :  { %5388 = vst [vmem:[#allocation45_spill] sm:$0xff] %v3793_v62 }
  0x6b   :  { %829 = vmatpush2.bf16.msra.mxu0 %v3769_v63  ;;  %v3795_v63 = vld [vmem:[#allocation9 + $0x1a8] ss:$16 sps:$4 sm:$0xff]  }
  0x6c   :  { %870 = vmatpush2.bf16.msra.mxu1 %v3771_v60  ;;  %830 = vmatprep.subr.bf16.mxu0 %v3773_v59  ;;  %5389 = vst [vmem:[#allocation46_spill] sm:$0xff] %v3795_v63  ;;  %v3799_v60 = vld [vmem:[#allocation9 + $0x184] ss:$16 sps:$4 sm:$0xff]   ;;  %v3801_v59 = vld [vmem:[#allocation9 + $0x18c] ss:$16 sps:$4 sm:$0xff]  }
  0x6d   :  { %871 = vmatprep.subr.bf16.mxu1 %v3775_v58  ;;  %5390 = vst [vmem:[#allocation47_spill] sm:$0xff] %v3799_v60  ;;  %5391 = vst [vmem:[#allocation48_spill] sm:$0xff] %v3801_v59  ;;  %v188_v58 = vld [vmem:[#allocation2 + $0x2] sm:$0x3] }
  0x6e   :  { %v491_v61 = vpack.c.bf16 %v188_v58, %v188_v58  ;;  %v3817_v58 = vld [vmem:[#allocation9 + $0x160] ss:$16 sps:$4 sm:$0xff]  }
  0x6f   :  { %831 = vmatpush2.bf16.msra.mxu0 %v3781_v0  ;;  %v3805_v0 = vld [vmem:[#allocation9 + $0x180] ss:$16 sps:$4 sm:$0xff]   ;;  %5396 = vst [vmem:[#allocation53_spill] sm:$0xff] %v3817_v58 }
  0x70   :  { %872 = vmatpush2.bf16.msra.mxu1 %v3783_v35  ;;  %832 = vmatprep.subr.bf16.mxu0 %v3787_v34  ;;  %5392 = vst [vmem:[#allocation49_spill] sm:$0xff] %v3805_v0  ;;  %v3807_v35 = vld [vmem:[#allocation9 + $0x188] ss:$16 sps:$4 sm:$0xff]   ;;  %v3811_v34 = vld [vmem:[#allocation9 + $0x164] ss:$16 sps:$4 sm:$0xff]  }
  0x71   :  { %873 = vmatprep.subr.bf16.mxu1 %v3789_v1  ;;  %5393 = vst [vmem:[#allocation50_spill] sm:$0xff] %v3807_v35  ;;  %5394 = vst [vmem:[#allocation51_spill] sm:$0xff] %v3811_v34  ;;  %v3813_v1 = vld [vmem:[#allocation9 + $0x16c] ss:$16 sps:$4 sm:$0xff]   ;;  %844 = vmatprep.mubr.bf16.mxu0 %v491_v61 }
  0x72   :  { %5395 = vst [vmem:[#allocation52_spill] sm:$0xff] %v3813_v1  ;;  %885 = vmatprep.mubr.bf16.mxu1 %v491_v61  ;;  %v3829_v61 = vld [vmem:[#allocation9 + $0x140] ss:$16 sps:$4 sm:$0xff]  }
  0x73   :  { %833 = vmatpush2.bf16.msra.mxu0 %v3793_v62  ;;  %5400 = vst [vmem:[#allocation57_spill] sm:$0xff] %v3829_v61 }
  0x74   :  { %874 = vmatpush2.bf16.msra.mxu1 %v3795_v63  ;;  %834 = vmatprep.subr.bf16.mxu0 %v3799_v60  ;;  %v3819_v63 = vld [vmem:[#allocation9 + $0x168] ss:$16 sps:$4 sm:$0xff]   ;;  %v3823_v60 = vld [vmem:[#allocation9 + $0x144] ss:$16 sps:$4 sm:$0xff]  }
  0x75   :  { %875 = vmatprep.subr.bf16.mxu1 %v3801_v59  ;;  %5397 = vst [vmem:[#allocation54_spill] sm:$0xff] %v3819_v63  ;;  %5398 = vst [vmem:[#allocation55_spill] sm:$0xff] %v3823_v60  ;;  %v3825_v59 = vld [vmem:[#allocation9 + $0x14c] ss:$16 sps:$4 sm:$0xff]  }
  0x76   :  { %5399 = vst [vmem:[#allocation56_spill] sm:$0xff] %v3825_v59 }
  0x77   :  { %835 = vmatpush2.bf16.msra.mxu0 %v3805_v0  ;;  %v3831_v0 = vld [vmem:[#allocation9 + $0x148] ss:$16 sps:$4 sm:$0xff]  }
  0x78   :  { %876 = vmatpush2.bf16.msra.mxu1 %v3807_v35  ;;  %836 = vmatprep.subr.bf16.mxu0 %v3811_v34  ;;  %5401 = vst [vmem:[#allocation58_spill] sm:$0xff] %v3831_v0  ;;  %v3835_v35 = vld [vmem:[#allocation9 + $0x124] ss:$16 sps:$4 sm:$0xff]   ;;  %v3837_v34 = vld [vmem:[#allocation9 + $0x12c] ss:$16 sps:$4 sm:$0xff]  }
  0x79   :  { %877 = vmatprep.subr.bf16.mxu1 %v3813_v1  ;;  %5402 = vst [vmem:[#allocation59_spill] sm:$0xff] %v3835_v35  ;;  %5403 = vst [vmem:[#allocation60_spill] sm:$0xff] %v3837_v34  ;;  %v3841_v1 = vld [vmem:[#allocation9 + $0x120] ss:$16 sps:$4 sm:$0xff]  }
  0x7a   :  { %5404 = vst [vmem:[#allocation61_spill] sm:$0xff] %v3841_v1 }
  0x7b   :  { %837 = vmatpush2.bf16.msra.mxu0 %v3817_v58  ;;  %v3843_v58 = vld [vmem:[#allocation9 + $0x128] ss:$16 sps:$4 sm:$0xff]  }
  0x7c   :  { %878 = vmatpush2.bf16.msra.mxu1 %v3819_v63  ;;  %838 = vmatprep.subr.bf16.mxu0 %v3823_v60  ;;  %5405 = vst [vmem:[#allocation62_spill] sm:$0xff] %v3843_v58  ;;  %v3847_v63 = vld [vmem:[#allocation9 + $0x104] ss:$16 sps:$4 sm:$0xff]   ;;  %v3849_v60 = vld [vmem:[#allocation9 + $0x10c] ss:$16 sps:$4 sm:$0xff]  }
  0x7d   :  { %879 = vmatprep.subr.bf16.mxu1 %v3825_v59  ;;  %5406 = vst [vmem:[#allocation63_spill] sm:$0xff] %v3847_v63  ;;  %5407 = vst [vmem:[#allocation64_spill] sm:$0xff] %v3849_v60  ;;  %v3853_v59 = vld [vmem:[#allocation9 + $0x100] ss:$16 sps:$4 sm:$0xff]  }
  0x7e   :  { %5408 = vst [vmem:[#allocation65_spill] sm:$0xff] %v3853_v59 }
  0x7f   :  { %839 = vmatpush2.bf16.msra.mxu0 %v3829_v61  ;;  %v3855_v61 = vld [vmem:[#allocation9 + $0x108] ss:$16 sps:$4 sm:$0xff]  }
  0x80   :  { %880 = vmatpush2.bf16.msra.mxu1 %v3831_v0  ;;  %840 = vmatprep.subr.bf16.mxu0 %v3835_v35  ;;  %5409 = vst [vmem:[#allocation66_spill] sm:$0xff] %v3855_v61 }
  0x81   :  { %881 = vmatprep.subr.bf16.mxu1 %v3837_v34  ;;  %v166_v34 = vlaneseq }
  0x83   :  { %841 = vmatpush2.bf16.msra.mxu0 %v3841_v1  ;;  %v3535_v1 = vmov 1983009808  }
  0x84   :  { %882 = vmatpush2.bf16.msra.mxu1 %v3843_v58  ;;  %842 = vmatprep.subr.bf16.mxu0 %v3847_v63  ;;  %v443_v35 = vunpack.c.l.s4 %v3535_v1  ;;  %v3863_v58 = vshrl.u32 %v166_v34, 7 }
  0x85   :  { %883 = vmatprep.subr.bf16.mxu1 %v3849_v60 }
  0x86   :  { %5410 = vst [vmem:[#allocation67_spill] sm:$0xff] %v3863_v58  ;;  %v444_v0 = vunpack.c.0.s8 %v443_v35 }
  0x87   :  { %843 = vmatpush2.bf16.msra.mxu0 %v3853_v59 }
  0x88   :  { %884 = vmatpush2.bf16.msra.mxu1 %v3855_v61  ;;  %924 = vmatprep.subr.bf16.mxu0 %v3573_v2  ;;  %v3866_v63 = vsub.s32 %v444_v0, %v3863_v58 }
  0x89   :  { %965 = vmatprep.subr.bf16.mxu1 %v3575_v3 }
 0x10a   :  { %v388_v62 = vpop.f32.mrf.mxu0 }
 0x10b   :  { %v429_v57 = vpop.f32.mrf.mxu1 }
 0x10c   :  { %v390_v60 = vpop.f32.mrf.mxu0 }
 0x10d   :  { %v431_v56 = vpop.f32.mrf.mxu1  ;;  %v440_v59 = vcombine.low %v388_v62, %v390_v60 }
 0x10e   :  { %v441_v55 = vcombine.low %v429_v57, %v431_v56  ;;  %v392_v61 = vpop.f32.mrf.mxu0 }
 0x10f   :  { %v433_v54 = vpop.f32.mrf.mxu1  ;;  %v448_v2 = vrot.slane %v440_v59, %v3866_v63 }
 0x110   :  { %v455_v3 = vrot.slane %v441_v55, %v3866_v63  ;;  %v393_v1 = vpop.f32.mrf.mxu0 }
 0x111   :  { %v434_v34 = vpop.f32.mrf.mxu1 }
 0x112   :  { %v456_v52 = vcombine.low %v448_v2, %v455_v3  ;;  %v189_v2 = vld [vmem:[#allocation3] sm:$0x3] }
 0x114   :  { %v458_v35 = vadd.f32 %v456_v52, %v192_v53 }
 0x116   :  { %v2725_v51 = vmul.f32 -1.442695, %v458_v35  ;;  %v466_v50 = vrot.slane %v458_v35, 2  ;;  %v477_v58 = vrot.slane %v458_v35, 6  ;;  %v474_v56 = vrot.slane %v458_v35, 4 }
 0x117   :  { %v5411_v35 = vmov 0  }
 0x118   :  { %2992 = vpow2.f32 %v2725_v51  ;;  %v2726_v0 = vmul.f32 -1.442695, %v466_v50  ;;  %v2727_v49 = vmul.f32 -1.442695, %v477_v58 }
 0x11a   :  { %2994 = vpow2.f32 %v2726_v0  ;;  %v5430_v0 = vld [vmem:[#allocation34_spill] sm:$0xff] }
 0x11b   :  { %2996 = vpow2.f32 %v2727_v49 }
 0x125   :  { %v2993_v60 = vpop.eup %2992 }
 0x126   :  { %v462_v57 = vadd.f32 1.0, %v2993_v60  ;;  %v5431_v60 = vld [vmem:[#allocation35_spill] sm:$0xff] }
 0x127   :  { %v2995_v54 = vpop.eup %2994 }
 0x128   :  { %2998 = vrcp.f32 %v462_v57  ;;  %v471_v59 = vadd.f32 1.0, %v2995_v54  ;;  %v2997_v55 = vpop.eup %2996  ;;  %v5433_v57 = vld [vmem:[#allocation37_spill] sm:$0xff]  ;;  %v5434_v54 = vld [vmem:[#allocation38_spill] sm:$0xff] }
 0x129   :  { %3000 = vtanh.f32 %v474_v56  ;;  %v482_v53 = vadd.f32 1.0, %v2997_v55  ;;  %v5432_v56 = vld [vmem:[#allocation36_spill] sm:$0xff] }
 0x12a   :  { %3002 = vrcp.f32 %v471_v59  ;;  %v5435_v59 = vld [vmem:[#allocation39_spill] sm:$0xff]  ;;  %v5436_v55 = vld [vmem:[#allocation40_spill] sm:$0xff] }
 0x12b   :  { %3004 = vrcp.f32 %v482_v53  ;;  %v5441_v53 = vld [vmem:[#allocation45_spill] sm:$0xff] }
 0x135   :  { %v2999_v62 = vpop.eup %2998 }
 0x136   :  { %v3001_v3 = vpop.eup %3000 }
 0x137   :  { %v3003_v52 = vpop.eup %3002  ;;  %v486_v50 = vmul.f32 %v3001_v3, %v2999_v62  ;;  %v5437_v62 = vld [vmem:[#allocation41_spill] sm:$0xff]  ;;  %v5439_v3 = vld [vmem:[#allocation43_spill] sm:$0xff] }
 0x138   :  { %v485_v51 = vmul.f32 %v3003_v52, %v189_v2  ;;  %v3005_v58 = vpop.eup %3004  ;;  %v5438_v2 = vld [vmem:[#allocation42_spill] sm:$0xff]  ;;  %v5440_v52 = vld [vmem:[#allocation44_spill] sm:$0xff] }
 0x13a   :  { %v3870_v61 = vadd.f32 %v486_v50, %v485_v51  ;;  %v5442_v51 = vld [vmem:[#allocation46_spill] sm:$0xff]  ;;  %v5443_v50 = vld [vmem:[#allocation47_spill] sm:$0xff] }
 0x13c   :  { %3006 = vtanh.f32 %v3870_v61 }
 0x149   :  { %v3007_v1 = vpop.eup %3006 }
 0x14a   :  { %v489_v49 = vmul.f32 %v3007_v1, %v3005_v58  ;;  %v5444_v58 = vld [vmem:[#allocation48_spill] sm:$0xff]  ;;  %v5445_v1 = vld [vmem:[#allocation49_spill] sm:$0xff] }
 0x14c   :  { %v490_v34 = vpack.c.bf16 %v489_v49, %v489_v49  ;;  %v5446_v49 = vld [vmem:[#allocation50_spill] sm:$0xff] }
 0x14e   :  { %845 = vmatmul.mubr.bf16.vlgmr.msra.gmra.mxu0 %v490_v34  ;;  %886 = vmatmul.mubr.bf16.vlgmr.msra.gmra.mxu1 %v490_v34 }
 0x14f   :  { %925 = vmatpush1.bf16.msra.mxu0 %v3578_v4  ;;  %966 = vmatpush1.bf16.msra.mxu1 %v3580_v5  ;;  %v5412_v4 = vld [vmem:[#allocation16_spill] sm:$0xff]  ;;  %v5413_v5 = vld [vmem:[#allocation17_spill] sm:$0xff] }
 0x150   :  { %926 = vmatprep.subr.bf16.mxu0 %v3583_v6  ;;  %967 = vmatprep.subr.bf16.mxu1 %v3587_v7  ;;  %v5414_v6 = vld [vmem:[#allocation18_spill] sm:$0xff]  ;;  %v5415_v7 = vld [vmem:[#allocation19_spill] sm:$0xff] }
 0x151   :  { %956 = vmatprep.mubr.bf16.mxu0 %v5411_v35  ;;  %997 = vmatprep.mubr.bf16.mxu1 %v5411_v35 }
 0x153   :  { %927 = vmatpush1.bf16.msra.mxu0 %v3589_v8  ;;  %968 = vmatpush1.bf16.msra.mxu1 %v3592_v9  ;;  %v5416_v8 = vld [vmem:[#allocation20_spill] sm:$0xff]  ;;  %v5417_v9 = vld [vmem:[#allocation21_spill] sm:$0xff] }
 0x154   :  { %928 = vmatprep.subr.bf16.mxu0 %v3595_v10  ;;  %969 = vmatprep.subr.bf16.mxu1 %v3597_v11  ;;  %v5418_v10 = vld [vmem:[#allocation22_spill] sm:$0xff]  ;;  %v5419_v11 = vld [vmem:[#allocation23_spill] sm:$0xff] }
 0x157   :  { %929 = vmatpush1.bf16.msra.mxu0 %v3599_v12  ;;  %970 = vmatpush1.bf16.msra.mxu1 %v3601_v13  ;;  %v5420_v12 = vld [vmem:[#allocation24_spill] sm:$0xff]  ;;  %v5421_v13 = vld [vmem:[#allocation25_spill] sm:$0xff] }
 0x158   :  { %930 = vmatprep.subr.bf16.mxu0 %v3605_v14  ;;  %971 = vmatprep.subr.bf16.mxu1 %v3609_v15  ;;  %v5422_v14 = vld [vmem:[#allocation26_spill] sm:$0xff]  ;;  %v5423_v15 = vld [vmem:[#allocation27_spill] sm:$0xff] }
 0x15b   :  { %931 = vmatpush1.bf16.msra.mxu0 %v3611_v16  ;;  %972 = vmatpush1.bf16.msra.mxu1 %v3615_v17  ;;  %v5424_v16 = vld [vmem:[#allocation28_spill] sm:$0xff]  ;;  %v5425_v17 = vld [vmem:[#allocation29_spill] sm:$0xff] }
 0x15c   :  { %932 = vmatprep.subr.bf16.mxu0 %v3617_v18  ;;  %973 = vmatprep.subr.bf16.mxu1 %v3621_v19  ;;  %v5426_v18 = vld [vmem:[#allocation30_spill] sm:$0xff]  ;;  %v5427_v19 = vld [vmem:[#allocation31_spill] sm:$0xff] }
 0x15f   :  { %933 = vmatpush1.bf16.msra.mxu0 %v3623_v20  ;;  %974 = vmatpush1.bf16.msra.mxu1 %v3625_v21  ;;  %v5428_v20 = vld [vmem:[#allocation32_spill] sm:$0xff]  ;;  %v5429_v21 = vld [vmem:[#allocation33_spill] sm:$0xff] }
 0x160   :  { %934 = vmatprep.subr.bf16.mxu0 %v3629_v22  ;;  %975 = vmatprep.subr.bf16.mxu1 %v3633_v23 }
 0x163   :  { %935 = vmatpush1.bf16.msra.mxu0 %v3637_v24  ;;  %976 = vmatpush1.bf16.msra.mxu1 %v3639_v25 }
 0x164   :  { %936 = vmatprep.subr.bf16.mxu0 %v3643_v26  ;;  %977 = vmatprep.subr.bf16.mxu1 %v3645_v27 }
 0x167   :  { %937 = vmatpush1.bf16.msra.mxu0 %v3647_v28  ;;  %978 = vmatpush1.bf16.msra.mxu1 %v3649_v29 }
 0x168   :  { %938 = vmatprep.subr.bf16.mxu0 %v3651_v30  ;;  %979 = vmatprep.subr.bf16.mxu1 %v3653_v31 }
 0x16b   :  { %939 = vmatpush1.bf16.msra.mxu0 %v3659_v32  ;;  %980 = vmatpush1.bf16.msra.mxu1 %v3661_v33 }
 0x16c   :  { %1062 = vmatprep.subr.bf16.mxu0 %v3669_v36  ;;  %1103 = vmatprep.subr.bf16.mxu1 %v3671_v37 }
 0x16e   :  { %957 = vmatmul.mubr.bf16.vlgmr.msra.gmra.mxu0 %v490_v34  ;;  %998 = vmatmul.mubr.bf16.vlgmr.msra.gmra.mxu1 %v490_v34  ;;  %v5447_v34 = vld [vmem:[#allocation51_spill] sm:$0xff] }
 0x16f   :  { %1063 = vmatpush1.bf16.msra.mxu0 %v3673_v38  ;;  %1104 = vmatpush1.bf16.msra.mxu1 %v3675_v39 }
 0x170   :  { %1064 = vmatprep.subr.bf16.mxu0 %v3681_v40  ;;  %1105 = vmatprep.subr.bf16.mxu1 %v3683_v41 }
 0x173   :  { %1065 = vmatpush1.bf16.msra.mxu0 %v3685_v42  ;;  %1106 = vmatpush1.bf16.msra.mxu1 %v3687_v43 }
 0x174   :  { %1066 = vmatprep.subr.bf16.mxu0 %v3693_v44  ;;  %1107 = vmatprep.subr.bf16.mxu1 %v3695_v45 }
 0x177   :  { %1067 = vmatpush1.bf16.msra.mxu0 %v3697_v46  ;;  %1108 = vmatpush1.bf16.msra.mxu1 %v3699_v47 }
 0x178   :  { %1068 = vmatprep.subr.bf16.mxu0 %v3705_v48  ;;  %1109 = vmatprep.subr.bf16.mxu1 %v5412_v4 }
 0x17b   :  { %1069 = vmatpush1.bf16.msra.mxu0 %v5413_v5  ;;  %1110 = vmatpush1.bf16.msra.mxu1 %v5414_v6 }
 0x17c   :  { %1070 = vmatprep.subr.bf16.mxu0 %v5415_v7  ;;  %1111 = vmatprep.subr.bf16.mxu1 %v5416_v8 }
 0x17f   :  { %1071 = vmatpush1.bf16.msra.mxu0 %v5417_v9  ;;  %1112 = vmatpush1.bf16.msra.mxu1 %v5418_v10 }
 0x180   :  { %1072 = vmatprep.subr.bf16.mxu0 %v5419_v11  ;;  %1113 = vmatprep.subr.bf16.mxu1 %v5420_v12 }
 0x183   :  { %1073 = vmatpush1.bf16.msra.mxu0 %v5421_v13  ;;  %1114 = vmatpush1.bf16.msra.mxu1 %v5422_v14 }
 0x184   :  { %1074 = vmatprep.subr.bf16.mxu0 %v5423_v15  ;;  %1115 = vmatprep.subr.bf16.mxu1 %v5424_v16 }
 0x187   :  { %1075 = vmatpush1.bf16.msra.mxu0 %v5425_v17  ;;  %1116 = vmatpush1.bf16.msra.mxu1 %v5426_v18 }
 0x188   :  { %1076 = vmatprep.subr.bf16.mxu0 %v5427_v19  ;;  %1117 = vmatprep.subr.bf16.mxu1 %v5428_v20 }
 0x18b   :  { %1077 = vmatpush1.bf16.msra.mxu0 %v5429_v21  ;;  %1118 = vmatpush1.bf16.msra.mxu1 %v5430_v0 }
 0x18c   :  { %1078 = vmatprep.subr.bf16.mxu0 %v5431_v60  ;;  %1119 = vmatprep.subr.bf16.mxu1 %v5432_v56 }
 0x18f   :  { %1079 = vmatpush2.bf16.msra.mxu0 %v5433_v57  ;;  %1120 = vmatpush2.bf16.msra.mxu1 %v5434_v54 }
 0x190   :  { %1080 = vmatprep.subr.bf16.mxu0 %v5435_v59  ;;  %1121 = vmatprep.subr.bf16.mxu1 %v5436_v55 }
 0x193   :  { %1081 = vmatpush2.bf16.msra.mxu0 %v5437_v62  ;;  %1122 = vmatpush2.bf16.msra.mxu1 %v5438_v2  ;;  %v5448_v62 = vld [vmem:[#allocation52_spill] sm:$0xff]  ;;  %v5449_v2 = vld [vmem:[#allocation53_spill] sm:$0xff] }
 0x194   :  { %1082 = vmatprep.subr.bf16.mxu0 %v5439_v3  ;;  %1123 = vmatprep.subr.bf16.mxu1 %v5440_v52  ;;  %v5450_v3 = vld [vmem:[#allocation54_spill] sm:$0xff]  ;;  %v5451_v52 = vld [vmem:[#allocation55_spill] sm:$0xff] }
 0x197   :  { %1083 = vmatpush2.bf16.msra.mxu0 %v5441_v53  ;;  %1124 = vmatpush2.bf16.msra.mxu1 %v5442_v51  ;;  %v5452_v53 = vld [vmem:[#allocation56_spill] sm:$0xff]  ;;  %v5453_v51 = vld [vmem:[#allocation57_spill] sm:$0xff] }
 0x198   :  { %1084 = vmatprep.subr.bf16.mxu0 %v5443_v50  ;;  %1125 = vmatprep.subr.bf16.mxu1 %v5444_v58  ;;  %v5454_v50 = vld [vmem:[#allocation58_spill] sm:$0xff]  ;;  %v5455_v58 = vld [vmem:[#allocation59_spill] sm:$0xff] }
 0x19b   :  { %1085 = vmatpush2.bf16.msra.mxu0 %v5445_v1  ;;  %1126 = vmatpush2.bf16.msra.mxu1 %v5446_v49  ;;  %v5456_v1 = vld [vmem:[#allocation60_spill] sm:$0xff]  ;;  %v5457_v49 = vld [vmem:[#allocation61_spill] sm:$0xff] }
 0x19c   :  { %1086 = vmatprep.subr.bf16.mxu0 %v5447_v34  ;;  %1127 = vmatprep.subr.bf16.mxu1 %v5448_v62  ;;  %v5458_v34 = vld [vmem:[#allocation62_spill] sm:$0xff]  ;;  %v5459_v62 = vld [vmem:[#allocation63_spill] sm:$0xff] }
 0x19f   :  { %1087 = vmatpush2.bf16.msra.mxu0 %v5449_v2  ;;  %1128 = vmatpush2.bf16.msra.mxu1 %v5450_v3  ;;  %v5460_v2 = vld [vmem:[#allocation64_spill] sm:$0xff]  ;;  %v5461_v3 = vld [vmem:[#allocation65_spill] sm:$0xff] }
 0x1a0   :  { %1088 = vmatprep.subr.bf16.mxu0 %v5451_v52  ;;  %1129 = vmatprep.subr.bf16.mxu1 %v5452_v53  ;;  %v5462_v52 = vld [vmem:[#allocation66_spill] sm:$0xff] }
 0x1a1   :  { %v5463_v53 = vld [vmem:[#allocation14_spill] sm:$0xff] }
 0x1a3   :  { %1089 = vmatpush2.bf16.msra.mxu0 %v5453_v51  ;;  %1130 = vmatpush2.bf16.msra.mxu1 %v5454_v50  ;;  %v5464_v51 = vld [vmem:[#allocation15_spill] sm:$0xff] }
 0x1a4   :  { %1090 = vmatprep.subr.bf16.mxu0 %v5455_v58  ;;  %1131 = vmatprep.subr.bf16.mxu1 %v5456_v1  ;;  %v5465_v50 = vld [vmem:[#allocation67_spill] sm:$0xff] }
 0x1a5   :  { %v168_v58 = vsub.s32 0, %v5465_v50  ;;  %v180_v54 = vsub.s32 3, %v5465_v50  ;;  %v176_v21 = vsub.s32 2, %v5465_v50 }
 0x1a7   :  { %1091 = vmatpush2.bf16.msra.mxu0 %v5457_v49  ;;  %1132 = vmatpush2.bf16.msra.mxu1 %v5458_v34  ;;  %v164_v49 = vld [vmem:[%s5061_s3] sm:$0xf]  ;;  %v172_v34 = vsub.s32 1, %v5465_v50  ;;  %v191_v50 = vld [vmem:[#allocation3 + $0x2] sm:$0x3]  ;;  %s3536_s3 = smov [#allocation10]  }
 0x1a8   :  { %1092 = vmatprep.subr.bf16.mxu0 %v5459_v62  ;;  %1133 = vmatprep.subr.bf16.mxu1 %v5460_v2  ;;  %v3976_v1 = vrot.slane %v164_v49, %v168_v58  ;;  %s2683_s7 = sshll.u32 %s3536_s3, 4  ;;  %s2684_s7 = int_to_ptr.vmem [resolvable:$true] %s2683_s7 }
 0x1a9   :  { %v3978_v62 = vrot.slane %v164_v49, %v172_v34  ;;  %v3983_v34 = vrot.slane %v164_v49, %v180_v54  ;;  %s3500_s8 = scalar_lea.vmem %s2684_s7, 32  ;;  %p3505_p2 = scmp.lt.s32.totalorder %s2684_s7, %s2684_s7 }
 0x1aa   :  { %5466 = vst [vmem:[#allocation16_spill] sm:$0xff] %v3976_v1  ;;  %p3501_p1 = scmp.ne.s32.totalorder %s2684_s7, %s3500_s8  ;;  %p3506_p3 = scmp.lt.s32.totalorder %s3500_s8, %s3500_s8 }
 0x1ab   :  { %1093 = vmatpush2.bf16.msra.mxu0 %v5461_v3  ;;  %1134 = vmatpush2.bf16.msra.mxu1 %v5462_v52  ;;  %5467 = vst [vmem:[#allocation17_spill] sm:$0xff] %v3978_v62  ;;  %5468 = vst [vmem:[#allocation18_spill] sm:$0xff] %v3983_v34 }
 0x1ac   :  { %1174 = vmatprep.subr.bf16.mxu0 %v5463_v53  ;;  %1215 = vmatprep.subr.bf16.mxu1 %v5464_v51  ;;  %p3507_p4 = por %p3506_p3, %p3505_p2 }
 0x1ae   :  { %p3508_p5 = pnand %p3507_p4, %p3501_p1 }
 0x20e   :  { %v846_v2 = vpop.f32.mrf.mxu0  ;;  %v887_v3 = vpop.f32.mrf.mxu1 }
 0x20f   :  { %v894_v52 = vadd.f32 %v846_v2, %v3976_v1  ;;  %v3987_v1 = vrot.slane %v164_v49, %v176_v21 }
 0x210   :  { %v848_v55 = vpop.f32.mrf.mxu0  ;;  %v889_v53 = vpop.f32.mrf.mxu1 }
 0x211   :  { %v2792_v59 = vmul.f32 -1.442695, %v894_v52  ;;  %v895_v51 = vadd.f32 %v848_v55, %v3978_v62  ;;  %v897_v2 = vadd.f32 %v889_v53, %v3983_v34  ;;  %5469 = vst [vmem:[#allocation19_spill] sm:$0xff] %v3987_v1  ;;  %v896_v55 = vadd.f32 %v887_v3, %v3987_v1 }
 0x212   :  { %v850_v57 = vpop.f32.mrf.mxu0  ;;  %v891_v56 = vpop.f32.mrf.mxu1 }
 0x213   :  { %3008 = vpow2.f32 %v2792_v59  ;;  %v2793_v60 = vmul.f32 -1.442695, %v895_v51  ;;  %v2794_v52 = vmul.f32 -1.442695, %v897_v2 }
 0x214   :  { %v851_v0 = vpop.f32.mrf.mxu0  ;;  %v892_v58 = vpop.f32.mrf.mxu1 }
 0x215   :  { %3010 = vpow2.f32 %v2793_v60 }
 0x216   :  { %3012 = vpow2.f32 %v2794_v52 }
 0x220   :  { %v3009_v20 = vpop.eup %3008 }
 0x221   :  { %v901_v62 = vadd.f32 1.0, %v3009_v20 }
 0x222   :  { %v3011_v57 = vpop.eup %3010 }
 0x223   :  { %3014 = vrcp.f32 %v901_v62  ;;  %v907_v56 = vadd.f32 1.0, %v3011_v57  ;;  %v3013_v54 = vpop.eup %3012  ;;  %v923_v57 = vld [vmem:[#allocation4 + $0x8] sm:$0xff] }
 0x224   :  { %3016 = vtanh.f32 %v896_v55  ;;  %v914_v34 = vadd.f32 1.0, %v3013_v54 }
 0x225   :  { %3018 = vrcp.f32 %v907_v56 }
 0x226   :  { %3020 = vrcp.f32 %v914_v34 }
 0x22e   :  { %v958_v0 = vpop.f32.mrf.mxu0  ;;  %v999_v60 = vpop.f32.mrf.mxu1 }
 0x230   :  { %v3015_v59 = vpop.eup %3014  ;;  %v960_v51 = vpop.f32.mrf.mxu0 }
 0x231   :  { %v1001_v53 = vpop.f32.mrf.mxu1  ;;  %v3017_v21 = vpop.eup %3016  ;;  %v1010_v49 = vcombine.low %v958_v0, %v960_v51 }
 0x232   :  { %v1011_v58 = vcombine.low %v999_v60, %v1001_v53  ;;  %v3019_v2 = vpop.eup %3018  ;;  %v962_v3 = vpop.f32.mrf.mxu0  ;;  %v918_v1 = vmul.f32 %v3017_v21, %v3015_v59 }
 0x233   :  { %v1003_v20 = vpop.f32.mrf.mxu1  ;;  %v917_v52 = vmul.f32 %v3019_v2, %v191_v50  ;;  %v1018_v62 = vrot.slane %v1010_v49, %v3866_v63  ;;  %v3021_v50 = vpop.eup %3020 }
 0x234   :  { %v1025_v55 = vrot.slane %v1011_v58, %v3866_v63  ;;  %v963_v56 = vpop.f32.mrf.mxu0 }
 0x235   :  { %v1004_v19 = vpop.f32.mrf.mxu1  ;;  %v3992_v17 = vadd.f32 %v918_v1, %v917_v52 }
 0x236   :  { %v1026_v18 = vcombine.low %v1018_v62, %v1025_v55 }
 0x237   :  { %3022 = vtanh.f32 %v3992_v17 }
 0x238   :  { %v1028_v16 = vadd.f32 %v1026_v18, %v923_v57 }
 0x23a   :  { %v2795_v0 = vmul.f32 -1.442695, %v1028_v16  ;;  %v1036_v60 = vrot.slane %v1028_v16, 2  ;;  %v1047_v59 = vrot.slane %v1028_v16, 6  ;;  %v1044_v19 = vrot.slane %v1028_v16, 4 }
 0x23c   :  { %3024 = vpow2.f32 %v2795_v0  ;;  %v2796_v54 = vmul.f32 -1.442695, %v1036_v60  ;;  %v2797_v21 = vmul.f32 -1.442695, %v1047_v59  ;;  %v3999_v59 = vld [vmem:[#allocation7 + $0xe0] ss:$16 sps:$4 sm:$0xff]  }
 0x23e   :  { %3026 = vpow2.f32 %v2796_v54 }
 0x23f   :  { %3028 = vpow2.f32 %v2797_v21  ;;  %v4016_v21 = vld [vmem:[#allocation7 + $0xc8] ss:$16 sps:$4 sm:$0xff]  }
 0x244   :  { %v3023_v51 = vpop.eup %3022 }
 0x245   :  { %v921_v53 = vmul.f32 %v3023_v51, %v3021_v50  ;;  %v4002_v50 = vld [vmem:[#allocation7 + $0xe8] ss:$16 sps:$4 sm:$0xff]   ;;  %v4008_v51 = vld [vmem:[#allocation7 + $0xcc] ss:$16 sps:$4 sm:$0xff]  }
 0x247   :  { %v1061_v49 = vpack.c.bf16 %v921_v53, %v921_v53  ;;  %v4013_v53 = vld [vmem:[#allocation7 + $0xc0] ss:$16 sps:$4 sm:$0xff]  }
 0x249   :  { %v3025_v58 = vpop.eup %3024  ;;  %1094 = vmatprep.mubr.bf16.mxu0 %v1061_v49  ;;  %1135 = vmatprep.mubr.bf16.mxu1 %v1061_v49  ;;  %v4019_v49 = vld [vmem:[#allocation7 + $0xa4] ss:$16 sps:$4 sm:$0xff]  }
 0x24a   :  { %v1032_v2 = vadd.f32 1.0, %v3025_v58  ;;  %v4022_v58 = vld [vmem:[#allocation7 + $0xac] ss:$16 sps:$4 sm:$0xff]  }
 0x24b   :  { %v3027_v1 = vpop.eup %3026 }
 0x24c   :  { %3030 = vrcp.f32 %v1032_v2  ;;  %v1041_v18 = vadd.f32 1.0, %v3027_v1  ;;  %v3029_v34 = vpop.eup %3028  ;;  %v4028_v2 = vld [vmem:[#allocation7 + $0xa8] ss:$16 sps:$4 sm:$0xff]   ;;  %v4031_v1 = vld [vmem:[#allocation7 + $0x84] ss:$16 sps:$4 sm:$0xff]  }
 0x24d   :  { %3032 = vtanh.f32 %v1044_v19  ;;  %v1052_v62 = vadd.f32 1.0, %v3029_v34  ;;  %v4025_v19 = vld [vmem:[#allocation7 + $0xa0] ss:$16 sps:$4 sm:$0xff]  }
 0x24e   :  { %3034 = vrcp.f32 %v1041_v18  ;;  %v4034_v18 = vld [vmem:[#allocation7 + $0x8c] ss:$16 sps:$4 sm:$0xff]   ;;  %v4037_v34 = vld [vmem:[#allocation7 + $0x80] ss:$16 sps:$4 sm:$0xff]  }
 0x24f   :  { %3036 = vrcp.f32 %v1052_v62  ;;  %v4049_v62 = vld [vmem:[#allocation7 + $0x60] ss:$16 sps:$4 sm:$0xff]  }
 0x259   :  { %v3031_v3 = vpop.eup %3030 }
 0x25a   :  { %v3033_v20 = vpop.eup %3032 }
 0x25b   :  { %v3035_v52 = vpop.eup %3034  ;;  %v1056_v57 = vmul.f32 %v3033_v20, %v3031_v3  ;;  %v4040_v3 = vld [vmem:[#allocation7 + $0x88] ss:$16 sps:$4 sm:$0xff]   ;;  %v4043_v20 = vld [vmem:[#allocation7 + $0x64] ss:$16 sps:$4 sm:$0xff]  }
 0x25c   :  { %v1055_v55 = vmul.f32 %v3035_v52, %v3870_v61  ;;  %v3037_v16 = vpop.eup %3036  ;;  %v4005_v61 = vld [vmem:[#allocation7 + $0xc4] ss:$16 sps:$4 sm:$0xff]   ;;  %v4046_v52 = vld [vmem:[#allocation7 + $0x6c] ss:$16 sps:$4 sm:$0xff]  }
 0x25e   :  { %v3996_v56 = vadd.f32 %v1056_v57, %v1055_v55  ;;  %v4052_v55 = vld [vmem:[#allocation7 + $0x68] ss:$16 sps:$4 sm:$0xff]  }
 0x25f   :  { %v5507_v57 = vld [vmem:[#allocation65_spill] sm:$0xff] }
 0x260   :  { %3038 = vtanh.f32 %v3996_v56 }
 0x26d   :  { %v3039_v0 = vpop.eup %3038 }
 0x26e   :  { %v1059_v60 = vmul.f32 %v3039_v0, %v3037_v16  ;;  %v5508_v16 = vld [vmem:[#allocation66_spill] sm:$0xff] }
 0x26f   :  { %v4131_v0 = vld [vmem:[#allocation7 + $0xe4] ss:$16 sps:$4 sm:$0xff]  }
 0x270   :  { %v1060_v54 = vpack.c.bf16 %v1059_v60, %v1059_v60  ;;  %5509 = vst [vmem:[#allocation20_spill] sm:$0xff] %v4131_v0  ;;  %v4134_v60 = vld [vmem:[#allocation7 + $0xec] ss:$16 sps:$4 sm:$0xff]  }
 0x271   :  { %5510 = vst [vmem:[#allocation21_spill] sm:$0xff] %v4134_v60 }
 0x272   :  { %1095 = vmatmul.mubr.bf16.vlgmr.msra.gmra.mxu0 %v1060_v54  ;;  %1136 = vmatmul.mubr.bf16.vlgmr.msra.gmra.mxu1 %v1060_v54 }
 0x273   :  { %1175 = vmatpush1.bf16.msra.mxu0 %v3999_v59  ;;  %1216 = vmatpush1.bf16.msra.mxu1 %v4002_v50 }
 0x274   :  { %1176 = vmatprep.subr.bf16.mxu0 %v4005_v61  ;;  %1217 = vmatprep.subr.bf16.mxu1 %v4008_v51 }
 0x275   :  { %1206 = vmatprep.mubr.bf16.mxu0 %v5411_v35  ;;  %1247 = vmatprep.mubr.bf16.mxu1 %v5411_v35 }
 0x277   :  { %1177 = vmatpush1.bf16.msra.mxu0 %v4013_v53  ;;  %1218 = vmatpush1.bf16.msra.mxu1 %v4016_v21 }
 0x278   :  { %1178 = vmatprep.subr.bf16.mxu0 %v4019_v49  ;;  %1219 = vmatprep.subr.bf16.mxu1 %v4022_v58 }
 0x27b   :  { %1179 = vmatpush1.bf16.msra.mxu0 %v4025_v19  ;;  %1220 = vmatpush1.bf16.msra.mxu1 %v4028_v2 }
 0x27c   :  { %1180 = vmatprep.subr.bf16.mxu0 %v4031_v1  ;;  %1221 = vmatprep.subr.bf16.mxu1 %v4034_v18 }
 0x27f   :  { %1181 = vmatpush1.bf16.msra.mxu0 %v4037_v34  ;;  %1222 = vmatpush1.bf16.msra.mxu1 %v4040_v3 }
 0x280   :  { %1182 = vmatprep.subr.bf16.mxu0 %v4043_v20  ;;  %1223 = vmatprep.subr.bf16.mxu1 %v4046_v52 }
 0x283   :  { %1183 = vmatpush1.bf16.msra.mxu0 %v4049_v62  ;;  %1224 = vmatpush1.bf16.msra.mxu1 %v4052_v55 }
 0x284   :  { %1184 = vmatprep.subr.bf16.mxu0 %v3629_v22  ;;  %1225 = vmatprep.subr.bf16.mxu1 %v3633_v23  ;;  %v5470_v22 = vld [vmem:[#allocation28_spill] sm:$0xff]  ;;  %v5471_v23 = vld [vmem:[#allocation29_spill] sm:$0xff] }
 0x287   :  { %1185 = vmatpush1.bf16.msra.mxu0 %v3637_v24  ;;  %1226 = vmatpush1.bf16.msra.mxu1 %v3639_v25  ;;  %v5472_v24 = vld [vmem:[#allocation30_spill] sm:$0xff]  ;;  %v5473_v25 = vld [vmem:[#allocation31_spill] sm:$0xff] }
 0x288   :  { %1186 = vmatprep.subr.bf16.mxu0 %v3643_v26  ;;  %1227 = vmatprep.subr.bf16.mxu1 %v3645_v27  ;;  %v5474_v26 = vld [vmem:[#allocation32_spill] sm:$0xff]  ;;  %v5475_v27 = vld [vmem:[#allocation33_spill] sm:$0xff] }
 0x28b   :  { %1187 = vmatpush1.bf16.msra.mxu0 %v3647_v28  ;;  %1228 = vmatpush1.bf16.msra.mxu1 %v3649_v29  ;;  %v5476_v28 = vld [vmem:[#allocation34_spill] sm:$0xff]  ;;  %v5477_v29 = vld [vmem:[#allocation35_spill] sm:$0xff] }
 0x28c   :  { %1188 = vmatprep.subr.bf16.mxu0 %v3651_v30  ;;  %1229 = vmatprep.subr.bf16.mxu1 %v3653_v31  ;;  %v5478_v30 = vld [vmem:[#allocation36_spill] sm:$0xff]  ;;  %v5479_v31 = vld [vmem:[#allocation37_spill] sm:$0xff] }
 0x28f   :  { %1189 = vmatpush1.bf16.msra.mxu0 %v3659_v32  ;;  %1230 = vmatpush1.bf16.msra.mxu1 %v3661_v33  ;;  %v5480_v32 = vld [vmem:[#allocation38_spill] sm:$0xff]  ;;  %v5481_v33 = vld [vmem:[#allocation39_spill] sm:$0xff] }
 0x290   :  { %1312 = vmatprep.subr.bf16.mxu0 %v3669_v36  ;;  %1353 = vmatprep.subr.bf16.mxu1 %v3671_v37  ;;  %v5482_v36 = vld [vmem:[#allocation40_spill] sm:$0xff]  ;;  %v5483_v37 = vld [vmem:[#allocation41_spill] sm:$0xff] }
 0x292   :  { %1207 = vmatmul.mubr.bf16.vlgmr.msra.gmra.mxu0 %v1060_v54  ;;  %1248 = vmatmul.mubr.bf16.vlgmr.msra.gmra.mxu1 %v1060_v54 }
 0x293   :  { %1313 = vmatpush1.bf16.msra.mxu0 %v3673_v38  ;;  %1354 = vmatpush1.bf16.msra.mxu1 %v3675_v39  ;;  %v5484_v38 = vld [vmem:[#allocation42_spill] sm:$0xff]  ;;  %v5485_v39 = vld [vmem:[#allocation43_spill] sm:$0xff] }
 0x294   :  { %1314 = vmatprep.subr.bf16.mxu0 %v3681_v40  ;;  %1355 = vmatprep.subr.bf16.mxu1 %v3683_v41  ;;  %v5486_v40 = vld [vmem:[#allocation44_spill] sm:$0xff]  ;;  %v5487_v41 = vld [vmem:[#allocation45_spill] sm:$0xff] }
 0x297   :  { %1315 = vmatpush1.bf16.msra.mxu0 %v3685_v42  ;;  %1356 = vmatpush1.bf16.msra.mxu1 %v3687_v43  ;;  %v5488_v42 = vld [vmem:[#allocation46_spill] sm:$0xff]  ;;  %v5489_v43 = vld [vmem:[#allocation47_spill] sm:$0xff] }
 0x298   :  { %1316 = vmatprep.subr.bf16.mxu0 %v3693_v44  ;;  %1357 = vmatprep.subr.bf16.mxu1 %v3695_v45  ;;  %v5490_v44 = vld [vmem:[#allocation48_spill] sm:$0xff]  ;;  %v5491_v45 = vld [vmem:[#allocation49_spill] sm:$0xff] }
 0x29b   :  { %1317 = vmatpush1.bf16.msra.mxu0 %v3697_v46  ;;  %1358 = vmatpush1.bf16.msra.mxu1 %v3699_v47  ;;  %v5492_v46 = vld [vmem:[#allocation50_spill] sm:$0xff]  ;;  %v5493_v47 = vld [vmem:[#allocation51_spill] sm:$0xff] }
 0x29c   :  { %1318 = vmatprep.subr.bf16.mxu0 %v3705_v48  ;;  %1359 = vmatprep.subr.bf16.mxu1 %v5412_v4  ;;  %v5494_v48 = vld [vmem:[#allocation52_spill] sm:$0xff]  ;;  %v5495_v4 = vld [vmem:[#allocation53_spill] sm:$0xff] }
 0x29f   :  { %1319 = vmatpush1.bf16.msra.mxu0 %v5413_v5  ;;  %1360 = vmatpush1.bf16.msra.mxu1 %v5414_v6  ;;  %v5496_v5 = vld [vmem:[#allocation54_spill] sm:$0xff]  ;;  %v5497_v6 = vld [vmem:[#allocation55_spill] sm:$0xff] }
 0x2a0   :  { %1320 = vmatprep.subr.bf16.mxu0 %v5415_v7  ;;  %1361 = vmatprep.subr.bf16.mxu1 %v5416_v8  ;;  %v5498_v7 = vld [vmem:[#allocation56_spill] sm:$0xff]  ;;  %v5499_v8 = vld [vmem:[#allocation57_spill] sm:$0xff] }
 0x2a3   :  { %1321 = vmatpush1.bf16.msra.mxu0 %v5417_v9  ;;  %1362 = vmatpush1.bf16.msra.mxu1 %v5418_v10  ;;  %v5500_v9 = vld [vmem:[#allocation58_spill] sm:$0xff]  ;;  %v5501_v10 = vld [vmem:[#allocation59_spill] sm:$0xff] }
 0x2a4   :  { %1322 = vmatprep.subr.bf16.mxu0 %v5419_v11  ;;  %1363 = vmatprep.subr.bf16.mxu1 %v5420_v12  ;;  %v5502_v11 = vld [vmem:[#allocation60_spill] sm:$0xff]  ;;  %v5503_v12 = vld [vmem:[#allocation61_spill] sm:$0xff] }
 0x2a7   :  { %1323 = vmatpush1.bf16.msra.mxu0 %v5421_v13  ;;  %1364 = vmatpush1.bf16.msra.mxu1 %v5422_v14  ;;  %v5504_v13 = vld [vmem:[#allocation62_spill] sm:$0xff]  ;;  %v5505_v14 = vld [vmem:[#allocation63_spill] sm:$0xff] }
 0x2a8   :  { %1324 = vmatprep.subr.bf16.mxu0 %v5423_v15  ;;  %1365 = vmatprep.subr.bf16.mxu1 %v5470_v22  ;;  %v5506_v15 = vld [vmem:[#allocation64_spill] sm:$0xff] }
 0x2ab   :  { %1325 = vmatpush1.bf16.msra.mxu0 %v5471_v23  ;;  %1366 = vmatpush1.bf16.msra.mxu1 %v5472_v24  ;;  %v5511_v23 = vld [vmem:[#allocation16_spill] sm:$0xff] }
 0x2ac   :  { %1326 = vmatprep.subr.bf16.mxu0 %v5473_v25  ;;  %1367 = vmatprep.subr.bf16.mxu1 %v5474_v26 }
 0x2af   :  { %1327 = vmatpush1.bf16.msra.mxu0 %v5475_v27  ;;  %1368 = vmatpush1.bf16.msra.mxu1 %v5476_v28  ;;  %v5512_v28 = vld [vmem:[#allocation17_spill] sm:$0xff] }
 0x2b0   :  { %1328 = vmatprep.subr.bf16.mxu0 %v5477_v29  ;;  %1369 = vmatprep.subr.bf16.mxu1 %v5478_v30 }
 0x2b3   :  { %1329 = vmatpush2.bf16.msra.mxu0 %v5479_v31  ;;  %1370 = vmatpush2.bf16.msra.mxu1 %v5480_v32 }
 0x2b4   :  { %1330 = vmatprep.subr.bf16.mxu0 %v5481_v33  ;;  %1371 = vmatprep.subr.bf16.mxu1 %v5482_v36 }
 0x2b7   :  { %1331 = vmatpush2.bf16.msra.mxu0 %v5483_v37  ;;  %1372 = vmatpush2.bf16.msra.mxu1 %v5484_v38  ;;  %v5513_v37 = vld [vmem:[#allocation18_spill] sm:$0xff] }
 0x2b8   :  { %1332 = vmatprep.subr.bf16.mxu0 %v5485_v39  ;;  %1373 = vmatprep.subr.bf16.mxu1 %v5486_v40 }
 0x2bb   :  { %1333 = vmatpush2.bf16.msra.mxu0 %v5487_v41  ;;  %1374 = vmatpush2.bf16.msra.mxu1 %v5488_v42  ;;  %v5514_v41 = vld [vmem:[#allocation19_spill] sm:$0xff] }
 0x2bc   :  { %1334 = vmatprep.subr.bf16.mxu0 %v5489_v43  ;;  %1375 = vmatprep.subr.bf16.mxu1 %v5490_v44 }
 0x2bf   :  { %1335 = vmatpush2.bf16.msra.mxu0 %v5491_v45  ;;  %1376 = vmatpush2.bf16.msra.mxu1 %v5492_v46 }
 0x2c0   :  { %1336 = vmatprep.subr.bf16.mxu0 %v5493_v47  ;;  %1377 = vmatprep.subr.bf16.mxu1 %v5494_v48 }
 0x2c3   :  { %1337 = vmatpush2.bf16.msra.mxu0 %v5495_v4  ;;  %1378 = vmatpush2.bf16.msra.mxu1 %v5496_v5 }
 0x2c4   :  { %1338 = vmatprep.subr.bf16.mxu0 %v5497_v6  ;;  %1379 = vmatprep.subr.bf16.mxu1 %v5498_v7 }
 0x2c7   :  { %1339 = vmatpush2.bf16.msra.mxu0 %v5499_v8  ;;  %1380 = vmatpush2.bf16.msra.mxu1 %v5500_v9 }
 0x2c8   :  { %1340 = vmatprep.subr.bf16.mxu0 %v5501_v10  ;;  %1381 = vmatprep.subr.bf16.mxu1 %v5502_v11 }
 0x2cb   :  { %1341 = vmatpush2.bf16.msra.mxu0 %v5503_v12  ;;  %1382 = vmatpush2.bf16.msra.mxu1 %v5504_v13 }
 0x2cc   :  { %1342 = vmatprep.subr.bf16.mxu0 %v5505_v14  ;;  %1383 = vmatprep.subr.bf16.mxu1 %v5506_v15 }
 0x2cf   :  { %1343 = vmatpush2.bf16.msra.mxu0 %v5507_v57  ;;  %1384 = vmatpush2.bf16.msra.mxu1 %v5508_v16 }
 0x2d0   :  { %1424 = vmatprep.subr.bf16.mxu0 %v4131_v0  ;;  %1465 = vmatprep.subr.bf16.mxu1 %v4134_v60 }
 0x332   :  { %v1096_v54 = vpop.f32.mrf.mxu0  ;;  %v1137_v22 = vpop.f32.mrf.mxu1 }
 0x333   :  { %v1144_v24 = vadd.f32 %v1096_v54, %v5511_v23  ;;  %v1146_v42 = vadd.f32 %v1137_v22, %v5514_v41  ;;  %v1173_v54 = vld [vmem:[#allocation4 + $0x10] sm:$0xff] }
 0x334   :  { %v1098_v25 = vpop.f32.mrf.mxu0  ;;  %v1139_v26 = vpop.f32.mrf.mxu1 }
 0x335   :  { %v2798_v27 = vmul.f32 -1.442695, %v1144_v24  ;;  %v1145_v29 = vadd.f32 %v1098_v25, %v5512_v28  ;;  %v1147_v38 = vadd.f32 %v1139_v26, %v5513_v37 }
 0x336   :  { %v1100_v30 = vpop.f32.mrf.mxu0  ;;  %v1141_v31 = vpop.f32.mrf.mxu1 }
 0x337   :  { %3040 = vpow2.f32 %v2798_v27  ;;  %v2799_v32 = vmul.f32 -1.442695, %v1145_v29  ;;  %v2800_v39 = vmul.f32 -1.442695, %v1147_v38 }
 0x338   :  { %v1101_v33 = vpop.f32.mrf.mxu0  ;;  %v1142_v36 = vpop.f32.mrf.mxu1 }
 0x339   :  { %3042 = vpow2.f32 %v2799_v32 }
 0x33a   :  { %3044 = vpow2.f32 %v2800_v39 }
 0x344   :  { %v3041_v40 = vpop.eup %3040 }
 0x345   :  { %v1151_v43 = vadd.f32 1.0, %v3041_v40 }
 0x346   :  { %v3043_v44 = vpop.eup %3042 }
 0x347   :  { %3046 = vrcp.f32 %v1151_v43  ;;  %v1157_v45 = vadd.f32 1.0, %v3043_v44  ;;  %v3045_v48 = vpop.eup %3044 }
 0x348   :  { %3048 = vtanh.f32 %v1146_v42  ;;  %v1164_v11 = vadd.f32 1.0, %v3045_v48 }
 0x349   :  { %3050 = vrcp.f32 %v1157_v45 }
 0x34a   :  { %3052 = vrcp.f32 %v1164_v11 }
 0x352   :  { %v1208_v46 = vpop.f32.mrf.mxu0  ;;  %v1249_v47 = vpop.f32.mrf.mxu1 }
 0x354   :  { %v3047_v4 = vpop.eup %3046  ;;  %v1210_v5 = vpop.f32.mrf.mxu0 }
 0x355   :  { %v1251_v6 = vpop.f32.mrf.mxu1  ;;  %v3049_v7 = vpop.eup %3048  ;;  %v1260_v8 = vcombine.low %v1208_v46, %v1210_v5 }
 0x356   :  { %v1261_v9 = vcombine.low %v1249_v47, %v1251_v6  ;;  %v3051_v10 = vpop.eup %3050  ;;  %v1212_v12 = vpop.f32.mrf.mxu0  ;;  %v1168_v14 = vmul.f32 %v3049_v7, %v3047_v4 }
 0x357   :  { %v1253_v13 = vpop.f32.mrf.mxu1  ;;  %v1167_v15 = vmul.f32 %v3051_v10, %v3992_v17  ;;  %v1268_v57 = vrot.slane %v1260_v8, %v3866_v63  ;;  %v3053_v32 = vpop.eup %3052 }
 0x358   :  { %v1275_v16 = vrot.slane %v1261_v9, %v3866_v63  ;;  %v1213_v22 = vpop.f32.mrf.mxu0  ;;  %v4174_v13 = vld [vmem:[#allocation7 + $0x4c] ss:$16 sps:$4 sm:$0xff]  }
 0x359   :  { %v1254_v24 = vpop.f32.mrf.mxu1  ;;  %v4144_v26 = vadd.f32 %v1168_v14, %v1167_v15  ;;  %v4177_v14 = vld [vmem:[#allocation7 + $0x40] ss:$16 sps:$4 sm:$0xff]   ;;  %v4180_v15 = vld [vmem:[#allocation7 + $0x48] ss:$16 sps:$4 sm:$0xff]  }
 0x35a   :  { %v1276_v25 = vcombine.low %v1268_v57, %v1275_v16  ;;  %v4183_v57 = vld [vmem:[#allocation7 + $0x24] ss:$16 sps:$4 sm:$0xff]   ;;  %v4186_v16 = vld [vmem:[#allocation7 + $0x2c] ss:$16 sps:$4 sm:$0xff]   ;;  %v4192_v22 = vld [vmem:[#allocation7 + $0x28] ss:$16 sps:$4 sm:$0xff]  }
 0x35b   :  { %3054 = vtanh.f32 %v4144_v26  ;;  %v4195_v24 = vld [vmem:[#allocation7 + $0x4] ss:$16 sps:$4 sm:$0xff]  }
 0x35c   :  { %v1278_v27 = vadd.f32 %v1276_v25, %v1173_v54  ;;  %v4189_v54 = vld [vmem:[#allocation7 + $0x20] ss:$16 sps:$4 sm:$0xff]   ;;  %v4198_v25 = vld [vmem:[#allocation7 + $0xc] ss:$16 sps:$4 sm:$0xff]  }
 0x35e   :  { %v2801_v29 = vmul.f32 -1.442695, %v1278_v27  ;;  %v1286_v30 = vrot.slane %v1278_v27, 2  ;;  %v1297_v17 = vrot.slane %v1278_v27, 6  ;;  %v1294_v42 = vrot.slane %v1278_v27, 4 }
 0x35f   :  { %v4201_v27 = vld [vmem:[#allocation7] ss:$16 sps:$4 sm:$0xff]  }
 0x360   :  { %3056 = vpow2.f32 %v2801_v29  ;;  %v2802_v31 = vmul.f32 -1.442695, %v1286_v30  ;;  %v2803_v38 = vmul.f32 -1.442695, %v1297_v17  ;;  %v4204_v29 = vld [vmem:[#allocation7 + $0x8] ss:$16 sps:$4 sm:$0xff]  }
 0x361   :  { %v4207_v30 = vld [vmem:[#allocation9 + $0xe4] ss:$16 sps:$4 sm:$0xff]   ;;  %v4213_v17 = vld [vmem:[#allocation9 + $0xe0] ss:$16 sps:$4 sm:$0xff]  }
 0x362   :  { %3058 = vpow2.f32 %v2802_v31  ;;  %v4210_v31 = vld [vmem:[#allocation9 + $0xec] ss:$16 sps:$4 sm:$0xff]  }
 0x363   :  { %3060 = vpow2.f32 %v2803_v38  ;;  %v4225_v38 = vld [vmem:[#allocation9 + $0xc0] ss:$16 sps:$4 sm:$0xff]  }
 0x368   :  { %v3055_v33 = vpop.eup %3054 }
 0x369   :  { %v1171_v36 = vmul.f32 %v3055_v33, %v3053_v32  ;;  %v4216_v32 = vld [vmem:[#allocation9 + $0xe8] ss:$16 sps:$4 sm:$0xff]   ;;  %v4219_v33 = vld [vmem:[#allocation9 + $0xc4] ss:$16 sps:$4 sm:$0xff]  }
 0x36b   :  { %v1311_v39 = vpack.c.bf16 %v1171_v36, %v1171_v36  ;;  %v4222_v36 = vld [vmem:[#allocation9 + $0xcc] ss:$16 sps:$4 sm:$0xff]  }
 0x36d   :  { %v3057_v40 = vpop.eup %3056  ;;  %1344 = vmatprep.mubr.bf16.mxu0 %v1311_v39  ;;  %1385 = vmatprep.mubr.bf16.mxu1 %v1311_v39  ;;  %v4228_v39 = vld [vmem:[#allocation9 + $0xc8] ss:$16 sps:$4 sm:$0xff]  }
 0x36e   :  { %v1282_v43 = vadd.f32 1.0, %v3057_v40  ;;  %v4231_v40 = vld [vmem:[#allocation9 + $0xa4] ss:$16 sps:$4 sm:$0xff]  }
 0x36f   :  { %v3059_v44 = vpop.eup %3058  ;;  %5515 = vst [vmem:[#allocation22_spill] sm:$0xff] %v4231_v40 }
 0x370   :  { %3062 = vrcp.f32 %v1282_v43  ;;  %v1291_v45 = vadd.f32 1.0, %v3059_v44  ;;  %v3061_v46 = vpop.eup %3060  ;;  %v4237_v43 = vld [vmem:[#allocation9 + $0xa0] ss:$16 sps:$4 sm:$0xff]   ;;  %v4240_v44 = vld [vmem:[#allocation9 + $0xa8] ss:$16 sps:$4 sm:$0xff]  }
 0x371   :  { %3064 = vtanh.f32 %v1294_v42  ;;  %v1302_v5 = vadd.f32 1.0, %v3061_v46  ;;  %v4234_v42 = vld [vmem:[#allocation9 + $0xac] ss:$16 sps:$4 sm:$0xff]   ;;  %5517 = vst [vmem:[#allocation24_spill] sm:$0xff] %v4237_v43  ;;  %5518 = vst [vmem:[#allocation25_spill] sm:$0xff] %v4240_v44 }
 0x372   :  { %3066 = vrcp.f32 %v1291_v45  ;;  %5516 = vst [vmem:[#allocation23_spill] sm:$0xff] %v4234_v42  ;;  %v4243_v45 = vld [vmem:[#allocation9 + $0x84] ss:$16 sps:$4 sm:$0xff]   ;;  %v4246_v46 = vld [vmem:[#allocation9 + $0x8c] ss:$16 sps:$4 sm:$0xff]  }
 0x373   :  { %3068 = vrcp.f32 %v1302_v5  ;;  %5519 = vst [vmem:[#allocation26_spill] sm:$0xff] %v4243_v45  ;;  %5520 = vst [vmem:[#allocation27_spill] sm:$0xff] %v4246_v46  ;;  %v4258_v5 = vld [vmem:[#allocation9 + $0x6c] ss:$16 sps:$4 sm:$0xff]  }
 0x374   :  { %5524 = vst [vmem:[#allocation28_spill] sm:$0xff] %v4258_v5 }
 0x37d   :  { %v3063_v47 = vpop.eup %3062 }
 0x37e   :  { %v3065_v48 = vpop.eup %3064 }
 0x37f   :  { %v3067_v4 = vpop.eup %3066  ;;  %v1306_v7 = vmul.f32 %v3065_v48, %v3063_v47  ;;  %v4249_v47 = vld [vmem:[#allocation9 + $0x80] ss:$16 sps:$4 sm:$0xff]   ;;  %v4252_v48 = vld [vmem:[#allocation9 + $0x88] ss:$16 sps:$4 sm:$0xff]  }
 0x380   :  { %v1305_v6 = vmul.f32 %v3067_v4, %v3996_v56  ;;  %v3069_v9 = vpop.eup %3068  ;;  %v4171_v56 = vld [vmem:[#allocation7 + $0x44] ss:$16 sps:$4 sm:$0xff]   ;;  %5521 = vst [vmem:[#allocation14_spill] sm:$0xff] %v4249_v47  ;;  %5522 = vst [vmem:[#allocation15_spill] sm:$0xff] %v4252_v48 }
 0x381   :  { %v4255_v4 = vld [vmem:[#allocation9 + $0x64] ss:$16 sps:$4 sm:$0xff]  }
 0x382   :  { %v4148_v8 = vadd.f32 %v1306_v7, %v1305_v6  ;;  %5523 = vst [vmem:[#allocation67_spill] sm:$0xff] %v4255_v4  ;;  %v4261_v6 = vld [vmem:[#allocation9 + $0x60] ss:$16 sps:$4 sm:$0xff]   ;;  %v4264_v7 = vld [vmem:[#allocation9 + $0x68] ss:$16 sps:$4 sm:$0xff]  }
 0x383   :  { %5525 = vst [vmem:[#allocation29_spill] sm:$0xff] %v4261_v6  ;;  %5526 = vst [vmem:[#allocation30_spill] sm:$0xff] %v4264_v7 }
 0x384   :  { %3070 = vtanh.f32 %v4148_v8 }
 0x391   :  { %v3071_v10 = vpop.eup %3070 }
 0x392   :  { %v1309_v11 = vmul.f32 %v3071_v10, %v3069_v9  ;;  %v4267_v9 = vld [vmem:[#allocation9 + $0x44] ss:$16 sps:$4 sm:$0xff]   ;;  %v4270_v10 = vld [vmem:[#allocation9 + $0x4c] ss:$16 sps:$4 sm:$0xff]  }
 0x393   :  { %5527 = vst [vmem:[#allocation31_spill] sm:$0xff] %v4267_v9  ;;  %5528 = vst [vmem:[#allocation32_spill] sm:$0xff] %v4270_v10 }
 0x394   :  { %v1310_v12 = vpack.c.bf16 %v1309_v11, %v1309_v11  ;;  %v4273_v11 = vld [vmem:[#allocation9 + $0x40] ss:$16 sps:$4 sm:$0xff]  }
 0x395   :  { %5529 = vst [vmem:[#allocation33_spill] sm:$0xff] %v4273_v11 }
 0x396   :  { %1345 = vmatmul.mubr.bf16.vlgmr.msra.gmra.mxu0 %v1310_v12  ;;  %1386 = vmatmul.mubr.bf16.vlgmr.msra.gmra.mxu1 %v1310_v12 }
 0x397   :  { %1425 = vmatpush1.bf16.msra.mxu0 %v3999_v59  ;;  %1466 = vmatpush1.bf16.msra.mxu1 %v4002_v50 }
 0x398   :  { %1426 = vmatprep.subr.bf16.mxu0 %v4005_v61  ;;  %1467 = vmatprep.subr.bf16.mxu1 %v4008_v51 }
 0x399   :  { %1456 = vmatprep.mubr.bf16.mxu0 %v5411_v35  ;;  %1497 = vmatprep.mubr.bf16.mxu1 %v5411_v35 }
 0x39b   :  { %1427 = vmatpush1.bf16.msra.mxu0 %v4013_v53  ;;  %1468 = vmatpush1.bf16.msra.mxu1 %v4016_v21 }
 0x39c   :  { %1428 = vmatprep.subr.bf16.mxu0 %v4019_v49  ;;  %1469 = vmatprep.subr.bf16.mxu1 %v4022_v58 }
 0x39f   :  { %1429 = vmatpush1.bf16.msra.mxu0 %v4025_v19  ;;  %1470 = vmatpush1.bf16.msra.mxu1 %v4028_v2 }
 0x3a0   :  { %1430 = vmatprep.subr.bf16.mxu0 %v4031_v1  ;;  %1471 = vmatprep.subr.bf16.mxu1 %v4034_v18 }
 0x3a3   :  { %1431 = vmatpush1.bf16.msra.mxu0 %v4037_v34  ;;  %1472 = vmatpush1.bf16.msra.mxu1 %v4040_v3 }
 0x3a4   :  { %1432 = vmatprep.subr.bf16.mxu0 %v4043_v20  ;;  %1473 = vmatprep.subr.bf16.mxu1 %v4046_v52 }
 0x3a7   :  { %1433 = vmatpush1.bf16.msra.mxu0 %v4049_v62  ;;  %1474 = vmatpush1.bf16.msra.mxu1 %v4052_v55 }
 0x3a8   :  { %1434 = vmatprep.subr.bf16.mxu0 %v4171_v56  ;;  %1475 = vmatprep.subr.bf16.mxu1 %v4174_v13 }
 0x3ab   :  { %1435 = vmatpush1.bf16.msra.mxu0 %v4177_v14  ;;  %1476 = vmatpush1.bf16.msra.mxu1 %v4180_v15 }
 0x3ac   :  { %1436 = vmatprep.subr.bf16.mxu0 %v4183_v57  ;;  %1477 = vmatprep.subr.bf16.mxu1 %v4186_v16 }
 0x3af   :  { %1437 = vmatpush1.bf16.msra.mxu0 %v4189_v54  ;;  %1478 = vmatpush1.bf16.msra.mxu1 %v4192_v22 }
 0x3b0   :  { %1438 = vmatprep.subr.bf16.mxu0 %v4195_v24  ;;  %1479 = vmatprep.subr.bf16.mxu1 %v4198_v25 }
 0x3b3   :  { %1439 = vmatpush1.bf16.msra.mxu0 %v4201_v27  ;;  %1480 = vmatpush1.bf16.msra.mxu1 %v4204_v29 }
 0x3b4   :  { %1562 = vmatprep.subr.bf16.mxu0 %v4207_v30  ;;  %1603 = vmatprep.subr.bf16.mxu1 %v4210_v31 }
 0x3b6   :  { %1457 = vmatmul.mubr.bf16.vlgmr.msra.gmra.mxu0 %v1310_v12  ;;  %1498 = vmatmul.mubr.bf16.vlgmr.msra.gmra.mxu1 %v1310_v12  ;;  %v4276_v12 = vld [vmem:[#allocation9 + $0x48] ss:$16 sps:$4 sm:$0xff]  }
 0x3b7   :  { %1563 = vmatpush1.bf16.msra.mxu0 %v4213_v17  ;;  %1604 = vmatpush1.bf16.msra.mxu1 %v4216_v32  ;;  %5530 = vst [vmem:[#allocation34_spill] sm:$0xff] %v4276_v12 }
 0x3b8   :  { %1564 = vmatprep.subr.bf16.mxu0 %v4219_v33  ;;  %1605 = vmatprep.subr.bf16.mxu1 %v4222_v36 }
 0x3bb   :  { %1565 = vmatpush1.bf16.msra.mxu0 %v4225_v38  ;;  %1606 = vmatpush1.bf16.msra.mxu1 %v4228_v39 }
 0x3bc   :  { %1566 = vmatprep.subr.bf16.mxu0 %v4231_v40  ;;  %1607 = vmatprep.subr.bf16.mxu1 %v4234_v42 }
 0x3bf   :  { %1567 = vmatpush1.bf16.msra.mxu0 %v4237_v43  ;;  %1608 = vmatpush1.bf16.msra.mxu1 %v4240_v44 }
 0x3c0   :  { %1568 = vmatprep.subr.bf16.mxu0 %v4243_v45  ;;  %1609 = vmatprep.subr.bf16.mxu1 %v4246_v46 }
 0x3c3   :  { %1569 = vmatpush1.bf16.msra.mxu0 %v4249_v47  ;;  %1610 = vmatpush1.bf16.msra.mxu1 %v4252_v48 }
 0x3c4   :  { %1570 = vmatprep.subr.bf16.mxu0 %v4255_v4  ;;  %1611 = vmatprep.subr.bf16.mxu1 %v4258_v5 }
 0x3c7   :  { %1571 = vmatpush1.bf16.msra.mxu0 %v4261_v6  ;;  %1612 = vmatpush1.bf16.msra.mxu1 %v4264_v7  ;;  %v4279_v6 = vld [vmem:[#allocation9 + $0x24] ss:$16 sps:$4 sm:$0xff]   ;;  %v4282_v7 = vld [vmem:[#allocation9 + $0x2c] ss:$16 sps:$4 sm:$0xff]  }
 0x3c8   :  { %1572 = vmatprep.subr.bf16.mxu0 %v4267_v9  ;;  %1613 = vmatprep.subr.bf16.mxu1 %v4270_v10  ;;  %5531 = vst [vmem:[#allocation35_spill] sm:$0xff] %v4279_v6  ;;  %5532 = vst [vmem:[#allocation36_spill] sm:$0xff] %v4282_v7  ;;  %v4285_v9 = vld [vmem:[#allocation9 + $0x20] ss:$16 sps:$4 sm:$0xff]   ;;  %v4288_v10 = vld [vmem:[#allocation9 + $0x28] ss:$16 sps:$4 sm:$0xff]  }
 0x3c9   :  { %5533 = vst [vmem:[#allocation37_spill] sm:$0xff] %v4285_v9  ;;  %5534 = vst [vmem:[#allocation38_spill] sm:$0xff] %v4288_v10 }
 0x3cb   :  { %1573 = vmatpush1.bf16.msra.mxu0 %v4273_v11  ;;  %1614 = vmatpush1.bf16.msra.mxu1 %v4276_v12  ;;  %v4291_v11 = vld [vmem:[#allocation9 + $0x4] ss:$16 sps:$4 sm:$0xff]   ;;  %v4294_v12 = vld [vmem:[#allocation9 + $0xc] ss:$16 sps:$4 sm:$0xff]  }
 0x3cc   :  { %1574 = vmatprep.subr.bf16.mxu0 %v4279_v6  ;;  %1615 = vmatprep.subr.bf16.mxu1 %v4282_v7  ;;  %5535 = vst [vmem:[#allocation39_spill] sm:$0xff] %v4291_v11  ;;  %5536 = vst [vmem:[#allocation40_spill] sm:$0xff] %v4294_v12  ;;  %v4297_v6 = vld [vmem:[#allocation9] ss:$16 sps:$4 sm:$0xff]   ;;  %v4300_v7 = vld [vmem:[#allocation9 + $0x8] ss:$16 sps:$4 sm:$0xff]  }
 0x3cd   :  { %5537 = vst [vmem:[#allocation41_spill] sm:$0xff] %v4297_v6  ;;  %5538 = vst [vmem:[#allocation42_spill] sm:$0xff] %v4300_v7 }
 0x3cf   :  { %1575 = vmatpush1.bf16.msra.mxu0 %v4285_v9  ;;  %1616 = vmatpush1.bf16.msra.mxu1 %v4288_v10  ;;  %v4303_v9 = vld [vmem:[#allocation9 + $0x1e4] ss:$16 sps:$4 sm:$0xff]   ;;  %v4306_v10 = vld [vmem:[#allocation9 + $0x1ec] ss:$16 sps:$4 sm:$0xff]  }
 0x3d0   :  { %1576 = vmatprep.subr.bf16.mxu0 %v4291_v11  ;;  %1617 = vmatprep.subr.bf16.mxu1 %v4294_v12  ;;  %5539 = vst [vmem:[#allocation43_spill] sm:$0xff] %v4303_v9  ;;  %5540 = vst [vmem:[#allocation44_spill] sm:$0xff] %v4306_v10  ;;  %v4309_v11 = vld [vmem:[#allocation9 + $0x1e0] ss:$16 sps:$4 sm:$0xff]   ;;  %v4312_v12 = vld [vmem:[#allocation9 + $0x1e8] ss:$16 sps:$4 sm:$0xff]  }
 0x3d1   :  { %5541 = vst [vmem:[#allocation45_spill] sm:$0xff] %v4309_v11  ;;  %5542 = vst [vmem:[#allocation46_spill] sm:$0xff] %v4312_v12 }
 0x3d3   :  { %1577 = vmatpush1.bf16.msra.mxu0 %v4297_v6  ;;  %1618 = vmatpush1.bf16.msra.mxu1 %v4300_v7  ;;  %v4315_v6 = vld [vmem:[#allocation9 + $0x1c4] ss:$16 sps:$4 sm:$0xff]   ;;  %v4318_v7 = vld [vmem:[#allocation9 + $0x1cc] ss:$16 sps:$4 sm:$0xff]  }
 0x3d4   :  { %1578 = vmatprep.subr.bf16.mxu0 %v4303_v9  ;;  %1619 = vmatprep.subr.bf16.mxu1 %v4306_v10  ;;  %5543 = vst [vmem:[#allocation47_spill] sm:$0xff] %v4315_v6  ;;  %5544 = vst [vmem:[#allocation48_spill] sm:$0xff] %v4318_v7  ;;  %v4321_v9 = vld [vmem:[#allocation9 + $0x1c0] ss:$16 sps:$4 sm:$0xff]   ;;  %v4324_v10 = vld [vmem:[#allocation9 + $0x1c8] ss:$16 sps:$4 sm:$0xff]  }
 0x3d5   :  { %5545 = vst [vmem:[#allocation49_spill] sm:$0xff] %v4321_v9  ;;  %5546 = vst [vmem:[#allocation50_spill] sm:$0xff] %v4324_v10 }
 0x3d7   :  { %1579 = vmatpush2.bf16.msra.mxu0 %v4309_v11  ;;  %1620 = vmatpush2.bf16.msra.mxu1 %v4312_v12  ;;  %v4327_v11 = vld [vmem:[#allocation9 + $0x1a4] ss:$16 sps:$4 sm:$0xff]   ;;  %v4330_v12 = vld [vmem:[#allocation9 + $0x1ac] ss:$16 sps:$4 sm:$0xff]  }
 0x3d8   :  { %1580 = vmatprep.subr.bf16.mxu0 %v4315_v6  ;;  %1621 = vmatprep.subr.bf16.mxu1 %v4318_v7  ;;  %5547 = vst [vmem:[#allocation51_spill] sm:$0xff] %v4327_v11  ;;  %5548 = vst [vmem:[#allocation52_spill] sm:$0xff] %v4330_v12  ;;  %v4333_v6 = vld [vmem:[#allocation9 + $0x1a0] ss:$16 sps:$4 sm:$0xff]   ;;  %v4336_v7 = vld [vmem:[#allocation9 + $0x1a8] ss:$16 sps:$4 sm:$0xff]  }
 0x3d9   :  { %5549 = vst [vmem:[#allocation53_spill] sm:$0xff] %v4333_v6  ;;  %5550 = vst [vmem:[#allocation54_spill] sm:$0xff] %v4336_v7 }
 0x3db   :  { %1581 = vmatpush2.bf16.msra.mxu0 %v4321_v9  ;;  %1622 = vmatpush2.bf16.msra.mxu1 %v4324_v10  ;;  %v4339_v9 = vld [vmem:[#allocation9 + $0x184] ss:$16 sps:$4 sm:$0xff]   ;;  %v4342_v10 = vld [vmem:[#allocation9 + $0x18c] ss:$16 sps:$4 sm:$0xff]  }
 0x3dc   :  { %1582 = vmatprep.subr.bf16.mxu0 %v4327_v11  ;;  %1623 = vmatprep.subr.bf16.mxu1 %v4330_v12  ;;  %5551 = vst [vmem:[#allocation55_spill] sm:$0xff] %v4339_v9  ;;  %5552 = vst [vmem:[#allocation56_spill] sm:$0xff] %v4342_v10  ;;  %v4345_v11 = vld [vmem:[#allocation9 + $0x180] ss:$16 sps:$4 sm:$0xff]   ;;  %v4348_v12 = vld [vmem:[#allocation9 + $0x188] ss:$16 sps:$4 sm:$0xff]  }
 0x3dd   :  { %5553 = vst [vmem:[#allocation57_spill] sm:$0xff] %v4345_v11  ;;  %5554 = vst [vmem:[#allocation58_spill] sm:$0xff] %v4348_v12 }
 0x3df   :  { %1583 = vmatpush2.bf16.msra.mxu0 %v4333_v6  ;;  %1624 = vmatpush2.bf16.msra.mxu1 %v4336_v7  ;;  %v4351_v6 = vld [vmem:[#allocation9 + $0x164] ss:$16 sps:$4 sm:$0xff]   ;;  %v4354_v7 = vld [vmem:[#allocation9 + $0x16c] ss:$16 sps:$4 sm:$0xff]  }
 0x3e0   :  { %1584 = vmatprep.subr.bf16.mxu0 %v4339_v9  ;;  %1625 = vmatprep.subr.bf16.mxu1 %v4342_v10  ;;  %5555 = vst [vmem:[#allocation59_spill] sm:$0xff] %v4351_v6  ;;  %5556 = vst [vmem:[#allocation60_spill] sm:$0xff] %v4354_v7  ;;  %v4357_v9 = vld [vmem:[#allocation9 + $0x160] ss:$16 sps:$4 sm:$0xff]   ;;  %v4360_v10 = vld [vmem:[#allocation9 + $0x168] ss:$16 sps:$4 sm:$0xff]  }
 0x3e1   :  { %5557 = vst [vmem:[#allocation61_spill] sm:$0xff] %v4357_v9  ;;  %5558 = vst [vmem:[#allocation62_spill] sm:$0xff] %v4360_v10 }
 0x3e3   :  { %1585 = vmatpush2.bf16.msra.mxu0 %v4345_v11  ;;  %1626 = vmatpush2.bf16.msra.mxu1 %v4348_v12  ;;  %v4363_v11 = vld [vmem:[#allocation9 + $0x144] ss:$16 sps:$4 sm:$0xff]   ;;  %v4366_v12 = vld [vmem:[#allocation9 + $0x14c] ss:$16 sps:$4 sm:$0xff]  }
 0x3e4   :  { %1586 = vmatprep.subr.bf16.mxu0 %v4351_v6  ;;  %1627 = vmatprep.subr.bf16.mxu1 %v4354_v7  ;;  %5559 = vst [vmem:[#allocation63_spill] sm:$0xff] %v4363_v11  ;;  %5560 = vst [vmem:[#allocation64_spill] sm:$0xff] %v4366_v12  ;;  %v4369_v6 = vld [vmem:[#allocation9 + $0x140] ss:$16 sps:$4 sm:$0xff]   ;;  %v4372_v7 = vld [vmem:[#allocation9 + $0x148] ss:$16 sps:$4 sm:$0xff]  }
 0x3e5   :  { %5561 = vst [vmem:[#allocation65_spill] sm:$0xff] %v4369_v6  ;;  %5562 = vst [vmem:[#allocation66_spill] sm:$0xff] %v4372_v7 }
 0x3e7   :  { %1587 = vmatpush2.bf16.msra.mxu0 %v4357_v9  ;;  %1628 = vmatpush2.bf16.msra.mxu1 %v4360_v10  ;;  %v4375_v9 = vld [vmem:[#allocation9 + $0x124] ss:$16 sps:$4 sm:$0xff]   ;;  %v4378_v10 = vld [vmem:[#allocation9 + $0x12c] ss:$16 sps:$4 sm:$0xff]  }
 0x3e8   :  { %1588 = vmatprep.subr.bf16.mxu0 %v4363_v11  ;;  %1629 = vmatprep.subr.bf16.mxu1 %v4366_v12  ;;  %5563 = vst [vmem:[#allocation68_spill] sm:$0xff] %v4375_v9  ;;  %5564 = vst [vmem:[#allocation69_spill] sm:$0xff] %v4378_v10  ;;  %v4381_v11 = vld [vmem:[#allocation9 + $0x120] ss:$16 sps:$4 sm:$0xff]   ;;  %v4384_v12 = vld [vmem:[#allocation9 + $0x128] ss:$16 sps:$4 sm:$0xff]  }
 0x3e9   :  { %5565 = vst [vmem:[#allocation70_spill] sm:$0xff] %v4381_v11  ;;  %5566 = vst [vmem:[#allocation71_spill] sm:$0xff] %v4384_v12 }
 0x3eb   :  { %1589 = vmatpush2.bf16.msra.mxu0 %v4369_v6  ;;  %1630 = vmatpush2.bf16.msra.mxu1 %v4372_v7  ;;  %v4387_v6 = vld [vmem:[#allocation9 + $0x104] ss:$16 sps:$4 sm:$0xff]   ;;  %v4390_v7 = vld [vmem:[#allocation9 + $0x10c] ss:$16 sps:$4 sm:$0xff]  }
 0x3ec   :  { %1590 = vmatprep.subr.bf16.mxu0 %v4375_v9  ;;  %1631 = vmatprep.subr.bf16.mxu1 %v4378_v10  ;;  %5567 = vst [vmem:[#allocation72_spill] sm:$0xff] %v4387_v6  ;;  %5568 = vst [vmem:[#allocation73_spill] sm:$0xff] %v4390_v7  ;;  %v4393_v9 = vld [vmem:[#allocation9 + $0x100] ss:$16 sps:$4 sm:$0xff]   ;;  %v4396_v10 = vld [vmem:[#allocation9 + $0x108] ss:$16 sps:$4 sm:$0xff]  }
 0x3ed   :  { %5569 = vst [vmem:[#allocation74_spill] sm:$0xff] %v4393_v9  ;;  %5570 = vst [vmem:[#allocation75_spill] sm:$0xff] %v4396_v10 }
 0x3ef   :  { %1591 = vmatpush2.bf16.msra.mxu0 %v4381_v11  ;;  %1632 = vmatpush2.bf16.msra.mxu1 %v4384_v12 }
 0x3f0   :  { %1592 = vmatprep.subr.bf16.mxu0 %v4387_v6  ;;  %1633 = vmatprep.subr.bf16.mxu1 %v4390_v7 }
 0x3f3   :  { %1593 = vmatpush2.bf16.msra.mxu0 %v4393_v9  ;;  %1634 = vmatpush2.bf16.msra.mxu1 %v4396_v10 }
 0x3f4   :  { %1674 = vmatprep.subr.bf16.mxu0 %v4131_v0  ;;  %1715 = vmatprep.subr.bf16.mxu1 %v4134_v60 }
 0x456   :  { %v1346_v12 = vpop.f32.mrf.mxu0  ;;  %v1387_v11 = vpop.f32.mrf.mxu1 }
 0x457   :  { %v1394_v6 = vadd.f32 %v1346_v12, %v5511_v23  ;;  %v1396_v43 = vadd.f32 %v1387_v11, %v5514_v41 }
 0x458   :  { %v1348_v5 = vpop.f32.mrf.mxu0  ;;  %v1389_v4 = vpop.f32.mrf.mxu1 }
 0x459   :  { %v2804_v48 = vmul.f32 -1.442695, %v1394_v6  ;;  %v1395_v7 = vadd.f32 %v1348_v5, %v5512_v28  ;;  %v1397_v0 = vadd.f32 %v1389_v4, %v5513_v37 }
 0x45a   :  { %v1350_v47 = vpop.f32.mrf.mxu0  ;;  %v1391_v46 = vpop.f32.mrf.mxu1 }
 0x45b   :  { %3072 = vpow2.f32 %v2804_v48  ;;  %v2805_v9 = vmul.f32 -1.442695, %v1395_v7  ;;  %v2806_v10 = vmul.f32 -1.442695, %v1397_v0 }
 0x45c   :  { %v1351_v45 = vpop.f32.mrf.mxu0  ;;  %v1392_v44 = vpop.f32.mrf.mxu1 }
 0x45d   :  { %3074 = vpow2.f32 %v2805_v9 }
 0x45e   :  { %3076 = vpow2.f32 %v2806_v10 }
 0x468   :  { %v3073_v60 = vpop.eup %3072 }
 0x469   :  { %v1401_v42 = vadd.f32 1.0, %v3073_v60 }
 0x46a   :  { %v3075_v12 = vpop.eup %3074 }
 0x46b   :  { %3078 = vrcp.f32 %v1401_v42  ;;  %v1407_v6 = vadd.f32 1.0, %v3075_v12  ;;  %v3077_v48 = vpop.eup %3076  ;;  %v1423_v12 = vld [vmem:[#allocation4 + $0x18] sm:$0xff] }
 0x46c   :  { %3080 = vtanh.f32 %v1396_v43  ;;  %v1414_v37 = vadd.f32 1.0, %v3077_v48 }
 0x46d   :  { %3082 = vrcp.f32 %v1407_v6 }
 0x46e   :  { %3084 = vrcp.f32 %v1414_v37 }
 0x476   :  { %v1458_v47 = vpop.f32.mrf.mxu0  ;;  %v1499_v46 = vpop.f32.mrf.mxu1 }
 0x478   :  { %v3079_v5 = vpop.eup %3078  ;;  %v1460_v45 = vpop.f32.mrf.mxu0 }
 0x479   :  { %v1501_v44 = vpop.f32.mrf.mxu1  ;;  %v3081_v7 = vpop.eup %3080  ;;  %v1510_v9 = vcombine.low %v1458_v47, %v1460_v45 }
 0x47a   :  { %v1511_v4 = vcombine.low %v1499_v46, %v1501_v44  ;;  %v3083_v0 = vpop.eup %3082  ;;  %v1462_v28 = vpop.f32.mrf.mxu0  ;;  %v1418_v60 = vmul.f32 %v3081_v7, %v3079_v5 }
 0x47b   :  { %v1503_v11 = vpop.f32.mrf.mxu1  ;;  %v1417_v10 = vmul.f32 %v3083_v0, %v4144_v26  ;;  %v1518_v42 = vrot.slane %v1510_v9, %v3866_v63  ;;  %v3085_v5 = vpop.eup %3084 }
 0x47c   :  { %v1525_v43 = vrot.slane %v1511_v4, %v3866_v63  ;;  %v1463_v6 = vpop.f32.mrf.mxu0 }
 0x47d   :  { %v1504_v41 = vpop.f32.mrf.mxu1  ;;  %v4408_v40 = vadd.f32 %v1418_v60, %v1417_v10 }
 0x47e   :  { %v1526_v23 = vcombine.low %v1518_v42, %v1525_v43 }
 0x47f   :  { %3086 = vtanh.f32 %v4408_v40 }
 0x480   :  { %v1528_v47 = vadd.f32 %v1526_v23, %v1423_v12 }
 0x482   :  { %v2807_v46 = vmul.f32 -1.442695, %v1528_v47  ;;  %v1536_v28 = vrot.slane %v1528_v47, 2  ;;  %v1547_v26 = vrot.slane %v1528_v47, 6  ;;  %v1544_v41 = vrot.slane %v1528_v47, 4 }
 0x484   :  { %3088 = vpow2.f32 %v2807_v46  ;;  %v2808_v48 = vmul.f32 -1.442695, %v1536_v28  ;;  %v2809_v7 = vmul.f32 -1.442695, %v1547_v26 }
 0x486   :  { %3090 = vpow2.f32 %v2808_v48 }
 0x487   :  { %3092 = vpow2.f32 %v2809_v7  ;;  %v5593_v7 = vld [vmem:[#allocation41_spill] sm:$0xff] }
 0x48c   :  { %v3087_v45 = vpop.eup %3086 }
 0x48d   :  { %v1421_v44 = vmul.f32 %v3087_v45, %v3085_v5  ;;  %v5590_v5 = vld [vmem:[#allocation38_spill] sm:$0xff]  ;;  %v5591_v45 = vld [vmem:[#allocation39_spill] sm:$0xff] }
 0x48f   :  { %v1561_v9 = vpack.c.bf16 %v1421_v44, %v1421_v44  ;;  %v5592_v44 = vld [vmem:[#allocation40_spill] sm:$0xff] }
 0x491   :  { %v3089_v4 = vpop.eup %3088  ;;  %1594 = vmatprep.mubr.bf16.mxu0 %v1561_v9  ;;  %1635 = vmatprep.mubr.bf16.mxu1 %v1561_v9  ;;  %v5594_v9 = vld [vmem:[#allocation42_spill] sm:$0xff] }
 0x492   :  { %v1532_v0 = vadd.f32 1.0, %v3089_v4  ;;  %v5595_v4 = vld [vmem:[#allocation43_spill] sm:$0xff] }
 0x493   :  { %v3091_v37 = vpop.eup %3090 }
 0x494   :  { %3094 = vrcp.f32 %v1532_v0  ;;  %v1541_v23 = vadd.f32 1.0, %v3091_v37  ;;  %v3093_v11 = vpop.eup %3092  ;;  %v5597_v0 = vld [vmem:[#allocation45_spill] sm:$0xff]  ;;  %v5598_v37 = vld [vmem:[#allocation46_spill] sm:$0xff] }
 0x495   :  { %3096 = vtanh.f32 %v1544_v41  ;;  %v1552_v43 = vadd.f32 1.0, %v3093_v11  ;;  %v5596_v41 = vld [vmem:[#allocation44_spill] sm:$0xff] }
 0x496   :  { %3098 = vrcp.f32 %v1541_v23  ;;  %v5599_v23 = vld [vmem:[#allocation47_spill] sm:$0xff]  ;;  %v5600_v11 = vld [vmem:[#allocation48_spill] sm:$0xff] }
 0x497   :  { %3100 = vrcp.f32 %v1552_v43  ;;  %v5604_v43 = vld [vmem:[#allocation52_spill] sm:$0xff] }
 0x4a1   :  { %v3095_v60 = vpop.eup %3094 }
 0x4a2   :  { %v3097_v10 = vpop.eup %3096 }
 0x4a3   :  { %v3099_v42 = vpop.eup %3098  ;;  %v1556_v6 = vmul.f32 %v3097_v10, %v3095_v60  ;;  %v5601_v60 = vld [vmem:[#allocation49_spill] sm:$0xff]  ;;  %v5602_v10 = vld [vmem:[#allocation50_spill] sm:$0xff] }
 0x4a4   :  { %v1555_v12 = vmul.f32 %v3099_v42, %v4148_v8  ;;  %v3101_v47 = vpop.eup %3100  ;;  %v5589_v8 = vld [vmem:[#allocation37_spill] sm:$0xff]  ;;  %v5603_v42 = vld [vmem:[#allocation51_spill] sm:$0xff] }
 0x4a6   :  { %v4412_v46 = vadd.f32 %v1556_v6, %v1555_v12  ;;  %v5605_v12 = vld [vmem:[#allocation53_spill] sm:$0xff]  ;;  %v5606_v6 = vld [vmem:[#allocation54_spill] sm:$0xff] }
 0x4a8   :  { %3102 = vtanh.f32 %v4412_v46 }
 0x4b5   :  { %v3103_v28 = vpop.eup %3102 }
 0x4b6   :  { %v1559_v48 = vmul.f32 %v3103_v28, %v3101_v47  ;;  %v5607_v47 = vld [vmem:[#allocation55_spill] sm:$0xff]  ;;  %v5608_v28 = vld [vmem:[#allocation56_spill] sm:$0xff] }
 0x4b8   :  { %v1560_v26 = vpack.c.bf16 %v1559_v48, %v1559_v48  ;;  %v5609_v48 = vld [vmem:[#allocation57_spill] sm:$0xff] }
 0x4ba   :  { %1595 = vmatmul.mubr.bf16.vlgmr.msra.gmra.mxu0 %v1560_v26  ;;  %1636 = vmatmul.mubr.bf16.vlgmr.msra.gmra.mxu1 %v1560_v26 }
 0x4bb   :  { %1675 = vmatpush1.bf16.msra.mxu0 %v3999_v59  ;;  %1716 = vmatpush1.bf16.msra.mxu1 %v4002_v50  ;;  %v5571_v59 = vld [vmem:[#allocation22_spill] sm:$0xff]  ;;  %v5572_v50 = vld [vmem:[#allocation23_spill] sm:$0xff] }
 0x4bc   :  { %1676 = vmatprep.subr.bf16.mxu0 %v4005_v61  ;;  %1717 = vmatprep.subr.bf16.mxu1 %v4008_v51  ;;  %v5573_v61 = vld [vmem:[#allocation24_spill] sm:$0xff]  ;;  %v5574_v51 = vld [vmem:[#allocation25_spill] sm:$0xff] }
 0x4bd   :  { %1706 = vmatprep.mubr.bf16.mxu0 %v5411_v35  ;;  %1747 = vmatprep.mubr.bf16.mxu1 %v5411_v35 }
 0x4bf   :  { %1677 = vmatpush1.bf16.msra.mxu0 %v4013_v53  ;;  %1718 = vmatpush1.bf16.msra.mxu1 %v4016_v21  ;;  %v5575_v53 = vld [vmem:[#allocation26_spill] sm:$0xff]  ;;  %v5576_v21 = vld [vmem:[#allocation27_spill] sm:$0xff] }
 0x4c0   :  { %1678 = vmatprep.subr.bf16.mxu0 %v4019_v49  ;;  %1719 = vmatprep.subr.bf16.mxu1 %v4022_v58  ;;  %v5577_v49 = vld [vmem:[#allocation14_spill] sm:$0xff]  ;;  %v5578_v58 = vld [vmem:[#allocation15_spill] sm:$0xff] }
 0x4c3   :  { %1679 = vmatpush1.bf16.msra.mxu0 %v4025_v19  ;;  %1720 = vmatpush1.bf16.msra.mxu1 %v4028_v2  ;;  %v5579_v19 = vld [vmem:[#allocation67_spill] sm:$0xff]  ;;  %v5580_v2 = vld [vmem:[#allocation28_spill] sm:$0xff] }
 0x4c4   :  { %1680 = vmatprep.subr.bf16.mxu0 %v4031_v1  ;;  %1721 = vmatprep.subr.bf16.mxu1 %v4034_v18  ;;  %v5581_v1 = vld [vmem:[#allocation29_spill] sm:$0xff]  ;;  %v5582_v18 = vld [vmem:[#allocation30_spill] sm:$0xff] }
 0x4c7   :  { %1681 = vmatpush1.bf16.msra.mxu0 %v4037_v34  ;;  %1722 = vmatpush1.bf16.msra.mxu1 %v4040_v3  ;;  %v5583_v34 = vld [vmem:[#allocation31_spill] sm:$0xff]  ;;  %v5584_v3 = vld [vmem:[#allocation32_spill] sm:$0xff] }
 0x4c8   :  { %1682 = vmatprep.subr.bf16.mxu0 %v4043_v20  ;;  %1723 = vmatprep.subr.bf16.mxu1 %v4046_v52  ;;  %v5585_v20 = vld [vmem:[#allocation33_spill] sm:$0xff]  ;;  %v5586_v52 = vld [vmem:[#allocation34_spill] sm:$0xff] }
 0x4cb   :  { %1683 = vmatpush1.bf16.msra.mxu0 %v4049_v62  ;;  %1724 = vmatpush1.bf16.msra.mxu1 %v4052_v55  ;;  %v5587_v62 = vld [vmem:[#allocation35_spill] sm:$0xff]  ;;  %v5588_v55 = vld [vmem:[#allocation36_spill] sm:$0xff] }
 0x4cc   :  { %1684 = vmatprep.subr.bf16.mxu0 %v4171_v56  ;;  %1725 = vmatprep.subr.bf16.mxu1 %v4174_v13 }
 0x4cf   :  { %1685 = vmatpush1.bf16.msra.mxu0 %v4177_v14  ;;  %1726 = vmatpush1.bf16.msra.mxu1 %v4180_v15 }
 0x4d0   :  { %1686 = vmatprep.subr.bf16.mxu0 %v4183_v57  ;;  %1727 = vmatprep.subr.bf16.mxu1 %v4186_v16 }
 0x4d3   :  { %1687 = vmatpush1.bf16.msra.mxu0 %v4189_v54  ;;  %1728 = vmatpush1.bf16.msra.mxu1 %v4192_v22 }
 0x4d4   :  { %1688 = vmatprep.subr.bf16.mxu0 %v4195_v24  ;;  %1729 = vmatprep.subr.bf16.mxu1 %v4198_v25 }
 0x4d7   :  { %1689 = vmatpush1.bf16.msra.mxu0 %v4201_v27  ;;  %1730 = vmatpush1.bf16.msra.mxu1 %v4204_v29 }
 0x4d8   :  { %1812 = vmatprep.subr.bf16.mxu0 %v4207_v30  ;;  %1853 = vmatprep.subr.bf16.mxu1 %v4210_v31 }
 0x4da   :  { %1707 = vmatmul.mubr.bf16.vlgmr.msra.gmra.mxu0 %v1560_v26  ;;  %1748 = vmatmul.mubr.bf16.vlgmr.msra.gmra.mxu1 %v1560_v26  ;;  %v5610_v26 = vld [vmem:[#allocation58_spill] sm:$0xff] }
 0x4db   :  { %1813 = vmatpush1.bf16.msra.mxu0 %v4213_v17  ;;  %1854 = vmatpush1.bf16.msra.mxu1 %v4216_v32 }
 0x4dc   :  { %1814 = vmatprep.subr.bf16.mxu0 %v4219_v33  ;;  %1855 = vmatprep.subr.bf16.mxu1 %v4222_v36 }
 0x4df   :  { %1815 = vmatpush1.bf16.msra.mxu0 %v4225_v38  ;;  %1856 = vmatpush1.bf16.msra.mxu1 %v4228_v39 }
 0x4e0   :  { %1816 = vmatprep.subr.bf16.mxu0 %v5571_v59  ;;  %1857 = vmatprep.subr.bf16.mxu1 %v5572_v50 }
 0x4e3   :  { %1817 = vmatpush1.bf16.msra.mxu0 %v5573_v61  ;;  %1858 = vmatpush1.bf16.msra.mxu1 %v5574_v51 }
 0x4e4   :  { %1818 = vmatprep.subr.bf16.mxu0 %v5575_v53  ;;  %1859 = vmatprep.subr.bf16.mxu1 %v5576_v21 }
 0x4e7   :  { %1819 = vmatpush1.bf16.msra.mxu0 %v5577_v49  ;;  %1860 = vmatpush1.bf16.msra.mxu1 %v5578_v58 }
 0x4e8   :  { %1820 = vmatprep.subr.bf16.mxu0 %v5579_v19  ;;  %1861 = vmatprep.subr.bf16.mxu1 %v5580_v2 }
 0x4eb   :  { %1821 = vmatpush1.bf16.msra.mxu0 %v5581_v1  ;;  %1862 = vmatpush1.bf16.msra.mxu1 %v5582_v18 }
 0x4ec   :  { %1822 = vmatprep.subr.bf16.mxu0 %v5583_v34  ;;  %1863 = vmatprep.subr.bf16.mxu1 %v5584_v3 }
 0x4ef   :  { %1823 = vmatpush1.bf16.msra.mxu0 %v5585_v20  ;;  %1864 = vmatpush1.bf16.msra.mxu1 %v5586_v52 }
 0x4f0   :  { %1824 = vmatprep.subr.bf16.mxu0 %v5587_v62  ;;  %1865 = vmatprep.subr.bf16.mxu1 %v5588_v55 }
 0x4f3   :  { %1825 = vmatpush1.bf16.msra.mxu0 %v5589_v8  ;;  %1866 = vmatpush1.bf16.msra.mxu1 %v5590_v5 }
 0x4f4   :  { %1826 = vmatprep.subr.bf16.mxu0 %v5591_v45  ;;  %1867 = vmatprep.subr.bf16.mxu1 %v5592_v44  ;;  %v5632_v44 = vld [vmem:[#allocation19_spill] sm:$0xff] }
 0x4f7   :  { %1827 = vmatpush1.bf16.msra.mxu0 %v5593_v7  ;;  %1868 = vmatpush1.bf16.msra.mxu1 %v5594_v9 }
 0x4f8   :  { %1828 = vmatprep.subr.bf16.mxu0 %v5595_v4  ;;  %1869 = vmatprep.subr.bf16.mxu1 %v5596_v41 }
 0x4fb   :  { %1829 = vmatpush2.bf16.msra.mxu0 %v5597_v0  ;;  %1870 = vmatpush2.bf16.msra.mxu1 %v5598_v37 }
 0x4fc   :  { %1830 = vmatprep.subr.bf16.mxu0 %v5599_v23  ;;  %1871 = vmatprep.subr.bf16.mxu1 %v5600_v11  ;;  %v5611_v11 = vld [vmem:[#allocation59_spill] sm:$0xff]  ;;  %v5629_v23 = vld [vmem:[#allocation16_spill] sm:$0xff] }
 0x4ff   :  { %1831 = vmatpush2.bf16.msra.mxu0 %v5601_v60  ;;  %1872 = vmatpush2.bf16.msra.mxu1 %v5602_v10  ;;  %v5612_v60 = vld [vmem:[#allocation60_spill] sm:$0xff]  ;;  %v5613_v10 = vld [vmem:[#allocation61_spill] sm:$0xff] }
 0x500   :  { %1832 = vmatprep.subr.bf16.mxu0 %v5603_v42  ;;  %1873 = vmatprep.subr.bf16.mxu1 %v5604_v43  ;;  %v5614_v42 = vld [vmem:[#allocation62_spill] sm:$0xff]  ;;  %v5615_v43 = vld [vmem:[#allocation63_spill] sm:$0xff] }
 0x503   :  { %1833 = vmatpush2.bf16.msra.mxu0 %v5605_v12  ;;  %1874 = vmatpush2.bf16.msra.mxu1 %v5606_v6  ;;  %v5616_v12 = vld [vmem:[#allocation64_spill] sm:$0xff]  ;;  %v5617_v6 = vld [vmem:[#allocation65_spill] sm:$0xff] }
 0x504   :  { %1834 = vmatprep.subr.bf16.mxu0 %v5607_v47  ;;  %1875 = vmatprep.subr.bf16.mxu1 %v5608_v28  ;;  %v5618_v47 = vld [vmem:[#allocation66_spill] sm:$0xff]  ;;  %v5619_v28 = vld [vmem:[#allocation68_spill] sm:$0xff] }
 0x507   :  { %1835 = vmatpush2.bf16.msra.mxu0 %v5609_v48  ;;  %1876 = vmatpush2.bf16.msra.mxu1 %v5610_v26  ;;  %v5620_v48 = vld [vmem:[#allocation69_spill] sm:$0xff]  ;;  %v5621_v26 = vld [vmem:[#allocation70_spill] sm:$0xff] }
 0x508   :  { %1836 = vmatprep.subr.bf16.mxu0 %v5611_v11  ;;  %1877 = vmatprep.subr.bf16.mxu1 %v5612_v60  ;;  %v5622_v11 = vld [vmem:[#allocation71_spill] sm:$0xff]  ;;  %v5623_v60 = vld [vmem:[#allocation72_spill] sm:$0xff] }
 0x50b   :  { %1837 = vmatpush2.bf16.msra.mxu0 %v5613_v10  ;;  %1878 = vmatpush2.bf16.msra.mxu1 %v5614_v42  ;;  %v5624_v10 = vld [vmem:[#allocation73_spill] sm:$0xff]  ;;  %v5625_v42 = vld [vmem:[#allocation74_spill] sm:$0xff] }
 0x50c   :  { %1838 = vmatprep.subr.bf16.mxu0 %v5615_v43  ;;  %1879 = vmatprep.subr.bf16.mxu1 %v5616_v12  ;;  %v5626_v43 = vld [vmem:[#allocation75_spill] sm:$0xff]  ;;  %v5627_v12 = vld [vmem:[#allocation20_spill] sm:$0xff] }
 0x50f   :  { %1839 = vmatpush2.bf16.msra.mxu0 %v5617_v6  ;;  %1880 = vmatpush2.bf16.msra.mxu1 %v5618_v47  ;;  %v5628_v6 = vld [vmem:[#allocation21_spill] sm:$0xff] }
 0x510   :  { %1840 = vmatprep.subr.bf16.mxu0 %v5619_v28  ;;  %1881 = vmatprep.subr.bf16.mxu1 %v5620_v48 }
 0x513   :  { %1841 = vmatpush2.bf16.msra.mxu0 %v5621_v26  ;;  %1882 = vmatpush2.bf16.msra.mxu1 %v5622_v11  ;;  %v5630_v11 = vld [vmem:[#allocation17_spill] sm:$0xff] }
 0x514   :  { %1842 = vmatprep.subr.bf16.mxu0 %v5623_v60  ;;  %1883 = vmatprep.subr.bf16.mxu1 %v5624_v10 }
 0x517   :  { %1843 = vmatpush2.bf16.msra.mxu0 %v5625_v42  ;;  %1884 = vmatpush2.bf16.msra.mxu1 %v5626_v43  ;;  %v5631_v43 = vld [vmem:[#allocation18_spill] sm:$0xff] }
 0x518   :  { %1924 = vmatprep.subr.bf16.mxu0 %v5627_v12  ;;  %1965 = vmatprep.subr.bf16.mxu1 %v5628_v6 }
 0x57a   :  { %v1596_v47 = vpop.f32.mrf.mxu0  ;;  %v1637_v28 = vpop.f32.mrf.mxu1 }
 0x57b   :  { %v1644_v48 = vadd.f32 %v1596_v47, %v5629_v23  ;;  %v1646_v45 = vadd.f32 %v1637_v28, %v5632_v44 }
 0x57c   :  { %v1598_v37 = vpop.f32.mrf.mxu0  ;;  %v1639_v26 = vpop.f32.mrf.mxu1 }
 0x57d   :  { %v2810_v0 = vmul.f32 -1.442695, %v1644_v48  ;;  %v1645_v41 = vadd.f32 %v1598_v37, %v5630_v11  ;;  %v1647_v12 = vadd.f32 %v1639_v26, %v5631_v43 }
 0x57e   :  { %v1600_v60 = vpop.f32.mrf.mxu0  ;;  %v1641_v4 = vpop.f32.mrf.mxu1 }
 0x57f   :  { %3104 = vpow2.f32 %v2810_v0  ;;  %v2811_v10 = vmul.f32 -1.442695, %v1645_v41  ;;  %v2812_v7 = vmul.f32 -1.442695, %v1647_v12 }
 0x580   :  { %v1601_v42 = vpop.f32.mrf.mxu0  ;;  %v1642_v9 = vpop.f32.mrf.mxu1 }
 0x581   :  { %3106 = vpow2.f32 %v2811_v10 }
 0x582   :  { %3108 = vpow2.f32 %v2812_v7 }
 0x58c   :  { %v3105_v6 = vpop.eup %3104 }
 0x58d   :  { %v1651_v5 = vadd.f32 1.0, %v3105_v6 }
 0x58e   :  { %v3107_v47 = vpop.eup %3106 }
 0x58f   :  { %3110 = vrcp.f32 %v1651_v5  ;;  %v1657_v48 = vadd.f32 1.0, %v3107_v47  ;;  %v3109_v0 = vpop.eup %3108  ;;  %v1673_v47 = vld [vmem:[#allocation4 + $0x20] sm:$0xff] }
 0x590   :  { %3112 = vtanh.f32 %v1646_v45  ;;  %v1664_v43 = vadd.f32 1.0, %v3109_v0 }
 0x591   :  { %3114 = vrcp.f32 %v1657_v48 }
 0x592   :  { %3116 = vrcp.f32 %v1664_v43 }
 0x59a   :  { %v1708_v37 = vpop.f32.mrf.mxu0  ;;  %v1749_v4 = vpop.f32.mrf.mxu1 }
 0x59c   :  { %v3111_v41 = vpop.eup %3110  ;;  %v1710_v60 = vpop.f32.mrf.mxu0 }
 0x59d   :  { %v1751_v9 = vpop.f32.mrf.mxu1  ;;  %v3113_v10 = vpop.eup %3112  ;;  %v1760_v42 = vcombine.low %v1708_v37, %v1710_v60 }
 0x59e   :  { %v1761_v26 = vcombine.low %v1749_v4, %v1751_v9  ;;  %v3115_v12 = vpop.eup %3114  ;;  %v1712_v11 = vpop.f32.mrf.mxu0  ;;  %v1668_v6 = vmul.f32 %v3113_v10, %v3111_v41 }
 0x59f   :  { %v1753_v28 = vpop.f32.mrf.mxu1  ;;  %v1667_v7 = vmul.f32 %v3115_v12, %v4408_v40  ;;  %v1768_v5 = vrot.slane %v1760_v42, %v3866_v63  ;;  %v3117_v41 = vpop.eup %3116 }
 0x5a0   :  { %v1775_v45 = vrot.slane %v1761_v26, %v3866_v63  ;;  %v1713_v48 = vpop.f32.mrf.mxu0 }
 0x5a1   :  { %v1754_v44 = vpop.f32.mrf.mxu1  ;;  %v4520_v8 = vadd.f32 %v1668_v6, %v1667_v7 }
 0x5a2   :  { %v1776_v23 = vcombine.low %v1768_v5, %v1775_v45 }
 0x5a3   :  { %3118 = vtanh.f32 %v4520_v8 }
 0x5a4   :  { %v1778_v37 = vadd.f32 %v1776_v23, %v1673_v47 }
 0x5a6   :  { %v2813_v4 = vmul.f32 -1.442695, %v1778_v37  ;;  %v1786_v11 = vrot.slane %v1778_v37, 2  ;;  %v1797_v40 = vrot.slane %v1778_v37, 6  ;;  %v1794_v44 = vrot.slane %v1778_v37, 4 }
 0x5a8   :  { %3120 = vpow2.f32 %v2813_v4  ;;  %v2814_v0 = vmul.f32 -1.442695, %v1786_v11  ;;  %v2815_v10 = vmul.f32 -1.442695, %v1797_v40 }
 0x5aa   :  { %3122 = vpow2.f32 %v2814_v0 }
 0x5ab   :  { %3124 = vpow2.f32 %v2815_v10  ;;  %v4541_v10 = vld [vmem:[#allocation7 + $0xc0] ss:$16 sps:$4 sm:$0xff]  }
 0x5b0   :  { %v3119_v60 = vpop.eup %3118 }
 0x5b1   :  { %v1671_v9 = vmul.f32 %v3119_v60, %v3117_v41  ;;  %v4527_v41 = vld [vmem:[#allocation7 + $0xe0] ss:$16 sps:$4 sm:$0xff]   ;;  %v4530_v60 = vld [vmem:[#allocation7 + $0xe8] ss:$16 sps:$4 sm:$0xff]  }
 0x5b3   :  { %v1811_v42 = vpack.c.bf16 %v1671_v9, %v1671_v9  ;;  %v4536_v9 = vld [vmem:[#allocation7 + $0xcc] ss:$16 sps:$4 sm:$0xff]  }
 0x5b5   :  { %v3121_v26 = vpop.eup %3120  ;;  %1844 = vmatprep.mubr.bf16.mxu0 %v1811_v42  ;;  %1885 = vmatprep.mubr.bf16.mxu1 %v1811_v42  ;;  %v4544_v42 = vld [vmem:[#allocation7 + $0xc8] ss:$16 sps:$4 sm:$0xff]  }
 0x5b6   :  { %v1782_v12 = vadd.f32 1.0, %v3121_v26  ;;  %v4547_v26 = vld [vmem:[#allocation7 + $0xa4] ss:$16 sps:$4 sm:$0xff]  }
 0x5b7   :  { %v3123_v43 = vpop.eup %3122 }
 0x5b8   :  { %3126 = vrcp.f32 %v1782_v12  ;;  %v1791_v23 = vadd.f32 1.0, %v3123_v43  ;;  %v3125_v28 = vpop.eup %3124  ;;  %v4553_v12 = vld [vmem:[#allocation7 + $0xa0] ss:$16 sps:$4 sm:$0xff]   ;;  %v4556_v43 = vld [vmem:[#allocation7 + $0xa8] ss:$16 sps:$4 sm:$0xff]  }
 0x5b9   :  { %3128 = vtanh.f32 %v1794_v44  ;;  %v1802_v45 = vadd.f32 1.0, %v3125_v28  ;;  %v4550_v44 = vld [vmem:[#allocation7 + $0xac] ss:$16 sps:$4 sm:$0xff]  }
 0x5ba   :  { %3130 = vrcp.f32 %v1791_v23  ;;  %v4559_v23 = vld [vmem:[#allocation7 + $0x84] ss:$16 sps:$4 sm:$0xff]   ;;  %v4562_v28 = vld [vmem:[#allocation7 + $0x8c] ss:$16 sps:$4 sm:$0xff]  }
 0x5bb   :  { %3132 = vrcp.f32 %v1802_v45  ;;  %v4574_v45 = vld [vmem:[#allocation7 + $0x6c] ss:$16 sps:$4 sm:$0xff]  }
 0x5c5   :  { %v3127_v6 = vpop.eup %3126 }
 0x5c6   :  { %v3129_v7 = vpop.eup %3128 }
 0x5c7   :  { %v3131_v5 = vpop.eup %3130  ;;  %v1806_v48 = vmul.f32 %v3129_v7, %v3127_v6  ;;  %v4565_v6 = vld [vmem:[#allocation7 + $0x80] ss:$16 sps:$4 sm:$0xff]   ;;  %v4568_v7 = vld [vmem:[#allocation7 + $0x88] ss:$16 sps:$4 sm:$0xff]  }
 0x5c8   :  { %v1805_v47 = vmul.f32 %v3131_v5, %v4412_v46  ;;  %v3133_v37 = vpop.eup %3132  ;;  %v4533_v46 = vld [vmem:[#allocation7 + $0xc4] ss:$16 sps:$4 sm:$0xff]  }
 0x5c9   :  { %v4571_v5 = vld [vmem:[#allocation7 + $0x64] ss:$16 sps:$4 sm:$0xff]  }
 0x5ca   :  { %v4524_v4 = vadd.f32 %v1806_v48, %v1805_v47  ;;  %v4577_v47 = vld [vmem:[#allocation7 + $0x60] ss:$16 sps:$4 sm:$0xff]   ;;  %v4580_v48 = vld [vmem:[#allocation7 + $0x68] ss:$16 sps:$4 sm:$0xff]  }
 0x5cc   :  { %3134 = vtanh.f32 %v4524_v4 }
 0x5d9   :  { %v3135_v11 = vpop.eup %3134 }
 0x5da   :  { %v1809_v0 = vmul.f32 %v3135_v11, %v3133_v37  ;;  %v4659_v37 = vld [vmem:[#allocation7 + $0xe4] ss:$16 sps:$4 sm:$0xff]   ;;  %v4662_v11 = vld [vmem:[#allocation7 + $0xec] ss:$16 sps:$4 sm:$0xff]  }
 0x5dc   :  { %v1810_v40 = vpack.c.bf16 %v1809_v0, %v1809_v0 }
 0x5de   :  { %1845 = vmatmul.mubr.bf16.vlgmr.msra.gmra.mxu0 %v1810_v40  ;;  %1886 = vmatmul.mubr.bf16.vlgmr.msra.gmra.mxu1 %v1810_v40 }
 0x5df   :  { %1925 = vmatpush1.bf16.msra.mxu0 %v4527_v41  ;;  %1966 = vmatpush1.bf16.msra.mxu1 %v4530_v60 }
 0x5e0   :  { %1926 = vmatprep.subr.bf16.mxu0 %v4533_v46  ;;  %1967 = vmatprep.subr.bf16.mxu1 %v4536_v9 }
 0x5e1   :  { %1956 = vmatprep.mubr.bf16.mxu0 %v5411_v35  ;;  %1997 = vmatprep.mubr.bf16.mxu1 %v5411_v35 }
 0x5e3   :  { %1927 = vmatpush1.bf16.msra.mxu0 %v4541_v10  ;;  %1968 = vmatpush1.bf16.msra.mxu1 %v4544_v42 }
 0x5e4   :  { %1928 = vmatprep.subr.bf16.mxu0 %v4547_v26  ;;  %1969 = vmatprep.subr.bf16.mxu1 %v4550_v44 }
 0x5e7   :  { %1929 = vmatpush1.bf16.msra.mxu0 %v4553_v12  ;;  %1970 = vmatpush1.bf16.msra.mxu1 %v4556_v43 }
 0x5e8   :  { %1930 = vmatprep.subr.bf16.mxu0 %v4559_v23  ;;  %1971 = vmatprep.subr.bf16.mxu1 %v4562_v28 }
 0x5eb   :  { %1931 = vmatpush1.bf16.msra.mxu0 %v4565_v6  ;;  %1972 = vmatpush1.bf16.msra.mxu1 %v4568_v7 }
 0x5ec   :  { %1932 = vmatprep.subr.bf16.mxu0 %v4571_v5  ;;  %1973 = vmatprep.subr.bf16.mxu1 %v4574_v45 }
 0x5ef   :  { %1933 = vmatpush1.bf16.msra.mxu0 %v4577_v47  ;;  %1974 = vmatpush1.bf16.msra.mxu1 %v4580_v48 }
 0x5f0   :  { %1934 = vmatprep.subr.bf16.mxu0 %v4171_v56  ;;  %1975 = vmatprep.subr.bf16.mxu1 %v4174_v13  ;;  %v5633_v56 = vld [vmem:[#allocation37_spill] sm:$0xff]  ;;  %v5634_v13 = vld [vmem:[#allocation38_spill] sm:$0xff] }
 0x5f3   :  { %1935 = vmatpush1.bf16.msra.mxu0 %v4177_v14  ;;  %1976 = vmatpush1.bf16.msra.mxu1 %v4180_v15  ;;  %v5635_v14 = vld [vmem:[#allocation39_spill] sm:$0xff]  ;;  %v5636_v15 = vld [vmem:[#allocation40_spill] sm:$0xff] }
 0x5f4   :  { %1936 = vmatprep.subr.bf16.mxu0 %v4183_v57  ;;  %1977 = vmatprep.subr.bf16.mxu1 %v4186_v16  ;;  %v5637_v57 = vld [vmem:[#allocation41_spill] sm:$0xff]  ;;  %v5638_v16 = vld [vmem:[#allocation42_spill] sm:$0xff] }
 0x5f7   :  { %1937 = vmatpush1.bf16.msra.mxu0 %v4189_v54  ;;  %1978 = vmatpush1.bf16.msra.mxu1 %v4192_v22  ;;  %v5639_v54 = vld [vmem:[#allocation43_spill] sm:$0xff]  ;;  %v5640_v22 = vld [vmem:[#allocation44_spill] sm:$0xff] }
 0x5f8   :  { %1938 = vmatprep.subr.bf16.mxu0 %v4195_v24  ;;  %1979 = vmatprep.subr.bf16.mxu1 %v4198_v25  ;;  %v5641_v24 = vld [vmem:[#allocation45_spill] sm:$0xff]  ;;  %v5642_v25 = vld [vmem:[#allocation46_spill] sm:$0xff] }
 0x5fb   :  { %1939 = vmatpush1.bf16.msra.mxu0 %v4201_v27  ;;  %1980 = vmatpush1.bf16.msra.mxu1 %v4204_v29  ;;  %v5643_v27 = vld [vmem:[#allocation47_spill] sm:$0xff]  ;;  %v5644_v29 = vld [vmem:[#allocation48_spill] sm:$0xff] }
 0x5fc   :  { %2062 = vmatprep.subr.bf16.mxu0 %v4207_v30  ;;  %2103 = vmatprep.subr.bf16.mxu1 %v4210_v31  ;;  %v5645_v30 = vld [vmem:[#allocation49_spill] sm:$0xff]  ;;  %v5646_v31 = vld [vmem:[#allocation50_spill] sm:$0xff] }
 0x5fe   :  { %1957 = vmatmul.mubr.bf16.vlgmr.msra.gmra.mxu0 %v1810_v40  ;;  %1998 = vmatmul.mubr.bf16.vlgmr.msra.gmra.mxu1 %v1810_v40 }
 0x5ff   :  { %2063 = vmatpush1.bf16.msra.mxu0 %v4213_v17  ;;  %2104 = vmatpush1.bf16.msra.mxu1 %v4216_v32  ;;  %v5647_v17 = vld [vmem:[#allocation51_spill] sm:$0xff]  ;;  %v5648_v32 = vld [vmem:[#allocation52_spill] sm:$0xff] }
 0x600   :  { %2064 = vmatprep.subr.bf16.mxu0 %v4219_v33  ;;  %2105 = vmatprep.subr.bf16.mxu1 %v4222_v36  ;;  %v5649_v33 = vld [vmem:[#allocation53_spill] sm:$0xff]  ;;  %v5650_v36 = vld [vmem:[#allocation54_spill] sm:$0xff] }
 0x603   :  { %2065 = vmatpush1.bf16.msra.mxu0 %v4225_v38  ;;  %2106 = vmatpush1.bf16.msra.mxu1 %v4228_v39  ;;  %v5651_v38 = vld [vmem:[#allocation55_spill] sm:$0xff]  ;;  %v5652_v39 = vld [vmem:[#allocation56_spill] sm:$0xff] }
 0x604   :  { %2066 = vmatprep.subr.bf16.mxu0 %v5571_v59  ;;  %2107 = vmatprep.subr.bf16.mxu1 %v5572_v50  ;;  %v5653_v59 = vld [vmem:[#allocation57_spill] sm:$0xff]  ;;  %v5654_v50 = vld [vmem:[#allocation58_spill] sm:$0xff] }
 0x607   :  { %2067 = vmatpush1.bf16.msra.mxu0 %v5573_v61  ;;  %2108 = vmatpush1.bf16.msra.mxu1 %v5574_v51  ;;  %v5655_v61 = vld [vmem:[#allocation59_spill] sm:$0xff]  ;;  %v5656_v51 = vld [vmem:[#allocation60_spill] sm:$0xff] }
 0x608   :  { %2068 = vmatprep.subr.bf16.mxu0 %v5575_v53  ;;  %2109 = vmatprep.subr.bf16.mxu1 %v5576_v21  ;;  %v5657_v53 = vld [vmem:[#allocation61_spill] sm:$0xff]  ;;  %v5658_v21 = vld [vmem:[#allocation62_spill] sm:$0xff] }
 0x60b   :  { %2069 = vmatpush1.bf16.msra.mxu0 %v5577_v49  ;;  %2110 = vmatpush1.bf16.msra.mxu1 %v5578_v58  ;;  %v5659_v49 = vld [vmem:[#allocation63_spill] sm:$0xff]  ;;  %v5660_v58 = vld [vmem:[#allocation64_spill] sm:$0xff] }
 0x60c   :  { %2070 = vmatprep.subr.bf16.mxu0 %v5579_v19  ;;  %2111 = vmatprep.subr.bf16.mxu1 %v5580_v2  ;;  %v5661_v19 = vld [vmem:[#allocation65_spill] sm:$0xff]  ;;  %v5662_v2 = vld [vmem:[#allocation66_spill] sm:$0xff] }
 0x60f   :  { %2071 = vmatpush1.bf16.msra.mxu0 %v5581_v1  ;;  %2112 = vmatpush1.bf16.msra.mxu1 %v5582_v18  ;;  %v5663_v1 = vld [vmem:[#allocation68_spill] sm:$0xff]  ;;  %v5664_v18 = vld [vmem:[#allocation69_spill] sm:$0xff] }
 0x610   :  { %2072 = vmatprep.subr.bf16.mxu0 %v5583_v34  ;;  %2113 = vmatprep.subr.bf16.mxu1 %v5584_v3  ;;  %v5665_v34 = vld [vmem:[#allocation70_spill] sm:$0xff]  ;;  %v5666_v3 = vld [vmem:[#allocation71_spill] sm:$0xff] }
 0x613   :  { %2073 = vmatpush1.bf16.msra.mxu0 %v5585_v20  ;;  %2114 = vmatpush1.bf16.msra.mxu1 %v5586_v52  ;;  %v5667_v20 = vld [vmem:[#allocation72_spill] sm:$0xff]  ;;  %v5668_v52 = vld [vmem:[#allocation73_spill] sm:$0xff] }
 0x614   :  { %2074 = vmatprep.subr.bf16.mxu0 %v5587_v62  ;;  %2115 = vmatprep.subr.bf16.mxu1 %v5588_v55  ;;  %v5669_v62 = vld [vmem:[#allocation74_spill] sm:$0xff]  ;;  %v5670_v55 = vld [vmem:[#allocation75_spill] sm:$0xff] }
 0x617   :  { %2075 = vmatpush1.bf16.msra.mxu0 %v5633_v56  ;;  %2116 = vmatpush1.bf16.msra.mxu1 %v5634_v13  ;;  %v5671_v56 = vld [vmem:[#allocation16_spill] sm:$0xff] }
 0x618   :  { %2076 = vmatprep.subr.bf16.mxu0 %v5635_v14  ;;  %2117 = vmatprep.subr.bf16.mxu1 %v5636_v15 }
 0x61b   :  { %2077 = vmatpush1.bf16.msra.mxu0 %v5637_v57  ;;  %2118 = vmatpush1.bf16.msra.mxu1 %v5638_v16  ;;  %v5672_v16 = vld [vmem:[#allocation17_spill] sm:$0xff] }
 0x61c   :  { %2078 = vmatprep.subr.bf16.mxu0 %v5639_v54  ;;  %2119 = vmatprep.subr.bf16.mxu1 %v5640_v22 }
 0x61f   :  { %2079 = vmatpush2.bf16.msra.mxu0 %v5641_v24  ;;  %2120 = vmatpush2.bf16.msra.mxu1 %v5642_v25 }
 0x620   :  { %2080 = vmatprep.subr.bf16.mxu0 %v5643_v27  ;;  %2121 = vmatprep.subr.bf16.mxu1 %v5644_v29 }
 0x623   :  { %2081 = vmatpush2.bf16.msra.mxu0 %v5645_v30  ;;  %2122 = vmatpush2.bf16.msra.mxu1 %v5646_v31  ;;  %v5673_v30 = vld [vmem:[#allocation18_spill] sm:$0xff] }
 0x624   :  { %2082 = vmatprep.subr.bf16.mxu0 %v5647_v17  ;;  %2123 = vmatprep.subr.bf16.mxu1 %v5648_v32 }
 0x627   :  { %2083 = vmatpush2.bf16.msra.mxu0 %v5649_v33  ;;  %2124 = vmatpush2.bf16.msra.mxu1 %v5650_v36  ;;  %v5674_v33 = vld [vmem:[#allocation19_spill] sm:$0xff] }
 0x628   :  { %2084 = vmatprep.subr.bf16.mxu0 %v5651_v38  ;;  %2125 = vmatprep.subr.bf16.mxu1 %v5652_v39 }
 0x62b   :  { %2085 = vmatpush2.bf16.msra.mxu0 %v5653_v59  ;;  %2126 = vmatpush2.bf16.msra.mxu1 %v5654_v50 }
 0x62c   :  { %2086 = vmatprep.subr.bf16.mxu0 %v5655_v61  ;;  %2127 = vmatprep.subr.bf16.mxu1 %v5656_v51 }
 0x62f   :  { %2087 = vmatpush2.bf16.msra.mxu0 %v5657_v53  ;;  %2128 = vmatpush2.bf16.msra.mxu1 %v5658_v21 }
 0x630   :  { %2088 = vmatprep.subr.bf16.mxu0 %v5659_v49  ;;  %2129 = vmatprep.subr.bf16.mxu1 %v5660_v58 }
 0x633   :  { %2089 = vmatpush2.bf16.msra.mxu0 %v5661_v19  ;;  %2130 = vmatpush2.bf16.msra.mxu1 %v5662_v2 }
 0x634   :  { %2090 = vmatprep.subr.bf16.mxu0 %v5663_v1  ;;  %2131 = vmatprep.subr.bf16.mxu1 %v5664_v18 }
 0x637   :  { %2091 = vmatpush2.bf16.msra.mxu0 %v5665_v34  ;;  %2132 = vmatpush2.bf16.msra.mxu1 %v5666_v3 }
 0x638   :  { %2092 = vmatprep.subr.bf16.mxu0 %v5667_v20  ;;  %2133 = vmatprep.subr.bf16.mxu1 %v5668_v52 }
 0x63b   :  { %2093 = vmatpush2.bf16.msra.mxu0 %v5669_v62  ;;  %2134 = vmatpush2.bf16.msra.mxu1 %v5670_v55 }
 0x63c   :  { %2174 = vmatprep.subr.bf16.mxu0 %v4659_v37  ;;  %2215 = vmatprep.subr.bf16.mxu1 %v4662_v11 }
 0x69e   :  { %v1846_v0 = vpop.f32.mrf.mxu0  ;;  %v1887_v40 = vpop.f32.mrf.mxu1 }
 0x69f   :  { %v1894_v13 = vadd.f32 %v1846_v0, %v5671_v56  ;;  %v1896_v36 = vadd.f32 %v1887_v40, %v5674_v33  ;;  %v1923_v0 = vld [vmem:[#allocation4 + $0x28] sm:$0xff] }
 0x6a0   :  { %v1848_v14 = vpop.f32.mrf.mxu0  ;;  %v1889_v15 = vpop.f32.mrf.mxu1 }
 0x6a1   :  { %v2816_v57 = vmul.f32 -1.442695, %v1894_v13  ;;  %v1895_v54 = vadd.f32 %v1848_v14, %v5672_v16  ;;  %v1897_v31 = vadd.f32 %v1889_v15, %v5673_v30 }
 0x6a2   :  { %v1850_v22 = vpop.f32.mrf.mxu0  ;;  %v1891_v24 = vpop.f32.mrf.mxu1 }
 0x6a3   :  { %3136 = vpow2.f32 %v2816_v57  ;;  %v2817_v25 = vmul.f32 -1.442695, %v1895_v54  ;;  %v2818_v17 = vmul.f32 -1.442695, %v1897_v31 }
 0x6a4   :  { %v1851_v27 = vpop.f32.mrf.mxu0  ;;  %v1892_v29 = vpop.f32.mrf.mxu1 }
 0x6a5   :  { %3138 = vpow2.f32 %v2817_v25 }
 0x6a6   :  { %3140 = vpow2.f32 %v2818_v17 }
 0x6b0   :  { %v3137_v32 = vpop.eup %3136 }
 0x6b1   :  { %v1901_v38 = vadd.f32 1.0, %v3137_v32 }
 0x6b2   :  { %v3139_v39 = vpop.eup %3138 }
 0x6b3   :  { %3142 = vrcp.f32 %v1901_v38  ;;  %v1907_v59 = vadd.f32 1.0, %v3139_v39  ;;  %v3141_v51 = vpop.eup %3140 }
 0x6b4   :  { %3144 = vtanh.f32 %v1896_v36  ;;  %v1914_v18 = vadd.f32 1.0, %v3141_v51 }
 0x6b5   :  { %3146 = vrcp.f32 %v1907_v59 }
 0x6b6   :  { %3148 = vrcp.f32 %v1914_v18 }
 0x6be   :  { %v1958_v50 = vpop.f32.mrf.mxu0  ;;  %v1999_v61 = vpop.f32.mrf.mxu1 }
 0x6c0   :  { %v3143_v53 = vpop.eup %3142  ;;  %v1960_v21 = vpop.f32.mrf.mxu0 }
 0x6c1   :  { %v2001_v49 = vpop.f32.mrf.mxu1  ;;  %v3145_v58 = vpop.eup %3144  ;;  %v2010_v19 = vcombine.low %v1958_v50, %v1960_v21 }
 0x6c2   :  { %v2011_v2 = vcombine.low %v1999_v61, %v2001_v49  ;;  %v3147_v1 = vpop.eup %3146  ;;  %v1962_v34 = vpop.f32.mrf.mxu0  ;;  %v1918_v20 = vmul.f32 %v3145_v58, %v3143_v53 }
 0x6c3   :  { %v2003_v3 = vpop.f32.mrf.mxu1  ;;  %v1917_v52 = vmul.f32 %v3147_v1, %v4520_v8  ;;  %v2018_v62 = vrot.slane %v2010_v19, %v3866_v63  ;;  %v3149_v25 = vpop.eup %3148 }
 0x6c4   :  { %v2025_v55 = vrot.slane %v2011_v2, %v3866_v63  ;;  %v1963_v40 = vpop.f32.mrf.mxu0  ;;  %v4702_v3 = vld [vmem:[#allocation7 + $0x4c] ss:$16 sps:$4 sm:$0xff]  }
 0x6c5   :  { %v2004_v13 = vpop.f32.mrf.mxu1  ;;  %v4672_v15 = vadd.f32 %v1918_v20, %v1917_v52  ;;  %v4705_v20 = vld [vmem:[#allocation7 + $0x40] ss:$16 sps:$4 sm:$0xff]   ;;  %v4708_v52 = vld [vmem:[#allocation7 + $0x48] ss:$16 sps:$4 sm:$0xff]  }
 0x6c6   :  { %v2026_v14 = vcombine.low %v2018_v62, %v2025_v55  ;;  %v4711_v62 = vld [vmem:[#allocation7 + $0x24] ss:$16 sps:$4 sm:$0xff]   ;;  %v4714_v55 = vld [vmem:[#allocation7 + $0x2c] ss:$16 sps:$4 sm:$0xff]   ;;  %v4720_v40 = vld [vmem:[#allocation7 + $0x28] ss:$16 sps:$4 sm:$0xff]  }
 0x6c7   :  { %3150 = vtanh.f32 %v4672_v15  ;;  %v4723_v13 = vld [vmem:[#allocation7 + $0x4] ss:$16 sps:$4 sm:$0xff]  }
 0x6c8   :  { %v2028_v57 = vadd.f32 %v2026_v14, %v1923_v0  ;;  %v4717_v0 = vld [vmem:[#allocation7 + $0x20] ss:$16 sps:$4 sm:$0xff]   ;;  %v4726_v14 = vld [vmem:[#allocation7 + $0xc] ss:$16 sps:$4 sm:$0xff]  }
 0x6ca   :  { %v2819_v54 = vmul.f32 -1.442695, %v2028_v57  ;;  %v2036_v22 = vrot.slane %v2028_v57, 2  ;;  %v2047_v8 = vrot.slane %v2028_v57, 6  ;;  %v2044_v36 = vrot.slane %v2028_v57, 4 }
 0x6cb   :  { %v4729_v57 = vld [vmem:[#allocation7] ss:$16 sps:$4 sm:$0xff]  }
 0x6cc   :  { %3152 = vpow2.f32 %v2819_v54  ;;  %v2820_v24 = vmul.f32 -1.442695, %v2036_v22  ;;  %v2821_v31 = vmul.f32 -1.442695, %v2047_v8  ;;  %v4732_v54 = vld [vmem:[#allocation7 + $0x8] ss:$16 sps:$4 sm:$0xff]  }
 0x6cd   :  { %v4735_v22 = vld [vmem:[#allocation9 + $0xe4] ss:$16 sps:$4 sm:$0xff]   ;;  %v4741_v8 = vld [vmem:[#allocation9 + $0xe0] ss:$16 sps:$4 sm:$0xff]  }
 0x6ce   :  { %3154 = vpow2.f32 %v2820_v24  ;;  %v4738_v24 = vld [vmem:[#allocation9 + $0xec] ss:$16 sps:$4 sm:$0xff]  }
 0x6cf   :  { %3156 = vpow2.f32 %v2821_v31  ;;  %v4753_v31 = vld [vmem:[#allocation9 + $0xc0] ss:$16 sps:$4 sm:$0xff]  }
 0x6d4   :  { %v3151_v27 = vpop.eup %3150 }
 0x6d5   :  { %v1921_v29 = vmul.f32 %v3151_v27, %v3149_v25  ;;  %v4744_v25 = vld [vmem:[#allocation9 + $0xe8] ss:$16 sps:$4 sm:$0xff]   ;;  %v4747_v27 = vld [vmem:[#allocation9 + $0xc4] ss:$16 sps:$4 sm:$0xff]  }
 0x6d7   :  { %v2061_v17 = vpack.c.bf16 %v1921_v29, %v1921_v29  ;;  %v4750_v29 = vld [vmem:[#allocation9 + $0xcc] ss:$16 sps:$4 sm:$0xff]  }
 0x6d9   :  { %v3153_v32 = vpop.eup %3152  ;;  %2094 = vmatprep.mubr.bf16.mxu0 %v2061_v17  ;;  %2135 = vmatprep.mubr.bf16.mxu1 %v2061_v17  ;;  %v4756_v17 = vld [vmem:[#allocation9 + $0xc8] ss:$16 sps:$4 sm:$0xff]  }
 0x6da   :  { %v2032_v38 = vadd.f32 1.0, %v3153_v32  ;;  %v4759_v32 = vld [vmem:[#allocation9 + $0xa4] ss:$16 sps:$4 sm:$0xff]  }
 0x6db   :  { %v3155_v39 = vpop.eup %3154  ;;  %5675 = vst [vmem:[#allocation22_spill] sm:$0xff] %v4759_v32 }
 0x6dc   :  { %3158 = vrcp.f32 %v2032_v38  ;;  %v2041_v59 = vadd.f32 1.0, %v3155_v39  ;;  %v3157_v50 = vpop.eup %3156  ;;  %v4765_v38 = vld [vmem:[#allocation9 + $0xa0] ss:$16 sps:$4 sm:$0xff]   ;;  %v4768_v39 = vld [vmem:[#allocation9 + $0xa8] ss:$16 sps:$4 sm:$0xff]  }
 0x6dd   :  { %3160 = vtanh.f32 %v2044_v36  ;;  %v2052_v21 = vadd.f32 1.0, %v3157_v50  ;;  %v4762_v36 = vld [vmem:[#allocation9 + $0xac] ss:$16 sps:$4 sm:$0xff]   ;;  %5677 = vst [vmem:[#allocation24_spill] sm:$0xff] %v4765_v38  ;;  %5678 = vst [vmem:[#allocation25_spill] sm:$0xff] %v4768_v39 }
 0x6de   :  { %3162 = vrcp.f32 %v2041_v59  ;;  %5676 = vst [vmem:[#allocation23_spill] sm:$0xff] %v4762_v36  ;;  %v4771_v59 = vld [vmem:[#allocation9 + $0x84] ss:$16 sps:$4 sm:$0xff]   ;;  %v4774_v50 = vld [vmem:[#allocation9 + $0x8c] ss:$16 sps:$4 sm:$0xff]  }
 0x6df   :  { %3164 = vrcp.f32 %v2052_v21  ;;  %5679 = vst [vmem:[#allocation26_spill] sm:$0xff] %v4771_v59  ;;  %5680 = vst [vmem:[#allocation27_spill] sm:$0xff] %v4774_v50  ;;  %v4786_v21 = vld [vmem:[#allocation9 + $0x6c] ss:$16 sps:$4 sm:$0xff]  }
 0x6e0   :  { %5684 = vst [vmem:[#allocation28_spill] sm:$0xff] %v4786_v21 }
 0x6e9   :  { %v3159_v61 = vpop.eup %3158 }
 0x6ea   :  { %v3161_v51 = vpop.eup %3160 }
 0x6eb   :  { %v3163_v53 = vpop.eup %3162  ;;  %v2056_v58 = vmul.f32 %v3161_v51, %v3159_v61  ;;  %v4777_v61 = vld [vmem:[#allocation9 + $0x80] ss:$16 sps:$4 sm:$0xff]   ;;  %v4780_v51 = vld [vmem:[#allocation9 + $0x88] ss:$16 sps:$4 sm:$0xff]  }
 0x6ec   :  { %v2055_v49 = vmul.f32 %v3163_v53, %v4524_v4  ;;  %v3165_v2 = vpop.eup %3164  ;;  %v4699_v4 = vld [vmem:[#allocation7 + $0x44] ss:$16 sps:$4 sm:$0xff]   ;;  %5681 = vst [vmem:[#allocation14_spill] sm:$0xff] %v4777_v61  ;;  %5682 = vst [vmem:[#allocation15_spill] sm:$0xff] %v4780_v51 }
 0x6ed   :  { %v4783_v53 = vld [vmem:[#allocation9 + $0x64] ss:$16 sps:$4 sm:$0xff]  }
 0x6ee   :  { %v4676_v19 = vadd.f32 %v2056_v58, %v2055_v49  ;;  %5683 = vst [vmem:[#allocation67_spill] sm:$0xff] %v4783_v53  ;;  %v4789_v49 = vld [vmem:[#allocation9 + $0x60] ss:$16 sps:$4 sm:$0xff]   ;;  %v4792_v58 = vld [vmem:[#allocation9 + $0x68] ss:$16 sps:$4 sm:$0xff]  }
 0x6ef   :  { %5685 = vst [vmem:[#allocation29_spill] sm:$0xff] %v4789_v49  ;;  %5686 = vst [vmem:[#allocation30_spill] sm:$0xff] %v4792_v58 }
 0x6f0   :  { %3166 = vtanh.f32 %v4676_v19 }
 0x6fd   :  { %v3167_v1 = vpop.eup %3166 }
 0x6fe   :  { %v2059_v18 = vmul.f32 %v3167_v1, %v3165_v2  ;;  %v4795_v2 = vld [vmem:[#allocation9 + $0x44] ss:$16 sps:$4 sm:$0xff]   ;;  %v4798_v1 = vld [vmem:[#allocation9 + $0x4c] ss:$16 sps:$4 sm:$0xff]  }
 0x6ff   :  { %5687 = vst [vmem:[#allocation31_spill] sm:$0xff] %v4795_v2  ;;  %5688 = vst [vmem:[#allocation32_spill] sm:$0xff] %v4798_v1 }
 0x700   :  { %v2060_v34 = vpack.c.bf16 %v2059_v18, %v2059_v18  ;;  %v4801_v18 = vld [vmem:[#allocation9 + $0x40] ss:$16 sps:$4 sm:$0xff]  }
 0x701   :  { %5689 = vst [vmem:[#allocation33_spill] sm:$0xff] %v4801_v18 }
 0x702   :  { %2095 = vmatmul.mubr.bf16.vlgmr.msra.gmra.mxu0 %v2060_v34  ;;  %2136 = vmatmul.mubr.bf16.vlgmr.msra.gmra.mxu1 %v2060_v34 }
 0x703   :  { %2175 = vmatpush1.bf16.msra.mxu0 %v4527_v41  ;;  %2216 = vmatpush1.bf16.msra.mxu1 %v4530_v60 }
 0x704   :  { %2176 = vmatprep.subr.bf16.mxu0 %v4533_v46  ;;  %2217 = vmatprep.subr.bf16.mxu1 %v4536_v9 }
 0x705   :  { %2206 = vmatprep.mubr.bf16.mxu0 %v5411_v35  ;;  %2247 = vmatprep.mubr.bf16.mxu1 %v5411_v35 }
 0x707   :  { %2177 = vmatpush1.bf16.msra.mxu0 %v4541_v10  ;;  %2218 = vmatpush1.bf16.msra.mxu1 %v4544_v42 }
 0x708   :  { %2178 = vmatprep.subr.bf16.mxu0 %v4547_v26  ;;  %2219 = vmatprep.subr.bf16.mxu1 %v4550_v44 }
 0x70b   :  { %2179 = vmatpush1.bf16.msra.mxu0 %v4553_v12  ;;  %2220 = vmatpush1.bf16.msra.mxu1 %v4556_v43 }
 0x70c   :  { %2180 = vmatprep.subr.bf16.mxu0 %v4559_v23  ;;  %2221 = vmatprep.subr.bf16.mxu1 %v4562_v28 }
 0x70f   :  { %2181 = vmatpush1.bf16.msra.mxu0 %v4565_v6  ;;  %2222 = vmatpush1.bf16.msra.mxu1 %v4568_v7 }
 0x710   :  { %2182 = vmatprep.subr.bf16.mxu0 %v4571_v5  ;;  %2223 = vmatprep.subr.bf16.mxu1 %v4574_v45 }
 0x713   :  { %2183 = vmatpush1.bf16.msra.mxu0 %v4577_v47  ;;  %2224 = vmatpush1.bf16.msra.mxu1 %v4580_v48 }
 0x714   :  { %2184 = vmatprep.subr.bf16.mxu0 %v4699_v4  ;;  %2225 = vmatprep.subr.bf16.mxu1 %v4702_v3 }
 0x717   :  { %2185 = vmatpush1.bf16.msra.mxu0 %v4705_v20  ;;  %2226 = vmatpush1.bf16.msra.mxu1 %v4708_v52 }
 0x718   :  { %2186 = vmatprep.subr.bf16.mxu0 %v4711_v62  ;;  %2227 = vmatprep.subr.bf16.mxu1 %v4714_v55 }
 0x71b   :  { %2187 = vmatpush1.bf16.msra.mxu0 %v4717_v0  ;;  %2228 = vmatpush1.bf16.msra.mxu1 %v4720_v40 }
 0x71c   :  { %2188 = vmatprep.subr.bf16.mxu0 %v4723_v13  ;;  %2229 = vmatprep.subr.bf16.mxu1 %v4726_v14 }
 0x71f   :  { %2189 = vmatpush1.bf16.msra.mxu0 %v4729_v57  ;;  %2230 = vmatpush1.bf16.msra.mxu1 %v4732_v54 }
 0x720   :  { %2312 = vmatprep.subr.bf16.mxu0 %v4735_v22  ;;  %2353 = vmatprep.subr.bf16.mxu1 %v4738_v24 }
 0x722   :  { %2207 = vmatmul.mubr.bf16.vlgmr.msra.gmra.mxu0 %v2060_v34  ;;  %2248 = vmatmul.mubr.bf16.vlgmr.msra.gmra.mxu1 %v2060_v34  ;;  %v4804_v34 = vld [vmem:[#allocation9 + $0x48] ss:$16 sps:$4 sm:$0xff]  }
 0x723   :  { %2313 = vmatpush1.bf16.msra.mxu0 %v4741_v8  ;;  %2354 = vmatpush1.bf16.msra.mxu1 %v4744_v25  ;;  %5690 = vst [vmem:[#allocation34_spill] sm:$0xff] %v4804_v34 }
 0x724   :  { %2314 = vmatprep.subr.bf16.mxu0 %v4747_v27  ;;  %2355 = vmatprep.subr.bf16.mxu1 %v4750_v29 }
 0x727   :  { %2315 = vmatpush1.bf16.msra.mxu0 %v4753_v31  ;;  %2356 = vmatpush1.bf16.msra.mxu1 %v4756_v17 }
 0x728   :  { %2316 = vmatprep.subr.bf16.mxu0 %v4759_v32  ;;  %2357 = vmatprep.subr.bf16.mxu1 %v4762_v36 }
 0x72b   :  { %2317 = vmatpush1.bf16.msra.mxu0 %v4765_v38  ;;  %2358 = vmatpush1.bf16.msra.mxu1 %v4768_v39 }
 0x72c   :  { %2318 = vmatprep.subr.bf16.mxu0 %v4771_v59  ;;  %2359 = vmatprep.subr.bf16.mxu1 %v4774_v50 }
 0x72f   :  { %2319 = vmatpush1.bf16.msra.mxu0 %v4777_v61  ;;  %2360 = vmatpush1.bf16.msra.mxu1 %v4780_v51 }
 0x730   :  { %2320 = vmatprep.subr.bf16.mxu0 %v4783_v53  ;;  %2361 = vmatprep.subr.bf16.mxu1 %v4786_v21 }
 0x733   :  { %2321 = vmatpush1.bf16.msra.mxu0 %v4789_v49  ;;  %2362 = vmatpush1.bf16.msra.mxu1 %v4792_v58  ;;  %v4807_v49 = vld [vmem:[#allocation9 + $0x24] ss:$16 sps:$4 sm:$0xff]   ;;  %v4810_v58 = vld [vmem:[#allocation9 + $0x2c] ss:$16 sps:$4 sm:$0xff]  }
 0x734   :  { %2322 = vmatprep.subr.bf16.mxu0 %v4795_v2  ;;  %2363 = vmatprep.subr.bf16.mxu1 %v4798_v1  ;;  %5691 = vst [vmem:[#allocation35_spill] sm:$0xff] %v4807_v49  ;;  %5692 = vst [vmem:[#allocation36_spill] sm:$0xff] %v4810_v58  ;;  %v4813_v2 = vld [vmem:[#allocation9 + $0x20] ss:$16 sps:$4 sm:$0xff]   ;;  %v4816_v1 = vld [vmem:[#allocation9 + $0x28] ss:$16 sps:$4 sm:$0xff]  }
 0x735   :  { %5693 = vst [vmem:[#allocation20_spill] sm:$0xff] %v4813_v2  ;;  %5694 = vst [vmem:[#allocation21_spill] sm:$0xff] %v4816_v1 }
 0x737   :  { %2323 = vmatpush1.bf16.msra.mxu0 %v4801_v18  ;;  %2364 = vmatpush1.bf16.msra.mxu1 %v4804_v34  ;;  %v4819_v18 = vld [vmem:[#allocation9 + $0x4] ss:$16 sps:$4 sm:$0xff]   ;;  %v4822_v34 = vld [vmem:[#allocation9 + $0xc] ss:$16 sps:$4 sm:$0xff]  }
 0x738   :  { %2324 = vmatprep.subr.bf16.mxu0 %v4807_v49  ;;  %2365 = vmatprep.subr.bf16.mxu1 %v4810_v58  ;;  %5695 = vst [vmem:[#allocation37_spill] sm:$0xff] %v4819_v18  ;;  %5696 = vst [vmem:[#allocation38_spill] sm:$0xff] %v4822_v34  ;;  %v4825_v49 = vld [vmem:[#allocation9] ss:$16 sps:$4 sm:$0xff]   ;;  %v4828_v58 = vld [vmem:[#allocation9 + $0x8] ss:$16 sps:$4 sm:$0xff]  }
 0x739   :  { %5697 = vst [vmem:[#allocation39_spill] sm:$0xff] %v4825_v49  ;;  %5698 = vst [vmem:[#allocation40_spill] sm:$0xff] %v4828_v58 }
 0x73b   :  { %2325 = vmatpush1.bf16.msra.mxu0 %v4813_v2  ;;  %2366 = vmatpush1.bf16.msra.mxu1 %v4816_v1  ;;  %v4831_v2 = vld [vmem:[#allocation9 + $0x1e4] ss:$16 sps:$4 sm:$0xff]   ;;  %v4834_v1 = vld [vmem:[#allocation9 + $0x1ec] ss:$16 sps:$4 sm:$0xff]  }
 0x73c   :  { %2326 = vmatprep.subr.bf16.mxu0 %v4819_v18  ;;  %2367 = vmatprep.subr.bf16.mxu1 %v4822_v34  ;;  %5699 = vst [vmem:[#allocation41_spill] sm:$0xff] %v4831_v2  ;;  %5700 = vst [vmem:[#allocation42_spill] sm:$0xff] %v4834_v1  ;;  %v4837_v18 = vld [vmem:[#allocation9 + $0x1e0] ss:$16 sps:$4 sm:$0xff]   ;;  %v4840_v34 = vld [vmem:[#allocation9 + $0x1e8] ss:$16 sps:$4 sm:$0xff]  }
 0x73d   :  { %5701 = vst [vmem:[#allocation43_spill] sm:$0xff] %v4837_v18  ;;  %5702 = vst [vmem:[#allocation44_spill] sm:$0xff] %v4840_v34 }
 0x73f   :  { %2327 = vmatpush1.bf16.msra.mxu0 %v4825_v49  ;;  %2368 = vmatpush1.bf16.msra.mxu1 %v4828_v58  ;;  %v4843_v49 = vld [vmem:[#allocation9 + $0x1c4] ss:$16 sps:$4 sm:$0xff]   ;;  %v4846_v58 = vld [vmem:[#allocation9 + $0x1cc] ss:$16 sps:$4 sm:$0xff]  }
 0x740   :  { %2328 = vmatprep.subr.bf16.mxu0 %v4831_v2  ;;  %2369 = vmatprep.subr.bf16.mxu1 %v4834_v1  ;;  %5703 = vst [vmem:[#allocation45_spill] sm:$0xff] %v4843_v49  ;;  %5704 = vst [vmem:[#allocation46_spill] sm:$0xff] %v4846_v58  ;;  %v4849_v2 = vld [vmem:[#allocation9 + $0x1c0] ss:$16 sps:$4 sm:$0xff]   ;;  %v4852_v1 = vld [vmem:[#allocation9 + $0x1c8] ss:$16 sps:$4 sm:$0xff]  }
 0x741   :  { %5705 = vst [vmem:[#allocation47_spill] sm:$0xff] %v4849_v2  ;;  %5706 = vst [vmem:[#allocation48_spill] sm:$0xff] %v4852_v1 }
 0x743   :  { %2329 = vmatpush2.bf16.msra.mxu0 %v4837_v18  ;;  %2370 = vmatpush2.bf16.msra.mxu1 %v4840_v34  ;;  %v4855_v18 = vld [vmem:[#allocation9 + $0x1a4] ss:$16 sps:$4 sm:$0xff]   ;;  %v4858_v34 = vld [vmem:[#allocation9 + $0x1ac] ss:$16 sps:$4 sm:$0xff]  }
 0x744   :  { %2330 = vmatprep.subr.bf16.mxu0 %v4843_v49  ;;  %2371 = vmatprep.subr.bf16.mxu1 %v4846_v58  ;;  %5707 = vst [vmem:[#allocation49_spill] sm:$0xff] %v4855_v18  ;;  %5708 = vst [vmem:[#allocation50_spill] sm:$0xff] %v4858_v34  ;;  %v4861_v49 = vld [vmem:[#allocation9 + $0x1a0] ss:$16 sps:$4 sm:$0xff]   ;;  %v4864_v58 = vld [vmem:[#allocation9 + $0x1a8] ss:$16 sps:$4 sm:$0xff]  }
 0x745   :  { %5709 = vst [vmem:[#allocation51_spill] sm:$0xff] %v4861_v49  ;;  %5710 = vst [vmem:[#allocation52_spill] sm:$0xff] %v4864_v58 }
 0x747   :  { %2331 = vmatpush2.bf16.msra.mxu0 %v4849_v2  ;;  %2372 = vmatpush2.bf16.msra.mxu1 %v4852_v1  ;;  %v4867_v2 = vld [vmem:[#allocation9 + $0x184] ss:$16 sps:$4 sm:$0xff]   ;;  %v4870_v1 = vld [vmem:[#allocation9 + $0x18c] ss:$16 sps:$4 sm:$0xff]  }
 0x748   :  { %2332 = vmatprep.subr.bf16.mxu0 %v4855_v18  ;;  %2373 = vmatprep.subr.bf16.mxu1 %v4858_v34  ;;  %5711 = vst [vmem:[#allocation53_spill] sm:$0xff] %v4867_v2  ;;  %5712 = vst [vmem:[#allocation54_spill] sm:$0xff] %v4870_v1  ;;  %v4873_v18 = vld [vmem:[#allocation9 + $0x180] ss:$16 sps:$4 sm:$0xff]   ;;  %v4876_v34 = vld [vmem:[#allocation9 + $0x188] ss:$16 sps:$4 sm:$0xff]  }
 0x749   :  { %5713 = vst [vmem:[#allocation55_spill] sm:$0xff] %v4873_v18  ;;  %5714 = vst [vmem:[#allocation56_spill] sm:$0xff] %v4876_v34 }
 0x74b   :  { %2333 = vmatpush2.bf16.msra.mxu0 %v4861_v49  ;;  %2374 = vmatpush2.bf16.msra.mxu1 %v4864_v58  ;;  %v4879_v49 = vld [vmem:[#allocation9 + $0x164] ss:$16 sps:$4 sm:$0xff]   ;;  %v4882_v58 = vld [vmem:[#allocation9 + $0x16c] ss:$16 sps:$4 sm:$0xff]  }
 0x74c   :  { %2334 = vmatprep.subr.bf16.mxu0 %v4867_v2  ;;  %2375 = vmatprep.subr.bf16.mxu1 %v4870_v1  ;;  %5715 = vst [vmem:[#allocation57_spill] sm:$0xff] %v4879_v49  ;;  %5716 = vst [vmem:[#allocation58_spill] sm:$0xff] %v4882_v58  ;;  %v4885_v2 = vld [vmem:[#allocation9 + $0x160] ss:$16 sps:$4 sm:$0xff]   ;;  %v4888_v1 = vld [vmem:[#allocation9 + $0x168] ss:$16 sps:$4 sm:$0xff]  }
 0x74d   :  { %5717 = vst [vmem:[#allocation59_spill] sm:$0xff] %v4885_v2  ;;  %5718 = vst [vmem:[#allocation60_spill] sm:$0xff] %v4888_v1 }
 0x74f   :  { %2335 = vmatpush2.bf16.msra.mxu0 %v4873_v18  ;;  %2376 = vmatpush2.bf16.msra.mxu1 %v4876_v34  ;;  %v4891_v18 = vld [vmem:[#allocation9 + $0x144] ss:$16 sps:$4 sm:$0xff]   ;;  %v4894_v34 = vld [vmem:[#allocation9 + $0x14c] ss:$16 sps:$4 sm:$0xff]  }
 0x750   :  { %2336 = vmatprep.subr.bf16.mxu0 %v4879_v49  ;;  %2377 = vmatprep.subr.bf16.mxu1 %v4882_v58  ;;  %5719 = vst [vmem:[#allocation61_spill] sm:$0xff] %v4891_v18  ;;  %5720 = vst [vmem:[#allocation62_spill] sm:$0xff] %v4894_v34  ;;  %v4897_v49 = vld [vmem:[#allocation9 + $0x140] ss:$16 sps:$4 sm:$0xff]   ;;  %v4900_v58 = vld [vmem:[#allocation9 + $0x148] ss:$16 sps:$4 sm:$0xff]  }
 0x751   :  { %5721 = vst [vmem:[#allocation63_spill] sm:$0xff] %v4897_v49  ;;  %5722 = vst [vmem:[#allocation64_spill] sm:$0xff] %v4900_v58 }
 0x753   :  { %2337 = vmatpush2.bf16.msra.mxu0 %v4885_v2  ;;  %2378 = vmatpush2.bf16.msra.mxu1 %v4888_v1  ;;  %v4903_v2 = vld [vmem:[#allocation9 + $0x124] ss:$16 sps:$4 sm:$0xff]   ;;  %v4906_v1 = vld [vmem:[#allocation9 + $0x12c] ss:$16 sps:$4 sm:$0xff]  }
 0x754   :  { %2338 = vmatprep.subr.bf16.mxu0 %v4891_v18  ;;  %2379 = vmatprep.subr.bf16.mxu1 %v4894_v34  ;;  %5723 = vst [vmem:[#allocation65_spill] sm:$0xff] %v4903_v2  ;;  %5724 = vst [vmem:[#allocation66_spill] sm:$0xff] %v4906_v1  ;;  %v4909_v18 = vld [vmem:[#allocation9 + $0x120] ss:$16 sps:$4 sm:$0xff]   ;;  %v4912_v34 = vld [vmem:[#allocation9 + $0x128] ss:$16 sps:$4 sm:$0xff]  }
 0x755   :  { %5725 = vst [vmem:[#allocation68_spill] sm:$0xff] %v4909_v18  ;;  %5726 = vst [vmem:[#allocation69_spill] sm:$0xff] %v4912_v34 }
 0x757   :  { %2339 = vmatpush2.bf16.msra.mxu0 %v4897_v49  ;;  %2380 = vmatpush2.bf16.msra.mxu1 %v4900_v58  ;;  %v4915_v49 = vld [vmem:[#allocation9 + $0x104] ss:$16 sps:$4 sm:$0xff]   ;;  %v4918_v58 = vld [vmem:[#allocation9 + $0x10c] ss:$16 sps:$4 sm:$0xff]  }
 0x758   :  { %2340 = vmatprep.subr.bf16.mxu0 %v4903_v2  ;;  %2381 = vmatprep.subr.bf16.mxu1 %v4906_v1  ;;  %5727 = vst [vmem:[#allocation70_spill] sm:$0xff] %v4915_v49  ;;  %5728 = vst [vmem:[#allocation71_spill] sm:$0xff] %v4918_v58  ;;  %v4921_v2 = vld [vmem:[#allocation9 + $0x100] ss:$16 sps:$4 sm:$0xff]   ;;  %v4924_v1 = vld [vmem:[#allocation9 + $0x108] ss:$16 sps:$4 sm:$0xff]  }
 0x759   :  { %5729 = vst [vmem:[#allocation72_spill] sm:$0xff] %v4921_v2  ;;  %5730 = vst [vmem:[#allocation73_spill] sm:$0xff] %v4924_v1 }
 0x75b   :  { %2341 = vmatpush2.bf16.msra.mxu0 %v4909_v18  ;;  %2382 = vmatpush2.bf16.msra.mxu1 %v4912_v34 }
 0x75c   :  { %2342 = vmatprep.subr.bf16.mxu0 %v4915_v49  ;;  %2383 = vmatprep.subr.bf16.mxu1 %v4918_v58 }
 0x75f   :  { %2343 = vmatpush2.bf16.msra.mxu0 %v4921_v2  ;;  %2384 = vmatpush2.bf16.msra.mxu1 %v4924_v1 }
 0x760   :  { %2424 = vmatprep.subr.bf16.mxu0 %v4659_v37  ;;  %2465 = vmatprep.subr.bf16.mxu1 %v4662_v11 }
 0x7c2   :  { %v2096_v34 = vpop.f32.mrf.mxu0  ;;  %v2137_v18 = vpop.f32.mrf.mxu1 }
 0x7c3   :  { %v2144_v49 = vadd.f32 %v2096_v34, %v5671_v56  ;;  %v2146_v38 = vadd.f32 %v2137_v18, %v5674_v33 }
 0x7c4   :  { %v2098_v21 = vpop.f32.mrf.mxu0  ;;  %v2139_v53 = vpop.f32.mrf.mxu1 }
 0x7c5   :  { %v2822_v51 = vmul.f32 -1.442695, %v2144_v49  ;;  %v2145_v58 = vadd.f32 %v2098_v21, %v5672_v16  ;;  %v2147_v37 = vadd.f32 %v2139_v53, %v5673_v30 }
 0x7c6   :  { %v2100_v61 = vpop.f32.mrf.mxu0  ;;  %v2141_v50 = vpop.f32.mrf.mxu1 }
 0x7c7   :  { %3168 = vpow2.f32 %v2822_v51  ;;  %v2823_v2 = vmul.f32 -1.442695, %v2145_v58  ;;  %v2824_v1 = vmul.f32 -1.442695, %v2147_v37 }
 0x7c8   :  { %v2101_v59 = vpop.f32.mrf.mxu0  ;;  %v2142_v39 = vpop.f32.mrf.mxu1 }
 0x7c9   :  { %3170 = vpow2.f32 %v2823_v2 }
 0x7ca   :  { %3172 = vpow2.f32 %v2824_v1 }
 0x7d4   :  { %v3169_v11 = vpop.eup %3168 }
 0x7d5   :  { %v2151_v36 = vadd.f32 1.0, %v3169_v11 }
 0x7d6   :  { %v3171_v34 = vpop.eup %3170 }
 0x7d7   :  { %3174 = vrcp.f32 %v2151_v36  ;;  %v2157_v49 = vadd.f32 1.0, %v3171_v34  ;;  %v3173_v51 = vpop.eup %3172  ;;  %v2173_v34 = vld [vmem:[#allocation4 + $0x30] sm:$0xff] }
 0x7d8   :  { %3176 = vtanh.f32 %v2146_v38  ;;  %v2164_v30 = vadd.f32 1.0, %v3173_v51 }
 0x7d9   :  { %3178 = vrcp.f32 %v2157_v49 }
 0x7da   :  { %3180 = vrcp.f32 %v2164_v30 }
 0x7e2   :  { %v2208_v61 = vpop.f32.mrf.mxu0  ;;  %v2249_v50 = vpop.f32.mrf.mxu1 }
 0x7e4   :  { %v3175_v21 = vpop.eup %3174  ;;  %v2210_v59 = vpop.f32.mrf.mxu0 }
 0x7e5   :  { %v2251_v39 = vpop.f32.mrf.mxu1  ;;  %v3177_v58 = vpop.eup %3176  ;;  %v2260_v2 = vcombine.low %v2208_v61, %v2210_v59 }
 0x7e6   :  { %v2261_v53 = vcombine.low %v2249_v50, %v2251_v39  ;;  %v3179_v37 = vpop.eup %3178  ;;  %v2212_v16 = vpop.f32.mrf.mxu0  ;;  %v2168_v11 = vmul.f32 %v3177_v58, %v3175_v21 }
 0x7e7   :  { %v2253_v18 = vpop.f32.mrf.mxu1  ;;  %v2167_v1 = vmul.f32 %v3179_v37, %v4672_v15  ;;  %v2268_v36 = vrot.slane %v2260_v2, %v3866_v63  ;;  %v3181_v21 = vpop.eup %3180 }
 0x7e8   :  { %v2275_v38 = vrot.slane %v2261_v53, %v3866_v63  ;;  %v2213_v49 = vpop.f32.mrf.mxu0 }
 0x7e9   :  { %v2254_v33 = vpop.f32.mrf.mxu1  ;;  %v4936_v32 = vadd.f32 %v2168_v11, %v2167_v1 }
 0x7ea   :  { %v2276_v56 = vcombine.low %v2268_v36, %v2275_v38 }
 0x7eb   :  { %3182 = vtanh.f32 %v4936_v32 }
 0x7ec   :  { %v2278_v61 = vadd.f32 %v2276_v56, %v2173_v34 }
 0x7ee   :  { %v2825_v50 = vmul.f32 -1.442695, %v2278_v61  ;;  %v2286_v16 = vrot.slane %v2278_v61, 2  ;;  %v2297_v15 = vrot.slane %v2278_v61, 6  ;;  %v2294_v33 = vrot.slane %v2278_v61, 4 }
 0x7f0   :  { %3184 = vpow2.f32 %v2825_v50  ;;  %v2826_v51 = vmul.f32 -1.442695, %v2286_v16  ;;  %v2827_v58 = vmul.f32 -1.442695, %v2297_v15 }
 0x7f2   :  { %3186 = vpow2.f32 %v2826_v51 }
 0x7f3   :  { %3188 = vpow2.f32 %v2827_v58  ;;  %v5774_v58 = vld [vmem:[#allocation60_spill] sm:$0xff] }
 0x7f8   :  { %v3183_v59 = vpop.eup %3182 }
 0x7f9   :  { %v2171_v39 = vmul.f32 %v3183_v59, %v3181_v21  ;;  %v5771_v21 = vld [vmem:[#allocation57_spill] sm:$0xff]  ;;  %v5772_v59 = vld [vmem:[#allocation58_spill] sm:$0xff] }
 0x7fb   :  { %v2311_v2 = vpack.c.bf16 %v2171_v39, %v2171_v39  ;;  %v5773_v39 = vld [vmem:[#allocation59_spill] sm:$0xff] }
 0x7fd   :  { %v3185_v53 = vpop.eup %3184  ;;  %2344 = vmatprep.mubr.bf16.mxu0 %v2311_v2  ;;  %2385 = vmatprep.mubr.bf16.mxu1 %v2311_v2  ;;  %v5775_v2 = vld [vmem:[#allocation61_spill] sm:$0xff] }
 0x7fe   :  { %v2282_v37 = vadd.f32 1.0, %v3185_v53  ;;  %v5776_v53 = vld [vmem:[#allocation62_spill] sm:$0xff] }
 0x7ff   :  { %v3187_v30 = vpop.eup %3186 }
 0x800   :  { %3190 = vrcp.f32 %v2282_v37  ;;  %v2291_v56 = vadd.f32 1.0, %v3187_v30  ;;  %v3189_v18 = vpop.eup %3188  ;;  %v5778_v37 = vld [vmem:[#allocation64_spill] sm:$0xff]  ;;  %v5779_v30 = vld [vmem:[#allocation65_spill] sm:$0xff] }
 0x801   :  { %3192 = vtanh.f32 %v2294_v33  ;;  %v2302_v38 = vadd.f32 1.0, %v3189_v18  ;;  %v5777_v33 = vld [vmem:[#allocation63_spill] sm:$0xff]  ;;  %v5781_v18 = vld [vmem:[#allocation68_spill] sm:$0xff] }
 0x802   :  { %3194 = vrcp.f32 %v2291_v56  ;;  %v5780_v56 = vld [vmem:[#allocation66_spill] sm:$0xff] }
 0x803   :  { %3196 = vrcp.f32 %v2302_v38  ;;  %v5785_v38 = vld [vmem:[#allocation72_spill] sm:$0xff] }
 0x80d   :  { %v3191_v11 = vpop.eup %3190 }
 0x80e   :  { %v3193_v1 = vpop.eup %3192 }
 0x80f   :  { %v3195_v36 = vpop.eup %3194  ;;  %v2306_v49 = vmul.f32 %v3193_v1, %v3191_v11  ;;  %v5782_v11 = vld [vmem:[#allocation69_spill] sm:$0xff]  ;;  %v5783_v1 = vld [vmem:[#allocation70_spill] sm:$0xff] }
 0x810   :  { %v2305_v34 = vmul.f32 %v3195_v36, %v4676_v19  ;;  %v3197_v61 = vpop.eup %3196  ;;  %v5750_v19 = vld [vmem:[#allocation21_spill] sm:$0xff]  ;;  %v5784_v36 = vld [vmem:[#allocation71_spill] sm:$0xff] }
 0x812   :  { %v4940_v50 = vadd.f32 %v2306_v49, %v2305_v34  ;;  %v5786_v34 = vld [vmem:[#allocation73_spill] sm:$0xff] }
 0x814   :  { %3198 = vtanh.f32 %v4940_v50 }
 0x821   :  { %v3199_v16 = vpop.eup %3198 }
 0x822   :  { %v2309_v51 = vmul.f32 %v3199_v16, %v3197_v61  ;;  %v5787_v16 = vld [vmem:[#allocation16_spill] sm:$0xff] }
 0x824   :  { %v2310_v15 = vpack.c.bf16 %v2309_v51, %v2309_v51 }
 0x826   :  { %2345 = vmatmul.mubr.bf16.vlgmr.msra.gmra.mxu0 %v2310_v15  ;;  %2386 = vmatmul.mubr.bf16.vlgmr.msra.gmra.mxu1 %v2310_v15 }
 0x827   :  { %2425 = vmatpush1.bf16.msra.mxu0 %v4527_v41  ;;  %2466 = vmatpush1.bf16.msra.mxu1 %v4530_v60  ;;  %v5732_v41 = vld [vmem:[#allocation23_spill] sm:$0xff]  ;;  %v5733_v60 = vld [vmem:[#allocation24_spill] sm:$0xff] }
 0x828   :  { %2426 = vmatprep.subr.bf16.mxu0 %v4533_v46  ;;  %2467 = vmatprep.subr.bf16.mxu1 %v4536_v9  ;;  %v5734_v46 = vld [vmem:[#allocation25_spill] sm:$0xff]  ;;  %v5735_v9 = vld [vmem:[#allocation26_spill] sm:$0xff] }
 0x829   :  { %2456 = vmatprep.mubr.bf16.mxu0 %v5411_v35  ;;  %2497 = vmatprep.mubr.bf16.mxu1 %v5411_v35  ;;  %v5731_v35 = vld [vmem:[#allocation22_spill] sm:$0xff] }
 0x82b   :  { %2427 = vmatpush1.bf16.msra.mxu0 %v4541_v10  ;;  %2468 = vmatpush1.bf16.msra.mxu1 %v4544_v42  ;;  %v5736_v10 = vld [vmem:[#allocation27_spill] sm:$0xff]  ;;  %v5737_v42 = vld [vmem:[#allocation14_spill] sm:$0xff] }
 0x82c   :  { %2428 = vmatprep.subr.bf16.mxu0 %v4547_v26  ;;  %2469 = vmatprep.subr.bf16.mxu1 %v4550_v44  ;;  %v5738_v26 = vld [vmem:[#allocation15_spill] sm:$0xff] }
 0x82d   :  { %v5739_v44 = vld [vmem:[#allocation67_spill] sm:$0xff] }
 0x82f   :  { %2429 = vmatpush1.bf16.msra.mxu0 %v4553_v12  ;;  %2470 = vmatpush1.bf16.msra.mxu1 %v4556_v43  ;;  %v5740_v12 = vld [vmem:[#allocation28_spill] sm:$0xff]  ;;  %v5741_v43 = vld [vmem:[#allocation29_spill] sm:$0xff] }
 0x830   :  { %2430 = vmatprep.subr.bf16.mxu0 %v4559_v23  ;;  %2471 = vmatprep.subr.bf16.mxu1 %v4562_v28  ;;  %v5742_v23 = vld [vmem:[#allocation30_spill] sm:$0xff]  ;;  %v5743_v28 = vld [vmem:[#allocation31_spill] sm:$0xff] }
 0x833   :  { %2431 = vmatpush1.bf16.msra.mxu0 %v4565_v6  ;;  %2472 = vmatpush1.bf16.msra.mxu1 %v4568_v7  ;;  %v5744_v6 = vld [vmem:[#allocation32_spill] sm:$0xff]  ;;  %v5745_v7 = vld [vmem:[#allocation33_spill] sm:$0xff] }
 0x834   :  { %2432 = vmatprep.subr.bf16.mxu0 %v4571_v5  ;;  %2473 = vmatprep.subr.bf16.mxu1 %v4574_v45  ;;  %v5746_v5 = vld [vmem:[#allocation34_spill] sm:$0xff]  ;;  %v5747_v45 = vld [vmem:[#allocation35_spill] sm:$0xff] }
 0x837   :  { %2433 = vmatpush1.bf16.msra.mxu0 %v4577_v47  ;;  %2474 = vmatpush1.bf16.msra.mxu1 %v4580_v48  ;;  %v5748_v47 = vld [vmem:[#allocation36_spill] sm:$0xff] }
 0x838   :  { %2434 = vmatprep.subr.bf16.mxu0 %v4699_v4  ;;  %2475 = vmatprep.subr.bf16.mxu1 %v4702_v3  ;;  %v5749_v48 = vld [vmem:[#allocation20_spill] sm:$0xff]  ;;  %v5751_v4 = vld [vmem:[#allocation37_spill] sm:$0xff]  ;;  %v5752_v3 = vld [vmem:[#allocation38_spill] sm:$0xff] }
 0x83b   :  { %2435 = vmatpush1.bf16.msra.mxu0 %v4705_v20  ;;  %2476 = vmatpush1.bf16.msra.mxu1 %v4708_v52  ;;  %v5753_v20 = vld [vmem:[#allocation39_spill] sm:$0xff]  ;;  %v5754_v52 = vld [vmem:[#allocation40_spill] sm:$0xff] }
 0x83c   :  { %2436 = vmatprep.subr.bf16.mxu0 %v4711_v62  ;;  %2477 = vmatprep.subr.bf16.mxu1 %v4714_v55  ;;  %v5755_v62 = vld [vmem:[#allocation41_spill] sm:$0xff]  ;;  %v5756_v55 = vld [vmem:[#allocation42_spill] sm:$0xff] }
 0x83f   :  { %2437 = vmatpush1.bf16.msra.mxu0 %v4717_v0  ;;  %2478 = vmatpush1.bf16.msra.mxu1 %v4720_v40  ;;  %v5757_v0 = vld [vmem:[#allocation43_spill] sm:$0xff]  ;;  %v5758_v40 = vld [vmem:[#allocation44_spill] sm:$0xff] }
 0x840   :  { %2438 = vmatprep.subr.bf16.mxu0 %v4723_v13  ;;  %2479 = vmatprep.subr.bf16.mxu1 %v4726_v14  ;;  %v5759_v13 = vld [vmem:[#allocation45_spill] sm:$0xff]  ;;  %v5760_v14 = vld [vmem:[#allocation46_spill] sm:$0xff] }
 0x843   :  { %2439 = vmatpush1.bf16.msra.mxu0 %v4729_v57  ;;  %2480 = vmatpush1.bf16.msra.mxu1 %v4732_v54  ;;  %v5761_v57 = vld [vmem:[#allocation47_spill] sm:$0xff]  ;;  %v5762_v54 = vld [vmem:[#allocation48_spill] sm:$0xff] }
 0x844   :  { %2562 = vmatprep.subr.bf16.mxu0 %v4735_v22  ;;  %2603 = vmatprep.subr.bf16.mxu1 %v4738_v24  ;;  %v5763_v22 = vld [vmem:[#allocation49_spill] sm:$0xff]  ;;  %v5764_v24 = vld [vmem:[#allocation50_spill] sm:$0xff] }
 0x846   :  { %2457 = vmatmul.mubr.bf16.vlgmr.msra.gmra.mxu0 %v2310_v15  ;;  %2498 = vmatmul.mubr.bf16.vlgmr.msra.gmra.mxu1 %v2310_v15 }
 0x847   :  { %2563 = vmatpush1.bf16.msra.mxu0 %v4741_v8  ;;  %2604 = vmatpush1.bf16.msra.mxu1 %v4744_v25  ;;  %v5765_v8 = vld [vmem:[#allocation51_spill] sm:$0xff]  ;;  %v5766_v25 = vld [vmem:[#allocation52_spill] sm:$0xff] }
 0x848   :  { %2564 = vmatprep.subr.bf16.mxu0 %v4747_v27  ;;  %2605 = vmatprep.subr.bf16.mxu1 %v4750_v29  ;;  %v5767_v27 = vld [vmem:[#allocation53_spill] sm:$0xff]  ;;  %v5768_v29 = vld [vmem:[#allocation54_spill] sm:$0xff] }
 0x84b   :  { %2565 = vmatpush1.bf16.msra.mxu0 %v4753_v31  ;;  %2606 = vmatpush1.bf16.msra.mxu1 %v4756_v17  ;;  %v5769_v31 = vld [vmem:[#allocation55_spill] sm:$0xff]  ;;  %v5770_v17 = vld [vmem:[#allocation56_spill] sm:$0xff] }
 0x84c   :  { %2566 = vmatprep.subr.bf16.mxu0 %v5731_v35  ;;  %2607 = vmatprep.subr.bf16.mxu1 %v5732_v41 }
 0x84f   :  { %2567 = vmatpush1.bf16.msra.mxu0 %v5733_v60  ;;  %2608 = vmatpush1.bf16.msra.mxu1 %v5734_v46  ;;  %v5788_v60 = vld [vmem:[#allocation17_spill] sm:$0xff] }
 0x850   :  { %2568 = vmatprep.subr.bf16.mxu0 %v5735_v9  ;;  %2609 = vmatprep.subr.bf16.mxu1 %v5736_v10 }
 0x853   :  { %2569 = vmatpush1.bf16.msra.mxu0 %v5737_v42  ;;  %2610 = vmatpush1.bf16.msra.mxu1 %v5738_v26 }
 0x854   :  { %2570 = vmatprep.subr.bf16.mxu0 %v5739_v44  ;;  %2611 = vmatprep.subr.bf16.mxu1 %v5740_v12  ;;  %v5789_v12 = vld [vmem:[#allocation18_spill] sm:$0xff] }
 0x857   :  { %2571 = vmatpush1.bf16.msra.mxu0 %v5741_v43  ;;  %2612 = vmatpush1.bf16.msra.mxu1 %v5742_v23 }
 0x858   :  { %2572 = vmatprep.subr.bf16.mxu0 %v5743_v28  ;;  %2613 = vmatprep.subr.bf16.mxu1 %v5744_v6  ;;  %v5790_v6 = vld [vmem:[#allocation19_spill] sm:$0xff] }
 0x85b   :  { %2573 = vmatpush1.bf16.msra.mxu0 %v5745_v7  ;;  %2614 = vmatpush1.bf16.msra.mxu1 %v5746_v5 }
 0x85c   :  { %2574 = vmatprep.subr.bf16.mxu0 %v5747_v45  ;;  %2615 = vmatprep.subr.bf16.mxu1 %v5748_v47 }
 0x85f   :  { %2575 = vmatpush1.bf16.msra.mxu0 %v5749_v48  ;;  %2616 = vmatpush1.bf16.msra.mxu1 %v5750_v19 }
 0x860   :  { %2576 = vmatprep.subr.bf16.mxu0 %v5751_v4  ;;  %2617 = vmatprep.subr.bf16.mxu1 %v5752_v3 }
 0x863   :  { %2577 = vmatpush1.bf16.msra.mxu0 %v5753_v20  ;;  %2618 = vmatpush1.bf16.msra.mxu1 %v5754_v52 }
 0x864   :  { %2578 = vmatprep.subr.bf16.mxu0 %v5755_v62  ;;  %2619 = vmatprep.subr.bf16.mxu1 %v5756_v55 }
 0x867   :  { %2579 = vmatpush2.bf16.msra.mxu0 %v5757_v0  ;;  %2620 = vmatpush2.bf16.msra.mxu1 %v5758_v40 }
 0x868   :  { %2580 = vmatprep.subr.bf16.mxu0 %v5759_v13  ;;  %2621 = vmatprep.subr.bf16.mxu1 %v5760_v14 }
 0x86b   :  { %2581 = vmatpush2.bf16.msra.mxu0 %v5761_v57  ;;  %2622 = vmatpush2.bf16.msra.mxu1 %v5762_v54 }
 0x86c   :  { %2582 = vmatprep.subr.bf16.mxu0 %v5763_v22  ;;  %2623 = vmatprep.subr.bf16.mxu1 %v5764_v24 }
 0x86f   :  { %2583 = vmatpush2.bf16.msra.mxu0 %v5765_v8  ;;  %2624 = vmatpush2.bf16.msra.mxu1 %v5766_v25  ;;  %v2423_v25 = vld [vmem:[#allocation4 + $0x38] sm:$0xff] }
 0x870   :  { %2584 = vmatprep.subr.bf16.mxu0 %v5767_v27  ;;  %2625 = vmatprep.subr.bf16.mxu1 %v5768_v29 }
 0x873   :  { %2585 = vmatpush2.bf16.msra.mxu0 %v5769_v31  ;;  %2626 = vmatpush2.bf16.msra.mxu1 %v5770_v17 }
 0x874   :  { %2586 = vmatprep.subr.bf16.mxu0 %v5771_v21  ;;  %2627 = vmatprep.subr.bf16.mxu1 %v5772_v59 }
 0x877   :  { %2587 = vmatpush2.bf16.msra.mxu0 %v5773_v39  ;;  %2628 = vmatpush2.bf16.msra.mxu1 %v5774_v58 }
 0x878   :  { %2588 = vmatprep.subr.bf16.mxu0 %v5775_v2  ;;  %2629 = vmatprep.subr.bf16.mxu1 %v5776_v53 }
 0x87b   :  { %2589 = vmatpush2.bf16.msra.mxu0 %v5777_v33  ;;  %2630 = vmatpush2.bf16.msra.mxu1 %v5778_v37 }
 0x87c   :  { %2590 = vmatprep.subr.bf16.mxu0 %v5779_v30  ;;  %2631 = vmatprep.subr.bf16.mxu1 %v5780_v56 }
 0x87f   :  { %2591 = vmatpush2.bf16.msra.mxu0 %v5781_v18  ;;  %2632 = vmatpush2.bf16.msra.mxu1 %v5782_v11 }
 0x880   :  { %2592 = vmatprep.subr.bf16.mxu0 %v5783_v1  ;;  %2633 = vmatprep.subr.bf16.mxu1 %v5784_v36 }
 0x883   :  { %2593 = vmatpush2.bf16.msra.mxu0 %v5785_v38  ;;  %2634 = vmatpush2.bf16.msra.mxu1 %v5786_v34 }
 0x8e6   :  { %v2346_v49 = vpop.f32.mrf.mxu0  ;;  %v2387_v61 = vpop.f32.mrf.mxu1 }
 0x8e7   :  { %v2394_v51 = vadd.f32 %v2346_v49, %v5787_v16  ;;  %v2396_v7 = vadd.f32 %v2387_v61, %v5790_v6 }
 0x8e8   :  { %v2348_v15 = vpop.f32.mrf.mxu0  ;;  %v2389_v35 = vpop.f32.mrf.mxu1 }
 0x8e9   :  { %v2828_v41 = vmul.f32 -1.442695, %v2394_v51  ;;  %v2395_v46 = vadd.f32 %v2348_v15, %v5788_v60  ;;  %v2397_v43 = vadd.f32 %v2389_v35, %v5789_v12 }
 0x8ea   :  { %v2350_v9 = vpop.f32.mrf.mxu0  ;;  %v2391_v10 = vpop.f32.mrf.mxu1 }
 0x8eb   :  { %3200 = vpow2.f32 %v2828_v41  ;;  %v2829_v42 = vmul.f32 -1.442695, %v2395_v46  ;;  %v2830_v23 = vmul.f32 -1.442695, %v2397_v43 }
 0x8ec   :  { %v2351_v26 = vpop.f32.mrf.mxu0  ;;  %v2392_v44 = vpop.f32.mrf.mxu1 }
 0x8ed   :  { %3202 = vpow2.f32 %v2829_v42 }
 0x8ee   :  { %3204 = vpow2.f32 %v2830_v23 }
 0x8f8   :  { %v3201_v28 = vpop.eup %3200 }
 0x8f9   :  { %v2401_v5 = vadd.f32 1.0, %v3201_v28 }
 0x8fa   :  { %v3203_v45 = vpop.eup %3202 }
 0x8fb   :  { %3206 = vrcp.f32 %v2401_v5  ;;  %v2407_v47 = vadd.f32 1.0, %v3203_v45  ;;  %v3205_v4 = vpop.eup %3204 }
 0x8fc   :  { %3208 = vtanh.f32 %v2396_v7  ;;  %v2414_v13 = vadd.f32 1.0, %v3205_v4 }
 0x8fd   :  { %3210 = vrcp.f32 %v2407_v47 }
 0x8fe   :  { %3212 = vrcp.f32 %v2414_v13 }
 0x906   :  { %v2458_v48 = vpop.f32.mrf.mxu0  ;;  %v2499_v19 = vpop.f32.mrf.mxu1 }
 0x908   :  { %v3207_v3 = vpop.eup %3206  ;;  %v2460_v20 = vpop.f32.mrf.mxu0 }
 0x909   :  { %v2501_v52 = vpop.f32.mrf.mxu1  ;;  %v3209_v62 = vpop.eup %3208  ;;  %v2510_v55 = vcombine.low %v2458_v48, %v2460_v20 }
 0x90a   :  { %v2511_v0 = vcombine.low %v2499_v19, %v2501_v52  ;;  %v3211_v40 = vpop.eup %3210  ;;  %v2462_v14 = vpop.f32.mrf.mxu0  ;;  %v2418_v54 = vmul.f32 %v3209_v62, %v3207_v3 }
 0x90b   :  { %v2503_v57 = vpop.f32.mrf.mxu1  ;;  %v2417_v22 = vmul.f32 %v3211_v40, %v4936_v32  ;;  %v2518_v24 = vrot.slane %v2510_v55, %v3866_v63  ;;  %v3213_v2 = vpop.eup %3212 }
 0x90c   :  { %v2525_v8 = vrot.slane %v2511_v0, %v3866_v63  ;;  %v2463_v27 = vpop.f32.mrf.mxu0 }
 0x90d   :  { %v2504_v29 = vpop.f32.mrf.mxu1  ;;  %v5046_v17 = vadd.f32 %v2418_v54, %v2417_v22 }
 0x90e   :  { %v2526_v31 = vcombine.low %v2518_v24, %v2525_v8 }
 0x90f   :  { %3214 = vtanh.f32 %v5046_v17 }
 0x910   :  { %v2528_v21 = vadd.f32 %v2526_v31, %v2423_v25 }
 0x912   :  { %v2831_v59 = vmul.f32 -1.442695, %v2528_v21  ;;  %v2536_v39 = vrot.slane %v2528_v21, 2  ;;  %v2547_v32 = vrot.slane %v2528_v21, 6  ;;  %v2544_v56 = vrot.slane %v2528_v21, 4 }
 0x914   :  { %3216 = vpow2.f32 %v2831_v59  ;;  %v2832_v58 = vmul.f32 -1.442695, %v2536_v39  ;;  %v2833_v63 = vmul.f32 -1.442695, %v2547_v32 }
 0x916   :  { %3218 = vpow2.f32 %v2832_v58 }
 0x917   :  { %3220 = vpow2.f32 %v2833_v63 }
 0x91c   :  { %v3215_v53 = vpop.eup %3214 }
 0x91d   :  { %v2421_v33 = vmul.f32 %v3215_v53, %v3213_v2 }
 0x91f   :  { %v2561_v37 = vpack.c.bf16 %v2421_v33, %v2421_v33 }
 0x921   :  { %v3217_v30 = vpop.eup %3216  ;;  %2594 = vmatprep.mubr.bf16.mxu0 %v2561_v37  ;;  %2635 = vmatprep.mubr.bf16.mxu1 %v2561_v37 }
 0x922   :  { %v2532_v18 = vadd.f32 1.0, %v3217_v30 }
 0x923   :  { %v3219_v11 = vpop.eup %3218 }
 0x924   :  { %3222 = vrcp.f32 %v2532_v18  ;;  %v2541_v1 = vadd.f32 1.0, %v3219_v11  ;;  %v3221_v36 = vpop.eup %3220 }
 0x925   :  { %3224 = vtanh.f32 %v2544_v56  ;;  %v2552_v61 = vadd.f32 1.0, %v3221_v36 }
 0x926   :  { %3226 = vrcp.f32 %v2541_v1 }
 0x927   :  { %3228 = vrcp.f32 %v2552_v61 }
 0x931   :  { %v3223_v38 = vpop.eup %3222 }
 0x932   :  { %v3225_v34 = vpop.eup %3224 }
 0x933   :  { %v3227_v49 = vpop.eup %3226  ;;  %v2556_v15 = vmul.f32 %v3225_v34, %v3223_v38 }
 0x934   :  { %v2555_v51 = vmul.f32 %v3227_v49, %v4940_v50  ;;  %v3229_v41 = vpop.eup %3228 }
 0x936   :  { %v2557_v35 = vadd.f32 %v2556_v15, %v2555_v51 }
 0x938   :  { %3230 = vtanh.f32 %v2557_v35  ;;  %2673 = vst [vmem:[#allocation3] sm:$0x3] %v2557_v35 }
 0x945   :  { %v3231_v46 = vpop.eup %3230 }
 0x946   :  { %v2559_v9 = vmul.f32 %v3231_v46, %v3229_v41 }
 0x948   :  { %v2560_v10 = vpack.c.bf16 %v2559_v9, %v2559_v9  ;;  %2672 = vst [vmem:[#allocation2] sm:$0x3] %v2559_v9 }
 0x94a   :  { %2595 = vmatmul.mubr.bf16.vlgmr.msra.gmra.mxu0 %v2560_v10  ;;  %2636 = vmatmul.mubr.bf16.vlgmr.msra.gmra.mxu1 %v2560_v10 }
 0xa0a   :  { %v2596_v42 = vpop.f32.mrf.mxu0  ;;  %v2637_v26 = vpop.f32.mrf.mxu1 }
 0xa0b   :  { %v2644_v44 = vadd.f32 %v2596_v42, %v5787_v16  ;;  %v2646_v20 = vadd.f32 %v2637_v26, %v5790_v6 }
 0xa0c   :  { %v2598_v43 = vpop.f32.mrf.mxu0  ;;  %v2639_v23 = vpop.f32.mrf.mxu1 }
 0xa0d   :  { %v2834_v28 = vmul.f32 -1.442695, %v2644_v44  ;;  %v2645_v50 = vadd.f32 %v2598_v43, %v5788_v60  ;;  %v2647_v19 = vadd.f32 %v2639_v23, %v5789_v12 }
 0xa0e   :  { %v2600_v7 = vpop.f32.mrf.mxu0  ;;  %v2641_v5 = vpop.f32.mrf.mxu1 }
 0xa0f   :  { %3232 = vpow2.f32 %v2834_v28  ;;  %v2835_v45 = vmul.f32 -1.442695, %v2645_v50  ;;  %v2836_v4 = vmul.f32 -1.442695, %v2647_v19 }
 0xa10   :  { %v2601_v47 = vpop.f32.mrf.mxu0  ;;  %v2642_v48 = vpop.f32.mrf.mxu1 }
 0xa11   :  { %3234 = vpow2.f32 %v2835_v45 }
 0xa12   :  { %3236 = vpow2.f32 %v2836_v4 }
 0xa1c   :  { %v3233_v3 = vpop.eup %3232 }
 0xa1d   :  { %v2651_v52 = vadd.f32 1.0, %v3233_v3 }
 0xa1e   :  { %v3235_v16 = vpop.eup %3234 }
 0xa1f   :  { %3238 = vrcp.f32 %v2651_v52  ;;  %v2657_v62 = vadd.f32 1.0, %v3235_v16  ;;  %v3237_v60 = vpop.eup %3236 }
 0xa20   :  { %3240 = vtanh.f32 %v2646_v20  ;;  %v2664_v13 = vadd.f32 1.0, %v3237_v60 }
 0xa21   :  { %3242 = vrcp.f32 %v2657_v62 }
 0xa22   :  { %3244 = vrcp.f32 %v2664_v13 }
 0xa2c   :  { %v3239_v55 = vpop.eup %3238 }
 0xa2d   :  { %v3241_v0 = vpop.eup %3240 }
 0xa2e   :  { %v3243_v40 = vpop.eup %3242  ;;  %v2668_v14 = vmul.f32 %v3241_v0, %v3239_v55 }
 0xa2f   :  { %v2667_v57 = vmul.f32 %v3243_v40, %v5046_v17  ;;  %v3245_v6 = vpop.eup %3244 }
 0xa31   :  { %v2669_v12 = vadd.f32 %v2668_v14, %v2667_v57 }
 0xa33   :  { %3246 = vtanh.f32 %v2669_v12  ;;  %2675 = vst [vmem:[#allocation3 + $0x2] sm:$0x3] %v2669_v12 }
 0xa40   :  { %v3247_v54 = vpop.eup %3246 }
 0xa41   :  { %v2671_v22 = vmul.f32 %v3247_v54, %v3245_v6 }
 0xa43   :  { %2674 = vst [vmem:[#allocation2 + $0x2] sm:$0x3] %v2671_v22  ;;  %2676 = vst [vmem:[#allocation10] sm:$0x3] %v2671_v22 }
 0xa44   :  { %3511 = shalt.err (!%p3508_p5)
}
 0xa45   :  { %2686 = dma.vmem_to_hbm [thread:$0]  %s2684_s7, 32, %s5062_s4, [#allocation6]  }
 0xa46   :  { %3524 = dma.done.wait [#allocation6], 32  }
 0xa47   :  { %3525 = vsyncadd [#allocation6], 4294967264 }
 0xa48   :  { %2690 = vsyncpa [#allocation5], 1 }
 0xa49   :  { %2691 = vsyncpa [#allocation8], 1 }
 0xa4a   :  { %2692 = vsyncpa [#allocation6], 1 }

</bundles_post_ra>
